<compile_context>
chip_gen: v7x
topology: tpu7x:2x2x1
jax: 0.10.0
libtpu: 0.0.40
codegen_flags: <defaults>
</compile_context>

<pallas_src>
import jax
import jax.numpy as jnp
from jax.experimental import pallas as pl
from jax.experimental.pallas import tpu as pltpu

LANES = 128
SUBLANES = 8
TILE_TARGET_BYTES = 2 * 1024 * 1024    # per-stream DMA per grid step (~2 MiB)
STREAM_MIN_BYTES = 1 * 1024 * 1024     # triples >= 1 MiB (all 3 streams) stream-reduce
FUSED_GROUP_BYTES = 8 * 1024 * 1024    # VMEM budget per fused small-tensor call
FUSED_GROUP_MAX = 48                   # max triples per fused call
VMEM_LIMIT_BYTES = 48 * 1024 * 1024    # scoped VMEM for streaming (ok on v5e/v6e/v7x)


def _round_up(x, m):
    return ((x + m - 1) // m) * m


# --------------------------------------------------------------------------- #
# Kernels
# --------------------------------------------------------------------------- #
def _make_fused_kernel(n_triples):
    """Fused whole-array kernel: sum_t fisher_t * (param_t - optimal_t)^2."""

    def kernel(*refs):
        out_ref = refs[-1]                          # (1, 1) f32, VMEM
        total = jnp.zeros((1, 1), jnp.float32)
        for t in range(n_triples):                  # static unrolled over tensors
            f = refs[3 * t][...].astype(jnp.float32)
            p = refs[3 * t + 1][...].astype(jnp.float32)
            o = refs[3 * t + 2][...].astype(jnp.float32)
            d = p - o
            total = total + jnp.sum(f * d * d)
        out_ref[...] = total

    return kernel


def _ewc_stream_kernel(f_ref, p_ref, o_ref, out_ref, acc_ref):
    """Streaming reduction over row-tiles of one large tensor.

    Per grid step: 3 tile loads, VPU elementwise, one tile reduce accumulated
    into a (1, 1) f32 VMEM scratch.  Compute is hidden under the HBM DMA.
    """
    i = pl.program_id(0)

    @pl.when(i == 0)
    def _init():
        acc_ref[...] = jnp.zeros_like(acc_ref)

    f = f_ref[...].astype(jnp.float32)
    d = p_ref[...].astype(jnp.float32) - o_ref[...].astype(jnp.float32)
    acc_ref[...] += jnp.sum(f * d * d)

    @pl.when(i == pl.num_programs(0) - 1)
    def _finalize():
        out_ref[...] = acc_ref[...]


# --------------------------------------------------------------------------- #
# Wrappers
# --------------------------------------------------------------------------- #
def _fused_partial(triples):
    """One pallas_call over a batch of small tensors, each as a whole VMEM block."""
    args, in_specs = [], []
    flops = 0
    bytes_accessed = 0
    for f, p, o in triples:
        args += [f, p, o]
        in_specs += [pl.BlockSpec(memory_space=pltpu.MemorySpace.VMEM)] * 3
        flops += 4 * int(f.size)
        bytes_accessed += sum(int(t.size) * t.dtype.itemsize for t in (f, p, o))

    out = pl.pallas_call(
        _make_fused_kernel(len(triples)),
        out_shape=jax.ShapeDtypeStruct((1, 1), jnp.float32),
        in_specs=in_specs,
        out_specs=pl.BlockSpec(memory_space=pltpu.MemorySpace.VMEM),
        cost_estimate=pl.CostEstimate(
            flops=flops, transcendentals=0, bytes_accessed=bytes_accessed),
    )(*args)
    return out[0, 0]


def _pick_leading_tile(shape, itemsize):
    """Pick a row-block size for a rank-2 tensor, or None if no clean tiling."""
    d0, d1 = shape
    row_bytes = d1 * itemsize
    if row_bytes == 0 or d0 == 0 or row_bytes > TILE_TARGET_BYTES:
        return None
    max_tb = TILE_TARGET_BYTES // row_bytes
    if d0 <= max_tb:
        return d0                      # one block; last-two block dims == full dims
    # Second-to-last block dim must be a multiple of 8 (or full): search multiples
    # of 8 that divide d0, staying within ~8x of the target tile size.
    tb = (max_tb // SUBLANES) * SUBLANES
    tb_min = max(SUBLANES, (max_tb // 8) // SUBLANES * SUBLANES)
    while tb >= tb_min:
        if d0 % tb == 0:
            return tb
        tb -= SUBLANES
    return None


def _lane_view(t, padded_rows):
    """Flatten + zero-pad a tensor into a lane-dense (padded_rows, 128) view."""
    flat = jnp.ravel(t)
    pad = padded_rows * LANES - flat.size
    if pad:
        flat = jnp.concatenate([flat, jnp.zeros((pad,), flat.dtype)])
    return flat.reshape(padded_rows, LANES)


def _stream_partial(fisher, param, optimal):
    """Tiled streaming reduction for one large tensor (no wrapper-side copy in
    the common rank-2 case)."""
    shape = fisher.shape
    itemsize = max(t.dtype.itemsize for t in (fisher, param, optimal))

    tb = _pick_leading_tile(shape, itemsize) if len(shape) == 2 else None
    if tb is None:
        # Ragged / rank>=3 fallback: lane-dense view with balanced tiles
        # (zero-pad waste < 8 rows per tile, i.e. ~0.2%).
        # TODO(synk): a fully copy-free path for these would pass the raw HBM ref
        # (memory_space=pl.ANY) and drive per-tile DMA from scalar-prefetched offsets.
        n = int(fisher.size)
        rows = -(-n // LANES)
        row_target = max(SUBLANES, TILE_TARGET_BYTES // (LANES * itemsize))
        k = -(-rows // row_target)
        tb = _round_up(-(-rows // k), SUBLANES)
        padded_rows = k * tb
        fisher, param, optimal = (
            _lane_view(t, padded_rows) for t in (fisher, param, optimal))
        shape = fisher.shape

    k = shape[0] // tb
    block = (tb,) + tuple(shape[1:])
    trailing_zeros = (0,) * (len(shape) - 1)
    in_spec = pl.BlockSpec(block, lambda i: (i,) + trailing_zeros)

    n_elems = int(fisher.size)
    cost = pl.CostEstimate(
        flops=4 * n_elems,
        transcendentals=0,
        bytes_accessed=3 * n_elems * itemsize,
    )

    out = pl.pallas_call(
        _ewc_stream_kernel,
        out_shape=jax.ShapeDtypeStruct((1, 1), jnp.float32),
        grid=(k,),
        in_specs=[in_spec, in_spec, in_spec],
        out_specs=pl.BlockSpec((1, 1), lambda i: (0, 0)),
        scratch_shapes=[pltpu.VMEM((1, 1), jnp.float32)],
        compiler_params=pltpu.CompilerParams(
            dimension_semantics=("arbitrary",),
            vmem_limit_bytes=VMEM_LIMIT_BYTES,
        ),
        cost_estimate=cost,
    )(fisher, param, optimal)
    return out[0, 0]


def ewc_loss(fisher_list, param_list, optimal_list, ewc_lambda=1000.0):
    """EWC penalty = ewc_lambda * sum_i (F_i * (theta_i - theta*_i)^2).sum()."""
    partials = []
    group, group_bytes = [], 0

    def flush_group():
        nonlocal group, group_bytes
        if group:
            partials.append(_fused_partial(group))
            group, group_bytes = [], 0

    for f, p, o in zip(fisher_list, param_list, optimal_list):
        assert f.shape == p.shape == o.shape, "mismatched parameter shapes"
        nbytes = sum(int(t.size) * t.dtype.itemsize for t in (f, p, o))
        if nbytes >= STREAM_MIN_BYTES:
            partials.append(_stream_partial(f, p, o))
        else:
            if group and (group_bytes + nbytes > FUSED_GROUP_BYTES
                          or len(group) >= FUSED_GROUP_MAX):
                flush_group()
            # Ravel tiny tensors (cheap) so the fused kernel only sees 1-D refs.
            group.append((jnp.ravel(f), jnp.ravel(p), jnp.ravel(o)))
            group_bytes += nbytes
    flush_group()

    if not partials:
        return jnp.float32(0.0)
    total = partials[0]
    for x in partials[1:]:
        total = total + x
    return jnp.float32(ewc_lambda) * total


if __name__ == "__main__":
    key = jax.random.PRNGKey(0)

    # Deterministic synthetic registered-task parameters: conv weight/bias,
    # linear weight/bias, plus one larger weight to exercise the streaming path.
    shapes = {
        "conv.weight": (4, 4, 3, 3),
        "conv.bias": (4,),
        "fc.weight": (32, 4 * 16 * 16),
        "fc.bias": (32,),
        "encoder.weight": (2048, 512),   # routed through the tiled streaming kernel
    }

    params, optimal, fisher = [], [], []
    for name, shp in shapes.items():
        key, k1, k2, k3 = jax.random.split(key, 4)
        p = jax.random.normal(k1, shp, dtype=jnp.float32) * 0.1
        opt = p + jax.random.normal(k2, shp, dtype=jnp.float32) * 0.05
        fi = jax.random.uniform(k3, shp, dtype=jnp.float32)   # Fisher info >= 0
        params.append(p)
        optimal.append(opt)
        fisher.append(fi)

    ewc_lambda = 1000.0
    loss = ewc_loss(fisher, params, optimal, ewc_lambda=ewc_lambda)
    loss = jax.block_until_ready(loss)

    # Pure-JAX reference (same semantics as the PyTorch forward).
    ref = ewc_lambda * sum(
        jnp.sum(f * (p - o) ** 2) for f, p, o in zip(fisher, params, optimal)
    )
    assert jnp.allclose(loss, ref, rtol=1e-4, atol=1e-2), (float(loss), float(ref))

    print("KERNEL_OK")
</pallas_src>

<mosaic_0001>
module attributes {stable_mosaic.version = 11 : i64} {
  func.func @_ewc_stream_kernel(%arg0: i32, %arg1: memref<1024x512xf32, #tpu.memory_space<vmem>>, %arg2: memref<1024x512xf32, #tpu.memory_space<vmem>>, %arg3: memref<1024x512xf32, #tpu.memory_space<vmem>>, %arg4: memref<1x1xf32, #tpu.memory_space<vmem>>, %arg5: memref<1x1xf32, #tpu.memory_space<vmem>>) attributes {dimension_semantics = [#tpu.dimension_semantics<arbitrary>], iteration_bounds = array<i64: 2>, scalar_prefetch = 0 : i64, scratch_operands = 1 : i64, tpu.core_type = #tpu.core_type<tc>, window_params = [{transform_indices = @transform_0, window_bounds = array<i64: 1024, 512>}, {transform_indices = @transform_1, window_bounds = array<i64: 1024, 512>}, {transform_indices = @transform_2, window_bounds = array<i64: 1024, 512>}, {pipeline_mode = #tpu.pipeline_mode<synchronous>, transform_indices = @transform_3, window_bounds = array<i64: 1, 1>}]} {
    %c0_i32 = arith.constant 0 : i32
    %0 = arith.cmpi eq, %arg0, %c0_i32 : i32
    %1 = arith.extui %0 : i1 to i32
    %c0_i32_0 = arith.constant 0 : i32
    %2 = arith.cmpi ne, %1, %c0_i32_0 : i32
    scf.if %2 {
      %cst_11 = arith.constant 0.000000e+00 : f32
      %20 = vector.broadcast %cst_11 : f32 to vector<1x1xf32>
      %c0_12 = arith.constant 0 : index
      %c0_13 = arith.constant 0 : index
      %21 = vector.load %arg5[%c0_12, %c0_13] : memref<1x1xf32, #tpu.memory_space<vmem>>, vector<1x1xf32>
      tpu.vector_store %arg5[%c0_12, %c0_13], %20 {strides = array<i32>} : memref<1x1xf32, #tpu.memory_space<vmem>>, vector<1x1xf32>,
    } else {
    }
    %c0 = arith.constant 0 : index
    %c0_1 = arith.constant 0 : index
    %3 = vector.load %arg1[%c0, %c0_1] : memref<1024x512xf32, #tpu.memory_space<vmem>>, vector<1024x512xf32>
    %c0_2 = arith.constant 0 : index
    %c0_3 = arith.constant 0 : index
    %4 = vector.load %arg2[%c0_2, %c0_3] : memref<1024x512xf32, #tpu.memory_space<vmem>>, vector<1024x512xf32>
    %c0_4 = arith.constant 0 : index
    %c0_5 = arith.constant 0 : index
    %5 = vector.load %arg3[%c0_4, %c0_5] : memref<1024x512xf32, #tpu.memory_space<vmem>>, vector<1024x512xf32>
    %6 = arith.subf %4, %5 : vector<1024x512xf32>
    %c0_6 = arith.constant 0 : index
    %c0_7 = arith.constant 0 : index
    %7 = vector.load %arg5[%c0_6, %c0_7] : memref<1x1xf32, #tpu.memory_space<vmem>>, vector<1x1xf32>
    %8 = arith.mulf %3, %6 : vector<1024x512xf32>
    %9 = arith.mulf %8, %6 : vector<1024x512xf32>
    %10 = vector.shape_cast %9 : vector<1024x512xf32> to vector<1x1024x512xf32>
    %cst = arith.constant dense<0.000000e+00> : vector<1xf32>
    %11 = vector.multi_reduction <add>, %10, %cst [1, 2] : vector<1x1024x512xf32> to vector<1xf32>
    %12 = vector.shape_cast %11 : vector<1xf32> to vector<1x1x1xf32>
    %13 = vector.extract %12[0, 0, 0] : f32 from vector<1x1x1xf32>
    %14 = vector.broadcast %13 : f32 to vector<1x1xf32>
    %15 = arith.addf %7, %14 : vector<1x1xf32>
    %c0_8 = arith.constant 0 : index
    %c0_9 = arith.constant 0 : index
    %16 = vector.load %arg5[%c0_8, %c0_9] : memref<1x1xf32, #tpu.memory_space<vmem>>, vector<1x1xf32>
    tpu.vector_store %arg5[%c0_8, %c0_9], %15 {strides = array<i32>} : memref<1x1xf32, #tpu.memory_space<vmem>>, vector<1x1xf32>,
    %c1_i32 = arith.constant 1 : i32
    %17 = arith.cmpi eq, %arg0, %c1_i32 : i32
    %18 = arith.extui %17 : i1 to i32
    %c0_i32_10 = arith.constant 0 : i32
    %19 = arith.cmpi ne, %18, %c0_i32_10 : i32
    scf.if %19 {
      %c0_11 = arith.constant 0 : index
      %c0_12 = arith.constant 0 : index
      %20 = vector.load %arg5[%c0_11, %c0_12] : memref<1x1xf32, #tpu.memory_space<vmem>>, vector<1x1xf32>
      %c0_13 = arith.constant 0 : index
      %c0_14 = arith.constant 0 : index
      %21 = vector.load %arg4[%c0_13, %c0_14] : memref<1x1xf32, #tpu.memory_space<vmem>>, vector<1x1xf32>
      tpu.vector_store %arg4[%c0_13, %c0_14], %20 {strides = array<i32>} : memref<1x1xf32, #tpu.memory_space<vmem>>, vector<1x1xf32>,
    } else {
    }
    return
  }
  func.func @transform_0(%arg0: i32) -> (i32, i32) {
    %c0_i32 = arith.constant 0 : i32
    %c0_i32_0 = arith.constant 0 : i32
    return %arg0, %c0_i32 : i32, i32
  }
  func.func @transform_1(%arg0: i32) -> (i32, i32) {
    %c0_i32 = arith.constant 0 : i32
    %c0_i32_0 = arith.constant 0 : i32
    return %arg0, %c0_i32 : i32, i32
  }
  func.func @transform_2(%arg0: i32) -> (i32, i32) {
    %c0_i32 = arith.constant 0 : i32
    %c0_i32_0 = arith.constant 0 : i32
    return %arg0, %c0_i32 : i32, i32
  }
  func.func @transform_3(%arg0: i32) -> (i32, i32) {
    %c0_i32 = arith.constant 0 : i32
    %c0_i32_0 = arith.constant 0 : i32
    %c0_i32_1 = arith.constant 0 : i32
    return %c0_i32, %c0_i32_0 : i32, i32
  }
}

</mosaic_0001>

<bundles_post_ra>
// kernel: tpu_custom_call.1
= control target key start
LH: loop header
LB: loop body
LE: loop exit
PB: predicated region body
PF: predicated region fallthrough
CT: control target
= control target key end

     0   :  { %8 = vsyncpa [#allocation4], 0  ;;  %s6017_s0 = inlined_call_operand.hbm [shape: f32[2048,512], index: 0, kind: input, shape index: {}]   ;;  %s6018_s1 = inlined_call_operand.hbm [shape: f32[2048,512], index: 1, kind: input, shape index: {}]   ;;  %s6019_s2 = inlined_call_operand.hbm [shape: f32[2048,512], index: 2, kind: input, shape index: {}]   ;;  %s6020_s3 = inlined_call_operand.hbm [shape: f32[1,1], index: 3, kind: output, shape index: {}]  }
   0x1   :  { %10 = vsyncpa [#allocation4 + $0x1], 0 }
   0x2   :  { %11 = vsyncpa [#allocation7], 0 }
   0x3   :  { %13 = vsyncpa [#allocation7 + $0x1], 0 }
   0x4   :  { %14 = vsyncpa [#allocation5], 0  ;;  %s4248_s12 = smov 0   ;;  %s4250_s13 = smov 0  }
   0x5   :  { %s4252_s14 = smov 0   ;;  %s4254_s15 = smov 0  }
   0x6 LB: > { %s4267_s16 = sadd.s32 4294967295, %s4219_s15   ;;  %s4270_s17 = sadd.s32 1, %s4219_s15   ;;  %s4219_s15 = sphi %s4254_s15, %s6033_s15   ;;  %s4215_s14 = sphi %s4252_s14, %s6032_s14   ;;  %s4211_s13 = sphi %s4250_s13, %s6031_s13   ;;  %s4207_s12 = sphi %s4248_s12, %s6030_s12  }
   0x7   : > { %s24_s18 = ssub.s32 %s4219_s15, %s4270_s17  ;;  %s27_s19 = sadd.s32 1, %s4215_s14 }
   0x8   : > { %p25_p0 = scmp.eq.s32.totalorder %s24_s18, 0  ;;  %p34_p1 = scmp.ne.s32.totalorder %s4215_s14, %s4211_s13 }
   0x9   : > { %p35_p2 = scmp.eq.s32.totalorder %s4219_s15, 0  ;;  %p40_p3 = scmp.ne.s32.totalorder %s4211_s13, %s4207_s12 }
   0xa   : > { %s4280_s20 = scalar_select %p25_p0, %s4215_s14, %s27_s19  }
   0xb   : > { %p36_p4 = por %p35_p2, %p34_p1  ;;  %p41_p5 = scmp.eq.s32.totalorder %s4267_s16, 0 }
   0xc   : > { %p4022_p6 = scmp.lt.s32.totalorder %s4219_s15, 2  ;;  %s137_s22 = sand.u32 1, %s4215_s14  }
   0xd   : > { %p4284_p7 = por %p41_p5, %p40_p3  ;;  %s4291_s23 = sshll.u32 %s137_s22, 12 }
   0xe   : > { %s4294_s24 = sshll.u32 %s4219_s15, 16  ;;  %p4296_p8 = pnand %p4022_p6, %p36_p4 }
   0xf   : > { %s6022_s21 = scalar_select %p4284_p7, 1, 0 }
  0x10   : > { %s159_s26 = sand.u32 1, %s4219_s15   ;;  %s4305_s29 = scalar_lea.hbm %s6018_s1, %s4294_s24 }
  0x11   : > { %s163_s30 = scalar_lea.vmem [#allocation6], %s4291_s23  ;;  %s4312_s5 = scalar_lea.sflag [#allocation7], %s159_s26 }
  0x12   : > { %s171_s4 = sshll.u32 %s163_s30, 4  ;;  %s4061_s6 = scalar_lea.hbm %s4305_s29, 65536  ;;  %s4309_s4 = int_to_ptr.vmem [resolvable:$true] %s171_s4 }
  0x13   : > { %p4062_p11 = scmp.ne.s32.totalorder %s4305_s29, %s4061_s6  ;;  %p4318_p12 = pneg %p4296_p8 }
  0x14   : > { %s4066_s10 = scalar_lea.hbm %s6018_s1, 131072  ;;  %p4067_p1 = scmp.lt.u32.totalorder %s4305_s29, %s6018_s1 }
  0x15   : > { %p4064_p13 = pnand %p4318_p12, %p4062_p11  ;;  %p4068_p2 = scmp.lt.u32.totalorder %s4066_s10, %s4061_s6 }
  0x16   : > { %p4070_p4 = scmp.lt.u32.totalorder %s4061_s6, %s4305_s29 }
  0x17   : > { %p4065_p0 = pneg %p4064_p13  ;;  %p4069_p3 = por %p4068_p2, %p4067_p1 }
  0x19   : > { %p4071_p5 = por %p4070_p4, %p4069_p3 }
  0x1b   : > { %p4072_p6 = pnand %p4071_p5, %p4065_p0 }
  0x1d   : > { %4075 = shalt.err (!%p4072_p6)
}
  0x1e   : > { %s4076_s18 = scalar_lea.vmem %s4309_s4, 65536  ;;  %s4221_s19 = smov [#allocation6]  }
  0x1f   : > { %p4077_p11 = scmp.ne.s32.totalorder %s4309_s4, %s4076_s18  ;;  %s4081_s26 = sshll.u32 %s4221_s19, 4  ;;  %s4082_s26 = int_to_ptr.vmem [resolvable:$false] %s4081_s26 }
  0x20   : > { %s4083_s27 = scalar_lea.vmem %s4082_s26, 131072  ;;  %p4084_p10 = scmp.lt.s32.totalorder %s4309_s4, %s4082_s26 }
  0x21   : > { %p4079_p13 = pnand %p4077_p11, %p4318_p12  ;;  %p4085_p7 = scmp.lt.s32.totalorder %s4083_s27, %s4076_s18 }
  0x23   : > { %p4080_p9 = pneg %p4079_p13  ;;  %p4086_p1 = por %p4085_p7, %p4084_p10 }
  0x25   : > { %p4087_p2 = pnand %p4086_p1, %p4080_p9 }
  0x27   : > { %4090 = shalt.err (!%p4087_p2)
}
  0x28   : > { %s4222_s28 = smov 512   ;;  %s4223_s30 = smov 32  }
  0x29   : > { %4018 = dma.hbm_to_vmem [thread:$0]  (!%p4296_p8), %s4305_s29, 65536, %s4309_s4, %s4312_s5, %s4222_s28, %s4222_s28, %s4223_s30  }
  0x2a   : > { %p6025_p7 = scmp.lt.s32.totalorder %s4219_s15, 3  ;;  %p6026_p9 = scmp.ge.s32.totalorder %s4219_s15, 1 }
  0x2b   : > { %s4357_s10 = scalar_lea.hbm %s6017_s0, %s4294_s24  ;;  %s141_s11 = scalar_lea.vmem [#allocation3], %s4291_s23 }
  0x2c   : > { %p4349_p10 = pnand %p6026_p9, %p6025_p7  ;;  %s149_s12 = sshll.u32 %s141_s11, 4  ;;  %s4360_s12 = int_to_ptr.vmem [resolvable:$true] %s149_s12 }
  0x2d   : > { %s4366_s15 = scalar_lea.hbm %s6019_s2, %s4294_s24  ;;  %s4370_s18 = scalar_lea.sflag [#allocation4], %s137_s22 }
  0x2e   : > { %s6027_s6 = scalar_select %p4349_p10, 1, 0 }
  0x2f   : > { %s4091_s19 = scalar_lea.hbm %s4357_s10, 65536  ;;  %s4096_s8 = scalar_lea.hbm %s6017_s0, 131072 }
  0x30   : > { %p4092_p0 = scmp.ne.s32.totalorder %s4357_s10, %s4091_s19  ;;  %p4097_p5 = scmp.lt.u32.totalorder %s4357_s10, %s6017_s0 }
  0x31   : > { %p4098_p6 = scmp.lt.u32.totalorder %s4096_s8, %s4091_s19  ;;  %p4100_p13 = scmp.lt.u32.totalorder %s4091_s19, %s4357_s10 }
  0x32   : > { %p4094_p3 = pnand %p4092_p0, %p4318_p12 }
  0x33   : > { %p4099_p11 = por %p4098_p6, %p4097_p5 }
  0x34   : > { %p4095_p4 = pneg %p4094_p3 }
  0x35   : > { %p4101_p1 = por %p4100_p13, %p4099_p11 }
  0x37   : > { %p4102_p2 = pnand %p4101_p1, %p4095_p4 }
  0x39   : > { %4105 = shalt.err (!%p4102_p2)
}
  0x3a   : > { %s4106_s22 = scalar_lea.vmem %s4360_s12, 65536  ;;  %s4224_s24 = smov [#allocation3]  }
  0x3b   : > { %p4107_p7 = scmp.ne.s32.totalorder %s4360_s12, %s4106_s22  ;;  %s4111_s29 = sshll.u32 %s4224_s24, 4  ;;  %s4112_s29 = int_to_ptr.vmem [resolvable:$false] %s4111_s29 }
  0x3c   : > { %s4113_s4 = scalar_lea.vmem %s4112_s29, 131072  ;;  %p4114_p3 = scmp.lt.s32.totalorder %s4360_s12, %s4112_s29 }
  0x3d   : > { %p4109_p9 = pnand %p4107_p7, %p4318_p12  ;;  %p4115_p10 = scmp.lt.s32.totalorder %s4113_s4, %s4106_s22 }
  0x3f   : > { %p4110_p0 = pneg %p4109_p9  ;;  %p4116_p5 = por %p4115_p10, %p4114_p3 }
  0x41   : > { %p4117_p6 = pnand %p4116_p5, %p4110_p0 }
  0x43   : > { %4120 = shalt.err (!%p4117_p6)
}
  0x44   : > { %4015 = dma.hbm_to_vmem [thread:$0]  (!%p4296_p8), %s4357_s10, 65536, %s4360_s12, %s4370_s18, %s4222_s28, %s4222_s28, %s4223_s30  }
  0x45   : > { %s185_s19 = scalar_lea.vmem [#allocation8], %s4291_s23  ;;  %s4121_s27 = scalar_lea.hbm %s4366_s15, 65536 }
  0x46   : > { %s193_s26 = sshll.u32 %s185_s19, 4  ;;  %p4122_p10 = scmp.ne.s32.totalorder %s4366_s15, %s4121_s27  ;;  %s4398_s26 = int_to_ptr.vmem [resolvable:$true] %s193_s26 }
  0x47   : > { %s4126_s11 = scalar_lea.hbm %s6019_s2, 131072  ;;  %p4127_p13 = scmp.lt.u32.totalorder %s4366_s15, %s6019_s2 }
  0x48   : > { %p4124_p4 = pnand %p4122_p10, %p4318_p12  ;;  %p4128_p1 = scmp.lt.u32.totalorder %s4126_s11, %s4121_s27 }
  0x49   : > { %p4130_p7 = scmp.lt.u32.totalorder %s4121_s27, %s4366_s15 }
  0x4a   : > { %p4125_p11 = pneg %p4124_p4  ;;  %p4129_p2 = por %p4128_p1, %p4127_p13 }
  0x4c   : > { %p4131_p9 = por %p4130_p7, %p4129_p2 }
  0x4e   : > { %p4132_p0 = pnand %p4131_p9, %p4125_p11 }
  0x50   : > { %4135 = shalt.err (!%p4132_p0)
}
  0x51   : > { %s4136_s23 = scalar_lea.vmem %s4398_s26, 65536  ;;  %s4225_s10 = smov [#allocation8]  }
  0x52   : > { %p4137_p3 = scmp.ne.s32.totalorder %s4398_s26, %s4136_s23  ;;  %s4141_s12 = sshll.u32 %s4225_s10, 4  ;;  %s4142_s12 = int_to_ptr.vmem [resolvable:$false] %s4141_s12 }
  0x53   : > { %s4143_s18 = scalar_lea.vmem %s4142_s12, 131072  ;;  %p4144_p10 = scmp.lt.s32.totalorder %s4398_s26, %s4142_s12 }
  0x54   : > { %p4139_p5 = pnand %p4137_p3, %p4318_p12  ;;  %p4145_p4 = scmp.lt.s32.totalorder %s4143_s18, %s4136_s23 }
  0x56   : > { %p4140_p6 = pneg %p4139_p5  ;;  %p4146_p13 = por %p4145_p4, %p4144_p10 }
  0x58   : > { %p4147_p1 = pnand %p4146_p13, %p4140_p6 }
  0x5a   : > { %4150 = shalt.err (!%p4147_p1)
}
  0x5b   : > { %4021 = dma.hbm_to_vmem [thread:$0]  (!%p4296_p8), %s4366_s15, 65536, %s4398_s26, %s4312_s5, %s4222_s28, %s4222_s28, %s4223_s30  }
  0x5c   : > { %p6028_p12 = scmp.ne.s32.totalorder %s6027_s6, 0 }
  0x5d   : > { %s207_s7 = sand.u32 (!%p6028_p12), 1, %s4211_s13   ;;  %p6029_p11 = scmp.ne.s32.totalorder (!%p6028_p12), %s6022_s21, 0 }
  0x5e   : > { %205 = sbr.rel (%p6028_p12) target bundleno = 1385 (0x569), region = 32  ;;  %s3985_s29 = sshll.u32 (!%p6028_p12), %s207_s7, 12 }
  0x5f   : > { %s208_s4 = scalar_lea.sflag (!%p6028_p12), [#allocation4], %s207_s7  ;;  %s4428_s19 = scalar_lea.vmem (!%p6028_p12), [#allocation3], %s3985_s29 }
  0x65   : > { %4194 = dma.done.wait (%p6029_p11), %s208_s4, 65536  }
  0x66   : > { %4196 = vsyncadd (%p6029_p11), %s208_s4, 4294901760  ;;  %s216_s25 = sand.u32 1, %s4267_s16   ;;  %s4435_s5 = scalar_lea.vmem [#allocation6], %s3985_s29 }
  0x67   : > { %s217_s27 = scalar_lea.sflag [#allocation7], %s216_s25 }
  0x68   : > { %4198 = dma.done.wait (%p6029_p11), %s217_s27, 131072  }
  0x69   : > { %4200 = vsyncadd (%p6029_p11), %s217_s27, 4294836224  ;;  %s4441_s28 = scalar_lea.vmem [#allocation8], %s3985_s29  ;;  %p3988_p8 = scmp.ne.s32.totalorder %s4267_s16, 0 }
  0x6a   : > { %vm264_vm0 = vcmask (!%p3988_p8), 0   ;;  %v4226_v0 = vmov (!%p3988_p8), 0.0  }
  0x6b   : > { %263 = sbr.rel (%p3988_p8) target bundleno = 114 (0x72), region = 48  ;;  %265 = vst.msk [vmem:[#allocation2] sm:$0x1] (!%p3988_p8), %vm264_vm0, %v4226_v0 }
  0x72 PF: > { %v778_v1 = vld [vmem:[%s4435_s5] sm:$0xff]  ;;  %v779_v2 = vld [vmem:[%s4435_s5 + $0x8] sm:$0xff]  ;;  %v780_v5 = vld [vmem:[%s4435_s5 + $0x10] sm:$0xff]  ;;  %vm3861_vm1 = vcmask 0   ;;  %p3989_p2 = scmp.ne.s32.totalorder %s4267_s16, 1 }
  0x73   : > { %v1290_v3 = vld [vmem:[%s4441_s28] sm:$0xff]  ;;  %v1291_v4 = vld [vmem:[%s4441_s28 + $0x8] sm:$0xff]  ;;  %v1292_v6 = vld [vmem:[%s4441_s28 + $0x10] sm:$0xff] }
  0x74   : > { %v266_v7 = vld [vmem:[%s4428_s19] sm:$0xff]  ;;  %v1802_v8 = vsub.f32 %v778_v1, %v1290_v3  ;;  %v1803_v9 = vsub.f32 %v779_v2, %v1291_v4  ;;  %v267_v10 = vld [vmem:[%s4428_s19 + $0x8] sm:$0xff]  ;;  %v781_v11 = vld [vmem:[%s4435_s5 + $0x18] sm:$0xff]  ;;  %v1804_v13 = vsub.f32 %v780_v5, %v1292_v6 }
  0x75   : > { %v1293_v12 = vld [vmem:[%s4441_s28 + $0x18] sm:$0xff]  ;;  %v268_v14 = vld [vmem:[%s4428_s19 + $0x10] sm:$0xff]  ;;  %v782_v15 = vld [vmem:[%s4435_s5 + $0x20] sm:$0xff] }
  0x76   : > { %v1294_v16 = vld [vmem:[%s4441_s28 + $0x20] sm:$0xff]  ;;  %v1805_v17 = vsub.f32 %v781_v11, %v1293_v12  ;;  %v2315_v18 = vmul.f32 %v1802_v8, %v266_v7  ;;  %v2316_v19 = vmul.f32 %v1803_v9, %v267_v10  ;;  %v269_v20 = vld [vmem:[%s4428_s19 + $0x18] sm:$0xff]  ;;  %v783_v21 = vld [vmem:[%s4435_s5 + $0x28] sm:$0xff]  ;;  %v2317_v24 = vmul.f32 %v1804_v13, %v268_v14 }
  0x77   : > { %v1295_v22 = vld [vmem:[%s4441_s28 + $0x28] sm:$0xff]  ;;  %v1806_v23 = vsub.f32 %v782_v15, %v1294_v16  ;;  %v270_v25 = vld [vmem:[%s4428_s19 + $0x20] sm:$0xff]  ;;  %v784_v26 = vld [vmem:[%s4435_s5 + $0x30] sm:$0xff] }
  0x78   : > { %v1296_v27 = vld [vmem:[%s4441_s28 + $0x30] sm:$0xff]  ;;  %v1807_v28 = vsub.f32 %v783_v21, %v1295_v22  ;;  %v2318_v29 = vmul.f32 %v1805_v17, %v269_v20  ;;  %v2827_v30 = vmul.f32 %v2315_v18, %v1802_v8  ;;  %v2828_v31 = vmul.f32 %v2316_v19, %v1803_v9  ;;  %v271_v32 = vld [vmem:[%s4428_s19 + $0x28] sm:$0xff]  ;;  %v785_v33 = vld [vmem:[%s4435_s5 + $0x38] sm:$0xff] }
  0x79   : > { %v1297_v34 = vld [vmem:[%s4441_s28 + $0x38] sm:$0xff]  ;;  %v1808_v35 = vsub.f32 %v784_v26, %v1296_v27  ;;  %v2319_v36 = vmul.f32 %v1806_v23, %v270_v25  ;;  %v2829_v37 = vmul.f32 %v2317_v24, %v1804_v13  ;;  %v272_v38 = vld [vmem:[%s4428_s19 + $0x30] sm:$0xff]  ;;  %v786_v39 = vld [vmem:[%s4435_s5 + $0x40] sm:$0xff] }
  0x7a   : > { %v1298_v40 = vld [vmem:[%s4441_s28 + $0x40] sm:$0xff]  ;;  %v1809_v41 = vsub.f32 %v785_v33, %v1297_v34  ;;  %v2320_v42 = vmul.f32 %v1807_v28, %v271_v32  ;;  %v2830_v43 = vmul.f32 %v2318_v29, %v1805_v17  ;;  %v3339_v44 = vadd.f32 %v2828_v31, %v2827_v30  ;;  %v273_v45 = vld [vmem:[%s4428_s19 + $0x38] sm:$0xff]  ;;  %v787_v46 = vld [vmem:[%s4435_s5 + $0x48] sm:$0xff] }
  0x7b   : > { %v1299_v47 = vld [vmem:[%s4441_s28 + $0x48] sm:$0xff]  ;;  %v1810_v48 = vsub.f32 %v786_v39, %v1298_v40  ;;  %v2321_v49 = vmul.f32 %v1808_v35, %v272_v38  ;;  %v2831_v50 = vmul.f32 %v2319_v36, %v1806_v23  ;;  %v274_v52 = vld [vmem:[%s4428_s19 + $0x40] sm:$0xff]  ;;  %v788_v53 = vld [vmem:[%s4435_s5 + $0x50] sm:$0xff] }
  0x7c   : > { %v3340_v51 = vadd.f32 %v3339_v44, %v2829_v37  ;;  %v1300_v54 = vld [vmem:[%s4441_s28 + $0x50] sm:$0xff]  ;;  %v1811_v55 = vsub.f32 %v787_v46, %v1299_v47  ;;  %v2322_v56 = vmul.f32 %v1809_v41, %v273_v45  ;;  %v2832_v57 = vmul.f32 %v2320_v42, %v1807_v28  ;;  %v275_v59 = vld [vmem:[%s4428_s19 + $0x48] sm:$0xff]  ;;  %v789_v60 = vld [vmem:[%s4435_s5 + $0x58] sm:$0xff] }
  0x7d   : > { %v1301_v61 = vld [vmem:[%s4441_s28 + $0x58] sm:$0xff]  ;;  %v1812_v62 = vsub.f32 %v788_v53, %v1300_v54  ;;  %v2323_v63 = vmul.f32 %v1810_v48, %v274_v52  ;;  %v2833_v0 = vmul.f32 %v2321_v49, %v1808_v35  ;;  %v276_v2 = vld [vmem:[%s4428_s19 + $0x50] sm:$0xff]  ;;  %v790_v3 = vld [vmem:[%s4435_s5 + $0x60] sm:$0xff] }
  0x7e   : > { %v3341_v58 = vadd.f32 %v3340_v51, %v2830_v43  ;;  %v1302_v4 = vld [vmem:[%s4441_s28 + $0x60] sm:$0xff]  ;;  %v1813_v5 = vsub.f32 %v789_v60, %v1301_v61  ;;  %v2324_v6 = vmul.f32 %v1811_v55, %v275_v59  ;;  %v2834_v7 = vmul.f32 %v2322_v56, %v1809_v41  ;;  %v277_v9 = vld [vmem:[%s4428_s19 + $0x58] sm:$0xff]  ;;  %v791_v10 = vld [vmem:[%s4435_s5 + $0x68] sm:$0xff] }
  0x7f   : > { %v1303_v11 = vld [vmem:[%s4441_s28 + $0x68] sm:$0xff]  ;;  %v1814_v12 = vsub.f32 %v790_v3, %v1302_v4  ;;  %v2325_v13 = vmul.f32 %v1812_v62, %v276_v2  ;;  %v2835_v14 = vmul.f32 %v2323_v63, %v1810_v48  ;;  %v278_v16 = vld [vmem:[%s4428_s19 + $0x60] sm:$0xff]  ;;  %v792_v17 = vld [vmem:[%s4435_s5 + $0x70] sm:$0xff] }
  0x80   : > { %v3342_v1 = vadd.f32 %v3341_v58, %v2831_v50  ;;  %v1304_v18 = vld [vmem:[%s4441_s28 + $0x70] sm:$0xff]  ;;  %v1815_v19 = vsub.f32 %v791_v10, %v1303_v11  ;;  %v2326_v20 = vmul.f32 %v1813_v5, %v277_v9  ;;  %v2836_v21 = vmul.f32 %v2324_v6, %v1811_v55  ;;  %v279_v23 = vld [vmem:[%s4428_s19 + $0x68] sm:$0xff]  ;;  %v793_v24 = vld [vmem:[%s4435_s5 + $0x78] sm:$0xff] }
  0x81   : > { %v1305_v25 = vld [vmem:[%s4441_s28 + $0x78] sm:$0xff]  ;;  %v1816_v26 = vsub.f32 %v792_v17, %v1304_v18  ;;  %v2327_v27 = vmul.f32 %v1814_v12, %v278_v16  ;;  %v2837_v28 = vmul.f32 %v2325_v13, %v1812_v62  ;;  %v280_v30 = vld [vmem:[%s4428_s19 + $0x70] sm:$0xff]  ;;  %v794_v31 = vld [vmem:[%s4435_s5 + $0x80] sm:$0xff] }
  0x82   : > { %v3343_v8 = vadd.f32 %v3342_v1, %v2832_v57  ;;  %v1306_v32 = vld [vmem:[%s4441_s28 + $0x80] sm:$0xff]  ;;  %v1817_v33 = vsub.f32 %v793_v24, %v1305_v25  ;;  %v2328_v34 = vmul.f32 %v1815_v19, %v279_v23  ;;  %v2838_v35 = vmul.f32 %v2326_v20, %v1813_v5  ;;  %v281_v37 = vld [vmem:[%s4428_s19 + $0x78] sm:$0xff]  ;;  %v795_v38 = vld [vmem:[%s4435_s5 + $0x88] sm:$0xff] }
  0x83   : > { %v1307_v39 = vld [vmem:[%s4441_s28 + $0x88] sm:$0xff]  ;;  %v1818_v40 = vsub.f32 %v794_v31, %v1306_v32  ;;  %v2329_v41 = vmul.f32 %v1816_v26, %v280_v30  ;;  %v2839_v42 = vmul.f32 %v2327_v27, %v1814_v12  ;;  %v282_v44 = vld [vmem:[%s4428_s19 + $0x80] sm:$0xff]  ;;  %v796_v45 = vld [vmem:[%s4435_s5 + $0x90] sm:$0xff] }
  0x84   : > { %v3344_v15 = vadd.f32 %v3343_v8, %v2833_v0  ;;  %v1308_v46 = vld [vmem:[%s4441_s28 + $0x90] sm:$0xff]  ;;  %v1819_v47 = vsub.f32 %v795_v38, %v1307_v39  ;;  %v2330_v48 = vmul.f32 %v1817_v33, %v281_v37  ;;  %v2840_v49 = vmul.f32 %v2328_v34, %v1815_v19  ;;  %v283_v51 = vld [vmem:[%s4428_s19 + $0x88] sm:$0xff]  ;;  %v797_v52 = vld [vmem:[%s4435_s5 + $0x98] sm:$0xff] }
  0x85   : > { %v1309_v53 = vld [vmem:[%s4441_s28 + $0x98] sm:$0xff]  ;;  %v1820_v54 = vsub.f32 %v796_v45, %v1308_v46  ;;  %v2331_v55 = vmul.f32 %v1818_v40, %v282_v44  ;;  %v2841_v56 = vmul.f32 %v2329_v41, %v1816_v26  ;;  %v284_v58 = vld [vmem:[%s4428_s19 + $0x90] sm:$0xff]  ;;  %v798_v59 = vld [vmem:[%s4435_s5 + $0xa0] sm:$0xff] }
  0x86   : > { %v3345_v22 = vadd.f32 %v3344_v15, %v2834_v7  ;;  %v1310_v60 = vld [vmem:[%s4441_s28 + $0xa0] sm:$0xff]  ;;  %v1821_v61 = vsub.f32 %v797_v52, %v1309_v53  ;;  %v2332_v62 = vmul.f32 %v1819_v47, %v283_v51  ;;  %v2842_v63 = vmul.f32 %v2330_v48, %v1817_v33  ;;  %v285_v1 = vld [vmem:[%s4428_s19 + $0x98] sm:$0xff]  ;;  %v799_v2 = vld [vmem:[%s4435_s5 + $0xa8] sm:$0xff] }
  0x87   : > { %v1311_v3 = vld [vmem:[%s4441_s28 + $0xa8] sm:$0xff]  ;;  %v1822_v4 = vsub.f32 %v798_v59, %v1310_v60  ;;  %v2333_v5 = vmul.f32 %v1820_v54, %v284_v58  ;;  %v2843_v6 = vmul.f32 %v2331_v55, %v1818_v40  ;;  %v286_v8 = vld [vmem:[%s4428_s19 + $0xa0] sm:$0xff]  ;;  %v800_v9 = vld [vmem:[%s4435_s5 + $0xb0] sm:$0xff] }
  0x88   : > { %v3346_v29 = vadd.f32 %v3345_v22, %v2835_v14  ;;  %v1312_v10 = vld [vmem:[%s4441_s28 + $0xb0] sm:$0xff]  ;;  %v1823_v11 = vsub.f32 %v799_v2, %v1311_v3  ;;  %v2334_v12 = vmul.f32 %v1821_v61, %v285_v1  ;;  %v2844_v13 = vmul.f32 %v2332_v62, %v1819_v47  ;;  %v287_v15 = vld [vmem:[%s4428_s19 + $0xa8] sm:$0xff]  ;;  %v801_v16 = vld [vmem:[%s4435_s5 + $0xb8] sm:$0xff] }
  0x89   : > { %v1313_v17 = vld [vmem:[%s4441_s28 + $0xb8] sm:$0xff]  ;;  %v1824_v18 = vsub.f32 %v800_v9, %v1312_v10  ;;  %v2335_v19 = vmul.f32 %v1822_v4, %v286_v8  ;;  %v2845_v20 = vmul.f32 %v2333_v5, %v1820_v54  ;;  %v288_v22 = vld [vmem:[%s4428_s19 + $0xb0] sm:$0xff]  ;;  %v802_v23 = vld [vmem:[%s4435_s5 + $0xc0] sm:$0xff] }
  0x8a   : > { %v3347_v36 = vadd.f32 %v3346_v29, %v2836_v21  ;;  %v1314_v24 = vld [vmem:[%s4441_s28 + $0xc0] sm:$0xff]  ;;  %v1825_v25 = vsub.f32 %v801_v16, %v1313_v17  ;;  %v2336_v26 = vmul.f32 %v1823_v11, %v287_v15  ;;  %v2846_v27 = vmul.f32 %v2334_v12, %v1821_v61  ;;  %v289_v29 = vld [vmem:[%s4428_s19 + $0xb8] sm:$0xff]  ;;  %v803_v30 = vld [vmem:[%s4435_s5 + $0xc8] sm:$0xff] }
  0x8b   : > { %v1315_v31 = vld [vmem:[%s4441_s28 + $0xc8] sm:$0xff]  ;;  %v1826_v32 = vsub.f32 %v802_v23, %v1314_v24  ;;  %v2337_v33 = vmul.f32 %v1824_v18, %v288_v22  ;;  %v2847_v34 = vmul.f32 %v2335_v19, %v1822_v4  ;;  %v804_v37 = vld [vmem:[%s4435_s5 + $0xd0] sm:$0xff]  ;;  %v805_v44 = vld [vmem:[%s4435_s5 + $0xd8] sm:$0xff] }
  0x8c   : > { %v3348_v43 = vadd.f32 %v3347_v36, %v2837_v28  ;;  %v290_v36 = vld [vmem:[%s4428_s19 + $0xc0] sm:$0xff]  ;;  %v1316_v38 = vld [vmem:[%s4441_s28 + $0xd0] sm:$0xff]  ;;  %v1827_v39 = vsub.f32 %v803_v30, %v1315_v31  ;;  %v2338_v40 = vmul.f32 %v1825_v25, %v289_v29  ;;  %v2848_v41 = vmul.f32 %v2336_v26, %v1823_v11  ;;  %v1317_v45 = vld [vmem:[%s4441_s28 + $0xd8] sm:$0xff] }
  0x8d   : > { %v1828_v46 = vsub.f32 %v804_v37, %v1316_v38  ;;  %v2339_v47 = vmul.f32 %v1826_v32, %v290_v36  ;;  %v2849_v48 = vmul.f32 %v2337_v33, %v1824_v18  ;;  %v806_v51 = vld [vmem:[%s4435_s5 + $0xe0] sm:$0xff]  ;;  %v1829_v53 = vsub.f32 %v805_v44, %v1317_v45  ;;  %v807_v58 = vld [vmem:[%s4435_s5 + $0xe8] sm:$0xff]  ;;  %v808_v1 = vld [vmem:[%s4435_s5 + $0xf0] sm:$0xff] }
  0x8e   : > { %v3349_v50 = vadd.f32 %v3348_v43, %v2838_v35  ;;  %v291_v43 = vld [vmem:[%s4428_s19 + $0xc8] sm:$0xff]  ;;  %v1318_v52 = vld [vmem:[%s4441_s28 + $0xe0] sm:$0xff]  ;;  %v2850_v55 = vmul.f32 %v2338_v40, %v1825_v25  ;;  %v1320_v2 = vld [vmem:[%s4441_s28 + $0xf0] sm:$0xff] }
  0x8f   : > { %v2340_v54 = vmul.f32 %v1827_v39, %v291_v43  ;;  %v1319_v59 = vld [vmem:[%s4441_s28 + $0xe8] sm:$0xff]  ;;  %v1830_v60 = vsub.f32 %v806_v51, %v1318_v52  ;;  %v2851_v62 = vmul.f32 %v2339_v47, %v1826_v32  ;;  %v809_v8 = vld [vmem:[%s4435_s5 + $0xf8] sm:$0xff]  ;;  %v1832_v10 = vsub.f32 %v808_v1, %v1320_v2  ;;  %v810_v15 = vld [vmem:[%s4435_s5 + $0x100] sm:$0xff] }
  0x90   : > { %v3350_v57 = vadd.f32 %v3349_v50, %v2839_v42  ;;  %v292_v50 = vld [vmem:[%s4428_s19 + $0xd0] sm:$0xff]  ;;  %v1831_v3 = vsub.f32 %v807_v58, %v1319_v59  ;;  %v1321_v9 = vld [vmem:[%s4441_s28 + $0xf8] sm:$0xff]  ;;  %v1322_v16 = vld [vmem:[%s4441_s28 + $0x100] sm:$0xff] }
  0x91   : > { %v2341_v61 = vmul.f32 %v1828_v46, %v292_v50  ;;  %v2852_v5 = vmul.f32 %v2340_v54, %v1827_v39  ;;  %v1833_v17 = vsub.f32 %v809_v8, %v1321_v9  ;;  %v811_v22 = vld [vmem:[%s4435_s5 + $0x108] sm:$0xff]  ;;  %v1834_v24 = vsub.f32 %v810_v15, %v1322_v16  ;;  %v812_v29 = vld [vmem:[%s4435_s5 + $0x110] sm:$0xff]  ;;  %v813_v36 = vld [vmem:[%s4435_s5 + $0x118] sm:$0xff] }
  0x92   : > { %v3351_v0 = vadd.f32 %v3350_v57, %v2840_v49  ;;  %v293_v57 = vld [vmem:[%s4428_s19 + $0xd8] sm:$0xff]  ;;  %v1323_v23 = vld [vmem:[%s4441_s28 + $0x108] sm:$0xff]  ;;  %v1324_v30 = vld [vmem:[%s4441_s28 + $0x110] sm:$0xff] }
  0x93   : > { %v2342_v4 = vmul.f32 %v1829_v53, %v293_v57  ;;  %v2853_v12 = vmul.f32 %v2341_v61, %v1828_v46  ;;  %v1835_v31 = vsub.f32 %v811_v22, %v1323_v23  ;;  %v1325_v37 = vld [vmem:[%s4441_s28 + $0x118] sm:$0xff]  ;;  %v1836_v38 = vsub.f32 %v812_v29, %v1324_v30  ;;  %v814_v43 = vld [vmem:[%s4435_s5 + $0x120] sm:$0xff]  ;;  %v815_v50 = vld [vmem:[%s4435_s5 + $0x128] sm:$0xff] }
  0x94   : > { %v3352_v7 = vadd.f32 %v3351_v0, %v2841_v56  ;;  %v294_v0 = vld [vmem:[%s4428_s19 + $0xe0] sm:$0xff]  ;;  %v1837_v45 = vsub.f32 %v813_v36, %v1325_v37  ;;  %v1327_v51 = vld [vmem:[%s4441_s28 + $0x128] sm:$0xff]  ;;  %v816_v57 = vld [vmem:[%s4435_s5 + $0x130] sm:$0xff] }
  0x95   : > { %v2343_v11 = vmul.f32 %v1830_v60, %v294_v0  ;;  %v2854_v19 = vmul.f32 %v2342_v4, %v1829_v53  ;;  %v1326_v44 = vld [vmem:[%s4441_s28 + $0x120] sm:$0xff]  ;;  %v1328_v58 = vld [vmem:[%s4441_s28 + $0x130] sm:$0xff]  ;;  %v1839_v59 = vsub.f32 %v815_v50, %v1327_v51  ;;  %v817_v0 = vld [vmem:[%s4435_s5 + $0x138] sm:$0xff] }
  0x96   : > { %v3353_v14 = vadd.f32 %v3352_v7, %v2842_v63  ;;  %v295_v7 = vld [vmem:[%s4428_s19 + $0xe8] sm:$0xff]  ;;  %v1838_v52 = vsub.f32 %v814_v43, %v1326_v44  ;;  %v1329_v1 = vld [vmem:[%s4441_s28 + $0x138] sm:$0xff]  ;;  %v1840_v2 = vsub.f32 %v816_v57, %v1328_v58  ;;  %v1330_v8 = vld [vmem:[%s4441_s28 + $0x140] sm:$0xff] }
  0x97   : > { %v2344_v18 = vmul.f32 %v1831_v3, %v295_v7  ;;  %v2855_v26 = vmul.f32 %v2343_v11, %v1830_v60  ;;  %v818_v7 = vld [vmem:[%s4435_s5 + $0x140] sm:$0xff]  ;;  %v1841_v9 = vsub.f32 %v817_v0, %v1329_v1  ;;  %v1331_v15 = vld [vmem:[%s4441_s28 + $0x148] sm:$0xff]  ;;  %v1332_v22 = vld [vmem:[%s4441_s28 + $0x150] sm:$0xff] }
  0x98   : > { %v3354_v21 = vadd.f32 %v3353_v14, %v2843_v6  ;;  %v296_v14 = vld [vmem:[%s4428_s19 + $0xf0] sm:$0xff]  ;;  %v1842_v16 = vsub.f32 %v818_v7, %v1330_v8  ;;  %v1333_v29 = vld [vmem:[%s4441_s28 + $0x158] sm:$0xff]  ;;  %v1334_v36 = vld [vmem:[%s4441_s28 + $0x160] sm:$0xff] }
  0x99   : > { %v2345_v25 = vmul.f32 %v1832_v10, %v296_v14  ;;  %v2856_v33 = vmul.f32 %v2344_v18, %v1831_v3  ;;  %v819_v14 = vld [vmem:[%s4435_s5 + $0x148] sm:$0xff]  ;;  %v1336_v50 = vld [vmem:[%s4441_s28 + $0x170] sm:$0xff]  ;;  %v1337_v57 = vld [vmem:[%s4441_s28 + $0x178] sm:$0xff] }
  0x9a   : > { %v3355_v28 = vadd.f32 %v3354_v21, %v2844_v13  ;;  %v297_v21 = vld [vmem:[%s4428_s19 + $0xf8] sm:$0xff]  ;;  %v1843_v23 = vsub.f32 %v819_v14, %v1331_v15  ;;  %v1335_v43 = vld [vmem:[%s4441_s28 + $0x168] sm:$0xff]  ;;  %v1338_v0 = vld [vmem:[%s4441_s28 + $0x180] sm:$0xff] }
  0x9b   : > { %v2346_v32 = vmul.f32 %v1833_v17, %v297_v21  ;;  %v2857_v40 = vmul.f32 %v2345_v25, %v1832_v10  ;;  %v820_v21 = vld [vmem:[%s4435_s5 + $0x150] sm:$0xff]  ;;  %v1339_v7 = vld [vmem:[%s4441_s28 + $0x188] sm:$0xff] }
  0x9c   : > { %v3356_v35 = vadd.f32 %v3355_v28, %v2845_v20  ;;  %v298_v28 = vld [vmem:[%s4428_s19 + $0x100] sm:$0xff]  ;;  %v1844_v30 = vsub.f32 %v820_v21, %v1332_v22  ;;  %v1340_v14 = vld [vmem:[%s4441_s28 + $0x190] sm:$0xff]  ;;  %v1341_v21 = vld [vmem:[%s4441_s28 + $0x198] sm:$0xff] }
  0x9d   : > { %v2347_v39 = vmul.f32 %v1834_v24, %v298_v28  ;;  %v2858_v47 = vmul.f32 %v2346_v32, %v1833_v17  ;;  %v821_v28 = vld [vmem:[%s4435_s5 + $0x158] sm:$0xff] }
  0x9e   : > { %v3357_v42 = vadd.f32 %v3356_v35, %v2846_v27  ;;  %v299_v35 = vld [vmem:[%s4428_s19 + $0x108] sm:$0xff]  ;;  %v1845_v37 = vsub.f32 %v821_v28, %v1333_v29  ;;  %v1342_v28 = vld [vmem:[%s4441_s28 + $0x1a0] sm:$0xff] }
  0x9f   : > { %v2348_v46 = vmul.f32 %v1835_v31, %v299_v35  ;;  %v2859_v54 = vmul.f32 %v2347_v39, %v1834_v24  ;;  %v822_v35 = vld [vmem:[%s4435_s5 + $0x160] sm:$0xff] }
  0xa0   : > { %v3358_v49 = vadd.f32 %v3357_v42, %v2847_v34  ;;  %v300_v42 = vld [vmem:[%s4428_s19 + $0x110] sm:$0xff]  ;;  %v1846_v44 = vsub.f32 %v822_v35, %v1334_v36  ;;  %v1343_v35 = vld [vmem:[%s4441_s28 + $0x1a8] sm:$0xff] }
  0xa1   : > { %v2349_v53 = vmul.f32 %v1836_v38, %v300_v42  ;;  %v2860_v61 = vmul.f32 %v2348_v46, %v1835_v31  ;;  %v823_v42 = vld [vmem:[%s4435_s5 + $0x168] sm:$0xff] }
  0xa2   : > { %v3359_v56 = vadd.f32 %v3358_v49, %v2848_v41  ;;  %v301_v49 = vld [vmem:[%s4428_s19 + $0x118] sm:$0xff]  ;;  %v1847_v51 = vsub.f32 %v823_v42, %v1335_v43  ;;  %v1344_v42 = vld [vmem:[%s4441_s28 + $0x1b0] sm:$0xff] }
  0xa3   : > { %v2350_v60 = vmul.f32 %v1837_v45, %v301_v49  ;;  %v2861_v4 = vmul.f32 %v2349_v53, %v1836_v38  ;;  %v824_v49 = vld [vmem:[%s4435_s5 + $0x170] sm:$0xff] }
  0xa4   : > { %v3360_v63 = vadd.f32 %v3359_v56, %v2849_v48  ;;  %v302_v56 = vld [vmem:[%s4428_s19 + $0x120] sm:$0xff]  ;;  %v1848_v58 = vsub.f32 %v824_v49, %v1336_v50  ;;  %v1345_v49 = vld [vmem:[%s4441_s28 + $0x1b8] sm:$0xff] }
  0xa5   : > { %v2351_v3 = vmul.f32 %v1838_v52, %v302_v56  ;;  %v2862_v11 = vmul.f32 %v2350_v60, %v1837_v45  ;;  %v825_v56 = vld [vmem:[%s4435_s5 + $0x178] sm:$0xff] }
  0xa6   : > { %v3361_v6 = vadd.f32 %v3360_v63, %v2850_v55  ;;  %v303_v63 = vld [vmem:[%s4428_s19 + $0x128] sm:$0xff]  ;;  %v1849_v1 = vsub.f32 %v825_v56, %v1337_v57  ;;  %v1346_v56 = vld [vmem:[%s4441_s28 + $0x1c0] sm:$0xff] }
  0xa7   : > { %v2352_v10 = vmul.f32 %v1839_v59, %v303_v63  ;;  %v2863_v18 = vmul.f32 %v2351_v3, %v1838_v52  ;;  %v826_v63 = vld [vmem:[%s4435_s5 + $0x180] sm:$0xff] }
  0xa8   : > { %v3362_v13 = vadd.f32 %v3361_v6, %v2851_v62  ;;  %v304_v6 = vld [vmem:[%s4428_s19 + $0x130] sm:$0xff]  ;;  %v1850_v8 = vsub.f32 %v826_v63, %v1338_v0  ;;  %v1347_v63 = vld [vmem:[%s4441_s28 + $0x1c8] sm:$0xff] }
  0xa9   : > { %v2353_v17 = vmul.f32 %v1840_v2, %v304_v6  ;;  %v2864_v25 = vmul.f32 %v2352_v10, %v1839_v59  ;;  %v827_v6 = vld [vmem:[%s4435_s5 + $0x188] sm:$0xff] }
  0xaa   : > { %v3363_v20 = vadd.f32 %v3362_v13, %v2852_v5  ;;  %v305_v13 = vld [vmem:[%s4428_s19 + $0x138] sm:$0xff]  ;;  %v1851_v15 = vsub.f32 %v827_v6, %v1339_v7  ;;  %v1348_v6 = vld [vmem:[%s4441_s28 + $0x1d0] sm:$0xff] }
  0xab   : > { %v2354_v24 = vmul.f32 %v1841_v9, %v305_v13  ;;  %v2865_v32 = vmul.f32 %v2353_v17, %v1840_v2  ;;  %v828_v13 = vld [vmem:[%s4435_s5 + $0x190] sm:$0xff] }
  0xac   : > { %v3364_v27 = vadd.f32 %v3363_v20, %v2853_v12  ;;  %v306_v20 = vld [vmem:[%s4428_s19 + $0x140] sm:$0xff]  ;;  %v1852_v22 = vsub.f32 %v828_v13, %v1340_v14  ;;  %v1349_v13 = vld [vmem:[%s4441_s28 + $0x1d8] sm:$0xff] }
  0xad   : > { %v2355_v31 = vmul.f32 %v1842_v16, %v306_v20  ;;  %v2866_v39 = vmul.f32 %v2354_v24, %v1841_v9  ;;  %v829_v20 = vld [vmem:[%s4435_s5 + $0x198] sm:$0xff] }
  0xae   : > { %v3365_v34 = vadd.f32 %v3364_v27, %v2854_v19  ;;  %v307_v27 = vld [vmem:[%s4428_s19 + $0x148] sm:$0xff]  ;;  %v1853_v29 = vsub.f32 %v829_v20, %v1341_v21  ;;  %v1350_v20 = vld [vmem:[%s4441_s28 + $0x1e0] sm:$0xff] }
  0xaf   : > { %v2356_v38 = vmul.f32 %v1843_v23, %v307_v27  ;;  %v2867_v46 = vmul.f32 %v2355_v31, %v1842_v16  ;;  %v830_v27 = vld [vmem:[%s4435_s5 + $0x1a0] sm:$0xff] }
  0xb0   : > { %v3366_v41 = vadd.f32 %v3365_v34, %v2855_v26  ;;  %v308_v34 = vld [vmem:[%s4428_s19 + $0x150] sm:$0xff]  ;;  %v1854_v36 = vsub.f32 %v830_v27, %v1342_v28  ;;  %v1351_v27 = vld [vmem:[%s4441_s28 + $0x1e8] sm:$0xff] }
  0xb1   : > { %v2357_v45 = vmul.f32 %v1844_v30, %v308_v34  ;;  %v2868_v53 = vmul.f32 %v2356_v38, %v1843_v23  ;;  %v831_v34 = vld [vmem:[%s4435_s5 + $0x1a8] sm:$0xff] }
  0xb2   : > { %v3367_v48 = vadd.f32 %v3366_v41, %v2856_v33  ;;  %v309_v41 = vld [vmem:[%s4428_s19 + $0x158] sm:$0xff]  ;;  %v1855_v43 = vsub.f32 %v831_v34, %v1343_v35  ;;  %v1352_v34 = vld [vmem:[%s4441_s28 + $0x1f0] sm:$0xff] }
  0xb3   : > { %v2358_v52 = vmul.f32 %v1845_v37, %v309_v41  ;;  %v2869_v60 = vmul.f32 %v2357_v45, %v1844_v30  ;;  %v832_v41 = vld [vmem:[%s4435_s5 + $0x1b0] sm:$0xff] }
  0xb4   : > { %v3368_v55 = vadd.f32 %v3367_v48, %v2857_v40  ;;  %v310_v48 = vld [vmem:[%s4428_s19 + $0x160] sm:$0xff]  ;;  %v1856_v50 = vsub.f32 %v832_v41, %v1344_v42  ;;  %v1353_v41 = vld [vmem:[%s4441_s28 + $0x1f8] sm:$0xff] }
  0xb5   : > { %v2359_v59 = vmul.f32 %v1846_v44, %v310_v48  ;;  %v2870_v3 = vmul.f32 %v2358_v52, %v1845_v37  ;;  %v833_v48 = vld [vmem:[%s4435_s5 + $0x1b8] sm:$0xff] }
  0xb6   : > { %v3369_v62 = vadd.f32 %v3368_v55, %v2858_v47  ;;  %v311_v55 = vld [vmem:[%s4428_s19 + $0x168] sm:$0xff]  ;;  %v1857_v57 = vsub.f32 %v833_v48, %v1345_v49  ;;  %v1354_v48 = vld [vmem:[%s4441_s28 + $0x200] sm:$0xff] }
  0xb7   : > { %v2360_v2 = vmul.f32 %v1847_v51, %v311_v55  ;;  %v2871_v10 = vmul.f32 %v2359_v59, %v1846_v44  ;;  %v834_v55 = vld [vmem:[%s4435_s5 + $0x1c0] sm:$0xff] }
  0xb8   : > { %v3370_v5 = vadd.f32 %v3369_v62, %v2859_v54  ;;  %v312_v62 = vld [vmem:[%s4428_s19 + $0x170] sm:$0xff]  ;;  %v1858_v0 = vsub.f32 %v834_v55, %v1346_v56  ;;  %v1355_v55 = vld [vmem:[%s4441_s28 + $0x208] sm:$0xff] }
  0xb9   : > { %v2361_v9 = vmul.f32 %v1848_v58, %v312_v62  ;;  %v2872_v17 = vmul.f32 %v2360_v2, %v1847_v51  ;;  %v835_v62 = vld [vmem:[%s4435_s5 + $0x1c8] sm:$0xff] }
  0xba   : > { %v3371_v12 = vadd.f32 %v3370_v5, %v2860_v61  ;;  %v313_v5 = vld [vmem:[%s4428_s19 + $0x178] sm:$0xff]  ;;  %v1859_v7 = vsub.f32 %v835_v62, %v1347_v63  ;;  %v1356_v62 = vld [vmem:[%s4441_s28 + $0x210] sm:$0xff] }
  0xbb   : > { %v2362_v16 = vmul.f32 %v1849_v1, %v313_v5  ;;  %v2873_v24 = vmul.f32 %v2361_v9, %v1848_v58  ;;  %v836_v5 = vld [vmem:[%s4435_s5 + $0x1d0] sm:$0xff] }
  0xbc   : > { %v3372_v19 = vadd.f32 %v3371_v12, %v2861_v4  ;;  %v314_v12 = vld [vmem:[%s4428_s19 + $0x180] sm:$0xff]  ;;  %v1860_v14 = vsub.f32 %v836_v5, %v1348_v6  ;;  %v1357_v5 = vld [vmem:[%s4441_s28 + $0x218] sm:$0xff] }
  0xbd   : > { %v2363_v23 = vmul.f32 %v1850_v8, %v314_v12  ;;  %v2874_v31 = vmul.f32 %v2362_v16, %v1849_v1  ;;  %v837_v12 = vld [vmem:[%s4435_s5 + $0x1d8] sm:$0xff] }
  0xbe   : > { %v3373_v26 = vadd.f32 %v3372_v19, %v2862_v11  ;;  %v315_v19 = vld [vmem:[%s4428_s19 + $0x188] sm:$0xff]  ;;  %v1861_v21 = vsub.f32 %v837_v12, %v1349_v13  ;;  %v1358_v12 = vld [vmem:[%s4441_s28 + $0x220] sm:$0xff] }
  0xbf   : > { %v2364_v30 = vmul.f32 %v1851_v15, %v315_v19  ;;  %v2875_v38 = vmul.f32 %v2363_v23, %v1850_v8  ;;  %v838_v19 = vld [vmem:[%s4435_s5 + $0x1e0] sm:$0xff] }
  0xc0   : > { %v3374_v33 = vadd.f32 %v3373_v26, %v2863_v18  ;;  %v316_v26 = vld [vmem:[%s4428_s19 + $0x190] sm:$0xff]  ;;  %v1862_v28 = vsub.f32 %v838_v19, %v1350_v20  ;;  %v1359_v19 = vld [vmem:[%s4441_s28 + $0x228] sm:$0xff] }
  0xc1   : > { %v2365_v37 = vmul.f32 %v1852_v22, %v316_v26  ;;  %v2876_v45 = vmul.f32 %v2364_v30, %v1851_v15  ;;  %v839_v26 = vld [vmem:[%s4435_s5 + $0x1e8] sm:$0xff] }
  0xc2   : > { %v3375_v40 = vadd.f32 %v3374_v33, %v2864_v25  ;;  %v317_v33 = vld [vmem:[%s4428_s19 + $0x198] sm:$0xff]  ;;  %v1863_v35 = vsub.f32 %v839_v26, %v1351_v27  ;;  %v1360_v26 = vld [vmem:[%s4441_s28 + $0x230] sm:$0xff] }
  0xc3   : > { %v2366_v44 = vmul.f32 %v1853_v29, %v317_v33  ;;  %v2877_v52 = vmul.f32 %v2365_v37, %v1852_v22  ;;  %v840_v33 = vld [vmem:[%s4435_s5 + $0x1f0] sm:$0xff] }
  0xc4   : > { %v3376_v47 = vadd.f32 %v3375_v40, %v2865_v32  ;;  %v318_v40 = vld [vmem:[%s4428_s19 + $0x1a0] sm:$0xff]  ;;  %v1864_v42 = vsub.f32 %v840_v33, %v1352_v34  ;;  %v1361_v33 = vld [vmem:[%s4441_s28 + $0x238] sm:$0xff] }
  0xc5   : > { %v2367_v51 = vmul.f32 %v1854_v36, %v318_v40  ;;  %v2878_v59 = vmul.f32 %v2366_v44, %v1853_v29  ;;  %v841_v40 = vld [vmem:[%s4435_s5 + $0x1f8] sm:$0xff] }
  0xc6   : > { %v3377_v54 = vadd.f32 %v3376_v47, %v2866_v39  ;;  %v319_v47 = vld [vmem:[%s4428_s19 + $0x1a8] sm:$0xff]  ;;  %v1865_v49 = vsub.f32 %v841_v40, %v1353_v41  ;;  %v1362_v40 = vld [vmem:[%s4441_s28 + $0x240] sm:$0xff] }
  0xc7   : > { %v2368_v58 = vmul.f32 %v1855_v43, %v319_v47  ;;  %v2879_v2 = vmul.f32 %v2367_v51, %v1854_v36  ;;  %v842_v47 = vld [vmem:[%s4435_s5 + $0x200] sm:$0xff] }
  0xc8   : > { %v3378_v61 = vadd.f32 %v3377_v54, %v2867_v46  ;;  %v320_v54 = vld [vmem:[%s4428_s19 + $0x1b0] sm:$0xff]  ;;  %v1866_v56 = vsub.f32 %v842_v47, %v1354_v48  ;;  %v1363_v47 = vld [vmem:[%s4441_s28 + $0x248] sm:$0xff] }
  0xc9   : > { %v2369_v1 = vmul.f32 %v1856_v50, %v320_v54  ;;  %v2880_v9 = vmul.f32 %v2368_v58, %v1855_v43  ;;  %v843_v54 = vld [vmem:[%s4435_s5 + $0x208] sm:$0xff] }
  0xca   : > { %v3379_v4 = vadd.f32 %v3378_v61, %v2868_v53  ;;  %v321_v61 = vld [vmem:[%s4428_s19 + $0x1b8] sm:$0xff]  ;;  %v1867_v63 = vsub.f32 %v843_v54, %v1355_v55  ;;  %v1364_v54 = vld [vmem:[%s4441_s28 + $0x250] sm:$0xff] }
  0xcb   : > { %v2370_v8 = vmul.f32 %v1857_v57, %v321_v61  ;;  %v2881_v16 = vmul.f32 %v2369_v1, %v1856_v50  ;;  %v844_v61 = vld [vmem:[%s4435_s5 + $0x210] sm:$0xff] }
  0xcc   : > { %v3380_v11 = vadd.f32 %v3379_v4, %v2869_v60  ;;  %v322_v4 = vld [vmem:[%s4428_s19 + $0x1c0] sm:$0xff]  ;;  %v1868_v6 = vsub.f32 %v844_v61, %v1356_v62  ;;  %v1365_v61 = vld [vmem:[%s4441_s28 + $0x258] sm:$0xff] }
  0xcd   : > { %v2371_v15 = vmul.f32 %v1858_v0, %v322_v4  ;;  %v2882_v23 = vmul.f32 %v2370_v8, %v1857_v57  ;;  %v845_v4 = vld [vmem:[%s4435_s5 + $0x218] sm:$0xff] }
  0xce   : > { %v3381_v18 = vadd.f32 %v3380_v11, %v2870_v3  ;;  %v323_v11 = vld [vmem:[%s4428_s19 + $0x1c8] sm:$0xff]  ;;  %v1869_v13 = vsub.f32 %v845_v4, %v1357_v5  ;;  %v1366_v4 = vld [vmem:[%s4441_s28 + $0x260] sm:$0xff] }
  0xcf   : > { %v2372_v22 = vmul.f32 %v1859_v7, %v323_v11  ;;  %v2883_v30 = vmul.f32 %v2371_v15, %v1858_v0  ;;  %v846_v11 = vld [vmem:[%s4435_s5 + $0x220] sm:$0xff] }
  0xd0   : > { %v3382_v25 = vadd.f32 %v3381_v18, %v2871_v10  ;;  %v324_v18 = vld [vmem:[%s4428_s19 + $0x1d0] sm:$0xff]  ;;  %v1870_v20 = vsub.f32 %v846_v11, %v1358_v12  ;;  %v1367_v11 = vld [vmem:[%s4441_s28 + $0x268] sm:$0xff] }
  0xd1   : > { %v2373_v29 = vmul.f32 %v1860_v14, %v324_v18  ;;  %v2884_v37 = vmul.f32 %v2372_v22, %v1859_v7  ;;  %v847_v18 = vld [vmem:[%s4435_s5 + $0x228] sm:$0xff] }
  0xd2   : > { %v3383_v32 = vadd.f32 %v3382_v25, %v2872_v17  ;;  %v325_v25 = vld [vmem:[%s4428_s19 + $0x1d8] sm:$0xff]  ;;  %v1871_v27 = vsub.f32 %v847_v18, %v1359_v19  ;;  %v1368_v18 = vld [vmem:[%s4441_s28 + $0x270] sm:$0xff] }
  0xd3   : > { %v2374_v36 = vmul.f32 %v1861_v21, %v325_v25  ;;  %v2885_v44 = vmul.f32 %v2373_v29, %v1860_v14  ;;  %v848_v25 = vld [vmem:[%s4435_s5 + $0x230] sm:$0xff] }
  0xd4   : > { %v3384_v39 = vadd.f32 %v3383_v32, %v2873_v24  ;;  %v326_v32 = vld [vmem:[%s4428_s19 + $0x1e0] sm:$0xff]  ;;  %v1872_v34 = vsub.f32 %v848_v25, %v1360_v26  ;;  %v1369_v25 = vld [vmem:[%s4441_s28 + $0x278] sm:$0xff] }
  0xd5   : > { %v2375_v43 = vmul.f32 %v1862_v28, %v326_v32  ;;  %v2886_v51 = vmul.f32 %v2374_v36, %v1861_v21  ;;  %v849_v32 = vld [vmem:[%s4435_s5 + $0x238] sm:$0xff] }
  0xd6   : > { %v3385_v46 = vadd.f32 %v3384_v39, %v2874_v31  ;;  %v327_v39 = vld [vmem:[%s4428_s19 + $0x1e8] sm:$0xff]  ;;  %v1873_v41 = vsub.f32 %v849_v32, %v1361_v33  ;;  %v1370_v32 = vld [vmem:[%s4441_s28 + $0x280] sm:$0xff] }
  0xd7   : > { %v2376_v50 = vmul.f32 %v1863_v35, %v327_v39  ;;  %v2887_v58 = vmul.f32 %v2375_v43, %v1862_v28  ;;  %v850_v39 = vld [vmem:[%s4435_s5 + $0x240] sm:$0xff] }
  0xd8   : > { %v3386_v53 = vadd.f32 %v3385_v46, %v2875_v38  ;;  %v328_v46 = vld [vmem:[%s4428_s19 + $0x1f0] sm:$0xff]  ;;  %v1874_v48 = vsub.f32 %v850_v39, %v1362_v40  ;;  %v1371_v39 = vld [vmem:[%s4441_s28 + $0x288] sm:$0xff] }
  0xd9   : > { %v2377_v57 = vmul.f32 %v1864_v42, %v328_v46  ;;  %v2888_v1 = vmul.f32 %v2376_v50, %v1863_v35  ;;  %v851_v46 = vld [vmem:[%s4435_s5 + $0x248] sm:$0xff] }
  0xda   : > { %v3387_v60 = vadd.f32 %v3386_v53, %v2876_v45  ;;  %v329_v53 = vld [vmem:[%s4428_s19 + $0x1f8] sm:$0xff]  ;;  %v1875_v55 = vsub.f32 %v851_v46, %v1363_v47  ;;  %v1372_v46 = vld [vmem:[%s4441_s28 + $0x290] sm:$0xff] }
  0xdb   : > { %v2378_v0 = vmul.f32 %v1865_v49, %v329_v53  ;;  %v2889_v8 = vmul.f32 %v2377_v57, %v1864_v42  ;;  %v852_v53 = vld [vmem:[%s4435_s5 + $0x250] sm:$0xff] }
  0xdc   : > { %v3388_v3 = vadd.f32 %v3387_v60, %v2877_v52  ;;  %v330_v60 = vld [vmem:[%s4428_s19 + $0x200] sm:$0xff]  ;;  %v1876_v62 = vsub.f32 %v852_v53, %v1364_v54  ;;  %v1373_v53 = vld [vmem:[%s4441_s28 + $0x298] sm:$0xff] }
  0xdd   : > { %v2379_v7 = vmul.f32 %v1866_v56, %v330_v60  ;;  %v2890_v15 = vmul.f32 %v2378_v0, %v1865_v49  ;;  %v853_v60 = vld [vmem:[%s4435_s5 + $0x258] sm:$0xff] }
  0xde   : > { %v3389_v10 = vadd.f32 %v3388_v3, %v2878_v59  ;;  %v331_v3 = vld [vmem:[%s4428_s19 + $0x208] sm:$0xff]  ;;  %v1877_v5 = vsub.f32 %v853_v60, %v1365_v61  ;;  %v1374_v60 = vld [vmem:[%s4441_s28 + $0x2a0] sm:$0xff] }
  0xdf   : > { %v2380_v14 = vmul.f32 %v1867_v63, %v331_v3  ;;  %v2891_v22 = vmul.f32 %v2379_v7, %v1866_v56  ;;  %v854_v3 = vld [vmem:[%s4435_s5 + $0x260] sm:$0xff] }
  0xe0   : > { %v3390_v17 = vadd.f32 %v3389_v10, %v2879_v2  ;;  %v332_v10 = vld [vmem:[%s4428_s19 + $0x210] sm:$0xff]  ;;  %v1878_v12 = vsub.f32 %v854_v3, %v1366_v4  ;;  %v1375_v3 = vld [vmem:[%s4441_s28 + $0x2a8] sm:$0xff] }
  0xe1   : > { %v2381_v21 = vmul.f32 %v1868_v6, %v332_v10  ;;  %v2892_v29 = vmul.f32 %v2380_v14, %v1867_v63  ;;  %v855_v10 = vld [vmem:[%s4435_s5 + $0x268] sm:$0xff] }
  0xe2   : > { %v3391_v24 = vadd.f32 %v3390_v17, %v2880_v9  ;;  %v333_v17 = vld [vmem:[%s4428_s19 + $0x218] sm:$0xff]  ;;  %v1879_v19 = vsub.f32 %v855_v10, %v1367_v11  ;;  %v1376_v10 = vld [vmem:[%s4441_s28 + $0x2b0] sm:$0xff] }
  0xe3   : > { %v2382_v28 = vmul.f32 %v1869_v13, %v333_v17  ;;  %v2893_v36 = vmul.f32 %v2381_v21, %v1868_v6  ;;  %v856_v17 = vld [vmem:[%s4435_s5 + $0x270] sm:$0xff] }
  0xe4   : > { %v3392_v31 = vadd.f32 %v3391_v24, %v2881_v16  ;;  %v334_v24 = vld [vmem:[%s4428_s19 + $0x220] sm:$0xff]  ;;  %v1880_v26 = vsub.f32 %v856_v17, %v1368_v18  ;;  %v1377_v17 = vld [vmem:[%s4441_s28 + $0x2b8] sm:$0xff] }
  0xe5   : > { %v2383_v35 = vmul.f32 %v1870_v20, %v334_v24  ;;  %v2894_v43 = vmul.f32 %v2382_v28, %v1869_v13  ;;  %v857_v24 = vld [vmem:[%s4435_s5 + $0x278] sm:$0xff] }
  0xe6   : > { %v3393_v38 = vadd.f32 %v3392_v31, %v2882_v23  ;;  %v335_v31 = vld [vmem:[%s4428_s19 + $0x228] sm:$0xff]  ;;  %v1881_v33 = vsub.f32 %v857_v24, %v1369_v25  ;;  %v1378_v24 = vld [vmem:[%s4441_s28 + $0x2c0] sm:$0xff] }
  0xe7   : > { %v2384_v42 = vmul.f32 %v1871_v27, %v335_v31  ;;  %v2895_v50 = vmul.f32 %v2383_v35, %v1870_v20  ;;  %v858_v31 = vld [vmem:[%s4435_s5 + $0x280] sm:$0xff] }
  0xe8   : > { %v3394_v45 = vadd.f32 %v3393_v38, %v2883_v30  ;;  %v336_v38 = vld [vmem:[%s4428_s19 + $0x230] sm:$0xff]  ;;  %v1882_v40 = vsub.f32 %v858_v31, %v1370_v32  ;;  %v1379_v31 = vld [vmem:[%s4441_s28 + $0x2c8] sm:$0xff] }
  0xe9   : > { %v2385_v49 = vmul.f32 %v1872_v34, %v336_v38  ;;  %v2896_v57 = vmul.f32 %v2384_v42, %v1871_v27  ;;  %v859_v38 = vld [vmem:[%s4435_s5 + $0x288] sm:$0xff] }
  0xea   : > { %v3395_v52 = vadd.f32 %v3394_v45, %v2884_v37  ;;  %v337_v45 = vld [vmem:[%s4428_s19 + $0x238] sm:$0xff]  ;;  %v1883_v47 = vsub.f32 %v859_v38, %v1371_v39  ;;  %v1380_v38 = vld [vmem:[%s4441_s28 + $0x2d0] sm:$0xff] }
  0xeb   : > { %v2386_v56 = vmul.f32 %v1873_v41, %v337_v45  ;;  %v2897_v0 = vmul.f32 %v2385_v49, %v1872_v34  ;;  %v860_v45 = vld [vmem:[%s4435_s5 + $0x290] sm:$0xff] }
  0xec   : > { %v3396_v59 = vadd.f32 %v3395_v52, %v2885_v44  ;;  %v338_v52 = vld [vmem:[%s4428_s19 + $0x240] sm:$0xff]  ;;  %v1884_v54 = vsub.f32 %v860_v45, %v1372_v46  ;;  %v1381_v45 = vld [vmem:[%s4441_s28 + $0x2d8] sm:$0xff] }
  0xed   : > { %v2387_v63 = vmul.f32 %v1874_v48, %v338_v52  ;;  %v2898_v7 = vmul.f32 %v2386_v56, %v1873_v41  ;;  %v861_v52 = vld [vmem:[%s4435_s5 + $0x298] sm:$0xff] }
  0xee   : > { %v3397_v2 = vadd.f32 %v3396_v59, %v2886_v51  ;;  %v339_v59 = vld [vmem:[%s4428_s19 + $0x248] sm:$0xff]  ;;  %v1885_v61 = vsub.f32 %v861_v52, %v1373_v53  ;;  %v1382_v52 = vld [vmem:[%s4441_s28 + $0x2e0] sm:$0xff] }
  0xef   : > { %v2388_v6 = vmul.f32 %v1875_v55, %v339_v59  ;;  %v2899_v14 = vmul.f32 %v2387_v63, %v1874_v48  ;;  %v862_v59 = vld [vmem:[%s4435_s5 + $0x2a0] sm:$0xff] }
  0xf0   : > { %v3398_v9 = vadd.f32 %v3397_v2, %v2887_v58  ;;  %v340_v2 = vld [vmem:[%s4428_s19 + $0x250] sm:$0xff]  ;;  %v1886_v4 = vsub.f32 %v862_v59, %v1374_v60  ;;  %v1383_v59 = vld [vmem:[%s4441_s28 + $0x2e8] sm:$0xff] }
  0xf1   : > { %v2389_v13 = vmul.f32 %v1876_v62, %v340_v2  ;;  %v2900_v21 = vmul.f32 %v2388_v6, %v1875_v55  ;;  %v863_v2 = vld [vmem:[%s4435_s5 + $0x2a8] sm:$0xff] }
  0xf2   : > { %v3399_v16 = vadd.f32 %v3398_v9, %v2888_v1  ;;  %v341_v9 = vld [vmem:[%s4428_s19 + $0x258] sm:$0xff]  ;;  %v1887_v11 = vsub.f32 %v863_v2, %v1375_v3  ;;  %v1384_v2 = vld [vmem:[%s4441_s28 + $0x2f0] sm:$0xff] }
  0xf3   : > { %v2390_v20 = vmul.f32 %v1877_v5, %v341_v9  ;;  %v2901_v28 = vmul.f32 %v2389_v13, %v1876_v62  ;;  %v864_v9 = vld [vmem:[%s4435_s5 + $0x2b0] sm:$0xff] }
  0xf4   : > { %v3400_v23 = vadd.f32 %v3399_v16, %v2889_v8  ;;  %v342_v16 = vld [vmem:[%s4428_s19 + $0x260] sm:$0xff]  ;;  %v1888_v18 = vsub.f32 %v864_v9, %v1376_v10  ;;  %v1385_v9 = vld [vmem:[%s4441_s28 + $0x2f8] sm:$0xff] }
  0xf5   : > { %v2391_v27 = vmul.f32 %v1878_v12, %v342_v16  ;;  %v2902_v35 = vmul.f32 %v2390_v20, %v1877_v5  ;;  %v865_v16 = vld [vmem:[%s4435_s5 + $0x2b8] sm:$0xff] }
  0xf6   : > { %v3401_v30 = vadd.f32 %v3400_v23, %v2890_v15  ;;  %v343_v23 = vld [vmem:[%s4428_s19 + $0x268] sm:$0xff]  ;;  %v1889_v25 = vsub.f32 %v865_v16, %v1377_v17  ;;  %v1386_v16 = vld [vmem:[%s4441_s28 + $0x300] sm:$0xff] }
  0xf7   : > { %v2392_v34 = vmul.f32 %v1879_v19, %v343_v23  ;;  %v2903_v42 = vmul.f32 %v2391_v27, %v1878_v12  ;;  %v866_v23 = vld [vmem:[%s4435_s5 + $0x2c0] sm:$0xff] }
  0xf8   : > { %v3402_v37 = vadd.f32 %v3401_v30, %v2891_v22  ;;  %v344_v30 = vld [vmem:[%s4428_s19 + $0x270] sm:$0xff]  ;;  %v1890_v32 = vsub.f32 %v866_v23, %v1378_v24  ;;  %v1387_v23 = vld [vmem:[%s4441_s28 + $0x308] sm:$0xff] }
  0xf9   : > { %v2393_v41 = vmul.f32 %v1880_v26, %v344_v30  ;;  %v2904_v49 = vmul.f32 %v2392_v34, %v1879_v19  ;;  %v867_v30 = vld [vmem:[%s4435_s5 + $0x2c8] sm:$0xff] }
  0xfa   : > { %v3403_v44 = vadd.f32 %v3402_v37, %v2892_v29  ;;  %v345_v37 = vld [vmem:[%s4428_s19 + $0x278] sm:$0xff]  ;;  %v1891_v39 = vsub.f32 %v867_v30, %v1379_v31  ;;  %v1388_v30 = vld [vmem:[%s4441_s28 + $0x310] sm:$0xff] }
  0xfb   : > { %v2394_v48 = vmul.f32 %v1881_v33, %v345_v37  ;;  %v2905_v56 = vmul.f32 %v2393_v41, %v1880_v26  ;;  %v868_v37 = vld [vmem:[%s4435_s5 + $0x2d0] sm:$0xff] }
  0xfc   : > { %v3404_v51 = vadd.f32 %v3403_v44, %v2893_v36  ;;  %v346_v44 = vld [vmem:[%s4428_s19 + $0x280] sm:$0xff]  ;;  %v1892_v46 = vsub.f32 %v868_v37, %v1380_v38  ;;  %v1389_v37 = vld [vmem:[%s4441_s28 + $0x318] sm:$0xff] }
  0xfd   : > { %v2395_v55 = vmul.f32 %v1882_v40, %v346_v44  ;;  %v2906_v63 = vmul.f32 %v2394_v48, %v1881_v33  ;;  %v869_v44 = vld [vmem:[%s4435_s5 + $0x2d8] sm:$0xff] }
  0xfe   : > { %v3405_v58 = vadd.f32 %v3404_v51, %v2894_v43  ;;  %v347_v51 = vld [vmem:[%s4428_s19 + $0x288] sm:$0xff]  ;;  %v1893_v53 = vsub.f32 %v869_v44, %v1381_v45  ;;  %v1390_v44 = vld [vmem:[%s4441_s28 + $0x320] sm:$0xff] }
  0xff   : > { %v2396_v62 = vmul.f32 %v1883_v47, %v347_v51  ;;  %v2907_v6 = vmul.f32 %v2395_v55, %v1882_v40  ;;  %v870_v51 = vld [vmem:[%s4435_s5 + $0x2e0] sm:$0xff] }
 0x100   : > { %v3406_v1 = vadd.f32 %v3405_v58, %v2895_v50  ;;  %v348_v58 = vld [vmem:[%s4428_s19 + $0x290] sm:$0xff]  ;;  %v1894_v60 = vsub.f32 %v870_v51, %v1382_v52  ;;  %v1391_v51 = vld [vmem:[%s4441_s28 + $0x328] sm:$0xff] }
 0x101   : > { %v2397_v5 = vmul.f32 %v1884_v54, %v348_v58  ;;  %v2908_v13 = vmul.f32 %v2396_v62, %v1883_v47  ;;  %v871_v58 = vld [vmem:[%s4435_s5 + $0x2e8] sm:$0xff] }
 0x102   : > { %v3407_v8 = vadd.f32 %v3406_v1, %v2896_v57  ;;  %v349_v1 = vld [vmem:[%s4428_s19 + $0x298] sm:$0xff]  ;;  %v1895_v3 = vsub.f32 %v871_v58, %v1383_v59  ;;  %v1392_v58 = vld [vmem:[%s4441_s28 + $0x330] sm:$0xff] }
 0x103   : > { %v2398_v12 = vmul.f32 %v1885_v61, %v349_v1  ;;  %v2909_v20 = vmul.f32 %v2397_v5, %v1884_v54  ;;  %v872_v1 = vld [vmem:[%s4435_s5 + $0x2f0] sm:$0xff] }
 0x104   : > { %v3408_v15 = vadd.f32 %v3407_v8, %v2897_v0  ;;  %v350_v8 = vld [vmem:[%s4428_s19 + $0x2a0] sm:$0xff]  ;;  %v1896_v10 = vsub.f32 %v872_v1, %v1384_v2  ;;  %v1393_v1 = vld [vmem:[%s4441_s28 + $0x338] sm:$0xff] }
 0x105   : > { %v2399_v19 = vmul.f32 %v1886_v4, %v350_v8  ;;  %v2910_v27 = vmul.f32 %v2398_v12, %v1885_v61  ;;  %v873_v8 = vld [vmem:[%s4435_s5 + $0x2f8] sm:$0xff] }
 0x106   : > { %v3409_v22 = vadd.f32 %v3408_v15, %v2898_v7  ;;  %v351_v15 = vld [vmem:[%s4428_s19 + $0x2a8] sm:$0xff]  ;;  %v1897_v17 = vsub.f32 %v873_v8, %v1385_v9  ;;  %v1394_v8 = vld [vmem:[%s4441_s28 + $0x340] sm:$0xff] }
 0x107   : > { %v2400_v26 = vmul.f32 %v1887_v11, %v351_v15  ;;  %v2911_v34 = vmul.f32 %v2399_v19, %v1886_v4  ;;  %v874_v15 = vld [vmem:[%s4435_s5 + $0x300] sm:$0xff] }
 0x108   : > { %v3410_v29 = vadd.f32 %v3409_v22, %v2899_v14  ;;  %v352_v22 = vld [vmem:[%s4428_s19 + $0x2b0] sm:$0xff]  ;;  %v1898_v24 = vsub.f32 %v874_v15, %v1386_v16  ;;  %v1395_v15 = vld [vmem:[%s4441_s28 + $0x348] sm:$0xff] }
 0x109   : > { %v2401_v33 = vmul.f32 %v1888_v18, %v352_v22  ;;  %v2912_v41 = vmul.f32 %v2400_v26, %v1887_v11  ;;  %v875_v22 = vld [vmem:[%s4435_s5 + $0x308] sm:$0xff] }
 0x10a   : > { %v3411_v36 = vadd.f32 %v3410_v29, %v2900_v21  ;;  %v353_v29 = vld [vmem:[%s4428_s19 + $0x2b8] sm:$0xff]  ;;  %v1899_v31 = vsub.f32 %v875_v22, %v1387_v23  ;;  %v1396_v22 = vld [vmem:[%s4441_s28 + $0x350] sm:$0xff] }
 0x10b   : > { %v2402_v40 = vmul.f32 %v1889_v25, %v353_v29  ;;  %v2913_v48 = vmul.f32 %v2401_v33, %v1888_v18  ;;  %v876_v29 = vld [vmem:[%s4435_s5 + $0x310] sm:$0xff] }
 0x10c   : > { %v3412_v43 = vadd.f32 %v3411_v36, %v2901_v28  ;;  %v354_v36 = vld [vmem:[%s4428_s19 + $0x2c0] sm:$0xff]  ;;  %v1900_v38 = vsub.f32 %v876_v29, %v1388_v30  ;;  %v1397_v29 = vld [vmem:[%s4441_s28 + $0x358] sm:$0xff] }
 0x10d   : > { %v2403_v47 = vmul.f32 %v1890_v32, %v354_v36  ;;  %v2914_v55 = vmul.f32 %v2402_v40, %v1889_v25  ;;  %v877_v36 = vld [vmem:[%s4435_s5 + $0x318] sm:$0xff] }
 0x10e   : > { %v3413_v50 = vadd.f32 %v3412_v43, %v2902_v35  ;;  %v355_v43 = vld [vmem:[%s4428_s19 + $0x2c8] sm:$0xff]  ;;  %v1901_v45 = vsub.f32 %v877_v36, %v1389_v37  ;;  %v1398_v36 = vld [vmem:[%s4441_s28 + $0x360] sm:$0xff] }
 0x10f   : > { %v2404_v54 = vmul.f32 %v1891_v39, %v355_v43  ;;  %v2915_v62 = vmul.f32 %v2403_v47, %v1890_v32  ;;  %v878_v43 = vld [vmem:[%s4435_s5 + $0x320] sm:$0xff] }
 0x110   : > { %v3414_v57 = vadd.f32 %v3413_v50, %v2903_v42  ;;  %v356_v50 = vld [vmem:[%s4428_s19 + $0x2d0] sm:$0xff]  ;;  %v1902_v52 = vsub.f32 %v878_v43, %v1390_v44  ;;  %v1399_v43 = vld [vmem:[%s4441_s28 + $0x368] sm:$0xff] }
 0x111   : > { %v2405_v61 = vmul.f32 %v1892_v46, %v356_v50  ;;  %v2916_v5 = vmul.f32 %v2404_v54, %v1891_v39  ;;  %v879_v50 = vld [vmem:[%s4435_s5 + $0x328] sm:$0xff] }
 0x112   : > { %v3415_v0 = vadd.f32 %v3414_v57, %v2904_v49  ;;  %v357_v57 = vld [vmem:[%s4428_s19 + $0x2d8] sm:$0xff]  ;;  %v1903_v59 = vsub.f32 %v879_v50, %v1391_v51  ;;  %v1400_v50 = vld [vmem:[%s4441_s28 + $0x370] sm:$0xff] }
 0x113   : > { %v2406_v4 = vmul.f32 %v1893_v53, %v357_v57  ;;  %v2917_v12 = vmul.f32 %v2405_v61, %v1892_v46  ;;  %v880_v57 = vld [vmem:[%s4435_s5 + $0x330] sm:$0xff] }
 0x114   : > { %v3416_v7 = vadd.f32 %v3415_v0, %v2905_v56  ;;  %v358_v0 = vld [vmem:[%s4428_s19 + $0x2e0] sm:$0xff]  ;;  %v1904_v2 = vsub.f32 %v880_v57, %v1392_v58  ;;  %v1401_v57 = vld [vmem:[%s4441_s28 + $0x378] sm:$0xff] }
 0x115   : > { %v2407_v11 = vmul.f32 %v1894_v60, %v358_v0  ;;  %v2918_v19 = vmul.f32 %v2406_v4, %v1893_v53  ;;  %v881_v0 = vld [vmem:[%s4435_s5 + $0x338] sm:$0xff] }
 0x116   : > { %v3417_v14 = vadd.f32 %v3416_v7, %v2906_v63  ;;  %v359_v7 = vld [vmem:[%s4428_s19 + $0x2e8] sm:$0xff]  ;;  %v1905_v9 = vsub.f32 %v881_v0, %v1393_v1  ;;  %v1402_v0 = vld [vmem:[%s4441_s28 + $0x380] sm:$0xff] }
 0x117   : > { %v2408_v18 = vmul.f32 %v1895_v3, %v359_v7  ;;  %v2919_v26 = vmul.f32 %v2407_v11, %v1894_v60  ;;  %v882_v7 = vld [vmem:[%s4435_s5 + $0x340] sm:$0xff] }
 0x118   : > { %v3418_v21 = vadd.f32 %v3417_v14, %v2907_v6  ;;  %v360_v14 = vld [vmem:[%s4428_s19 + $0x2f0] sm:$0xff]  ;;  %v1906_v16 = vsub.f32 %v882_v7, %v1394_v8  ;;  %v1403_v7 = vld [vmem:[%s4441_s28 + $0x388] sm:$0xff] }
 0x119   : > { %v2409_v25 = vmul.f32 %v1896_v10, %v360_v14  ;;  %v2920_v33 = vmul.f32 %v2408_v18, %v1895_v3  ;;  %v883_v14 = vld [vmem:[%s4435_s5 + $0x348] sm:$0xff] }
 0x11a   : > { %v3419_v28 = vadd.f32 %v3418_v21, %v2908_v13  ;;  %v361_v21 = vld [vmem:[%s4428_s19 + $0x2f8] sm:$0xff]  ;;  %v1907_v23 = vsub.f32 %v883_v14, %v1395_v15  ;;  %v1404_v14 = vld [vmem:[%s4441_s28 + $0x390] sm:$0xff] }
 0x11b   : > { %v2410_v32 = vmul.f32 %v1897_v17, %v361_v21  ;;  %v2921_v40 = vmul.f32 %v2409_v25, %v1896_v10  ;;  %v884_v21 = vld [vmem:[%s4435_s5 + $0x350] sm:$0xff] }
 0x11c   : > { %v3420_v35 = vadd.f32 %v3419_v28, %v2909_v20  ;;  %v362_v28 = vld [vmem:[%s4428_s19 + $0x300] sm:$0xff]  ;;  %v1908_v30 = vsub.f32 %v884_v21, %v1396_v22  ;;  %v1405_v21 = vld [vmem:[%s4441_s28 + $0x398] sm:$0xff] }
 0x11d   : > { %v2411_v39 = vmul.f32 %v1898_v24, %v362_v28  ;;  %v2922_v47 = vmul.f32 %v2410_v32, %v1897_v17  ;;  %v885_v28 = vld [vmem:[%s4435_s5 + $0x358] sm:$0xff] }
 0x11e   : > { %v3421_v42 = vadd.f32 %v3420_v35, %v2910_v27  ;;  %v363_v35 = vld [vmem:[%s4428_s19 + $0x308] sm:$0xff]  ;;  %v1909_v37 = vsub.f32 %v885_v28, %v1397_v29  ;;  %v1406_v28 = vld [vmem:[%s4441_s28 + $0x3a0] sm:$0xff] }
 0x11f   : > { %v2412_v46 = vmul.f32 %v1899_v31, %v363_v35  ;;  %v2923_v54 = vmul.f32 %v2411_v39, %v1898_v24  ;;  %v886_v35 = vld [vmem:[%s4435_s5 + $0x360] sm:$0xff] }
 0x120   : > { %v3422_v49 = vadd.f32 %v3421_v42, %v2911_v34  ;;  %v364_v42 = vld [vmem:[%s4428_s19 + $0x310] sm:$0xff]  ;;  %v1910_v44 = vsub.f32 %v886_v35, %v1398_v36  ;;  %v1407_v35 = vld [vmem:[%s4441_s28 + $0x3a8] sm:$0xff] }
 0x121   : > { %v2413_v53 = vmul.f32 %v1900_v38, %v364_v42  ;;  %v2924_v61 = vmul.f32 %v2412_v46, %v1899_v31  ;;  %v887_v42 = vld [vmem:[%s4435_s5 + $0x368] sm:$0xff] }
 0x122   : > { %v3423_v56 = vadd.f32 %v3422_v49, %v2912_v41  ;;  %v365_v49 = vld [vmem:[%s4428_s19 + $0x318] sm:$0xff]  ;;  %v1911_v51 = vsub.f32 %v887_v42, %v1399_v43  ;;  %v1408_v42 = vld [vmem:[%s4441_s28 + $0x3b0] sm:$0xff] }
 0x123   : > { %v2414_v60 = vmul.f32 %v1901_v45, %v365_v49  ;;  %v2925_v4 = vmul.f32 %v2413_v53, %v1900_v38  ;;  %v888_v49 = vld [vmem:[%s4435_s5 + $0x370] sm:$0xff] }
 0x124   : > { %v3424_v63 = vadd.f32 %v3423_v56, %v2913_v48  ;;  %v366_v56 = vld [vmem:[%s4428_s19 + $0x320] sm:$0xff]  ;;  %v1912_v58 = vsub.f32 %v888_v49, %v1400_v50  ;;  %v1409_v49 = vld [vmem:[%s4441_s28 + $0x3b8] sm:$0xff] }
 0x125   : > { %v2415_v3 = vmul.f32 %v1902_v52, %v366_v56  ;;  %v2926_v11 = vmul.f32 %v2414_v60, %v1901_v45  ;;  %v889_v56 = vld [vmem:[%s4435_s5 + $0x378] sm:$0xff] }
 0x126   : > { %v3425_v6 = vadd.f32 %v3424_v63, %v2914_v55  ;;  %v367_v63 = vld [vmem:[%s4428_s19 + $0x328] sm:$0xff]  ;;  %v1913_v1 = vsub.f32 %v889_v56, %v1401_v57  ;;  %v1410_v56 = vld [vmem:[%s4441_s28 + $0x3c0] sm:$0xff] }
 0x127   : > { %v2416_v10 = vmul.f32 %v1903_v59, %v367_v63  ;;  %v2927_v18 = vmul.f32 %v2415_v3, %v1902_v52  ;;  %v890_v63 = vld [vmem:[%s4435_s5 + $0x380] sm:$0xff] }
 0x128   : > { %v3426_v13 = vadd.f32 %v3425_v6, %v2915_v62  ;;  %v368_v6 = vld [vmem:[%s4428_s19 + $0x330] sm:$0xff]  ;;  %v1914_v8 = vsub.f32 %v890_v63, %v1402_v0  ;;  %v1411_v63 = vld [vmem:[%s4441_s28 + $0x3c8] sm:$0xff] }
 0x129   : > { %v2417_v17 = vmul.f32 %v1904_v2, %v368_v6  ;;  %v2928_v25 = vmul.f32 %v2416_v10, %v1903_v59  ;;  %v891_v6 = vld [vmem:[%s4435_s5 + $0x388] sm:$0xff] }
 0x12a   : > { %v3427_v20 = vadd.f32 %v3426_v13, %v2916_v5  ;;  %v369_v13 = vld [vmem:[%s4428_s19 + $0x338] sm:$0xff]  ;;  %v1915_v15 = vsub.f32 %v891_v6, %v1403_v7  ;;  %v1412_v6 = vld [vmem:[%s4441_s28 + $0x3d0] sm:$0xff] }
 0x12b   : > { %v2418_v24 = vmul.f32 %v1905_v9, %v369_v13  ;;  %v2929_v32 = vmul.f32 %v2417_v17, %v1904_v2  ;;  %v892_v13 = vld [vmem:[%s4435_s5 + $0x390] sm:$0xff] }
 0x12c   : > { %v3428_v27 = vadd.f32 %v3427_v20, %v2917_v12  ;;  %v370_v20 = vld [vmem:[%s4428_s19 + $0x340] sm:$0xff]  ;;  %v1916_v22 = vsub.f32 %v892_v13, %v1404_v14  ;;  %v1413_v13 = vld [vmem:[%s4441_s28 + $0x3d8] sm:$0xff] }
 0x12d   : > { %v2419_v31 = vmul.f32 %v1906_v16, %v370_v20  ;;  %v2930_v39 = vmul.f32 %v2418_v24, %v1905_v9  ;;  %v893_v20 = vld [vmem:[%s4435_s5 + $0x398] sm:$0xff] }
 0x12e   : > { %v3429_v34 = vadd.f32 %v3428_v27, %v2918_v19  ;;  %v371_v27 = vld [vmem:[%s4428_s19 + $0x348] sm:$0xff]  ;;  %v1917_v29 = vsub.f32 %v893_v20, %v1405_v21  ;;  %v1414_v20 = vld [vmem:[%s4441_s28 + $0x3e0] sm:$0xff] }
 0x12f   : > { %v2420_v38 = vmul.f32 %v1907_v23, %v371_v27  ;;  %v2931_v46 = vmul.f32 %v2419_v31, %v1906_v16  ;;  %v894_v27 = vld [vmem:[%s4435_s5 + $0x3a0] sm:$0xff] }
 0x130   : > { %v3430_v41 = vadd.f32 %v3429_v34, %v2919_v26  ;;  %v372_v34 = vld [vmem:[%s4428_s19 + $0x350] sm:$0xff]  ;;  %v1918_v36 = vsub.f32 %v894_v27, %v1406_v28  ;;  %v1415_v27 = vld [vmem:[%s4441_s28 + $0x3e8] sm:$0xff] }
 0x131   : > { %v2421_v45 = vmul.f32 %v1908_v30, %v372_v34  ;;  %v2932_v53 = vmul.f32 %v2420_v38, %v1907_v23  ;;  %v895_v34 = vld [vmem:[%s4435_s5 + $0x3a8] sm:$0xff] }
 0x132   : > { %v3431_v48 = vadd.f32 %v3430_v41, %v2920_v33  ;;  %v373_v41 = vld [vmem:[%s4428_s19 + $0x358] sm:$0xff]  ;;  %v1919_v43 = vsub.f32 %v895_v34, %v1407_v35  ;;  %v1416_v34 = vld [vmem:[%s4441_s28 + $0x3f0] sm:$0xff] }
 0x133   : > { %v2422_v52 = vmul.f32 %v1909_v37, %v373_v41  ;;  %v2933_v60 = vmul.f32 %v2421_v45, %v1908_v30  ;;  %v896_v41 = vld [vmem:[%s4435_s5 + $0x3b0] sm:$0xff] }
 0x134   : > { %v3432_v55 = vadd.f32 %v3431_v48, %v2921_v40  ;;  %v374_v48 = vld [vmem:[%s4428_s19 + $0x360] sm:$0xff]  ;;  %v1920_v50 = vsub.f32 %v896_v41, %v1408_v42  ;;  %v1417_v41 = vld [vmem:[%s4441_s28 + $0x3f8] sm:$0xff] }
 0x135   : > { %v2423_v59 = vmul.f32 %v1910_v44, %v374_v48  ;;  %v2934_v3 = vmul.f32 %v2422_v52, %v1909_v37  ;;  %v897_v48 = vld [vmem:[%s4435_s5 + $0x3b8] sm:$0xff] }
 0x136   : > { %v3433_v62 = vadd.f32 %v3432_v55, %v2922_v47  ;;  %v375_v55 = vld [vmem:[%s4428_s19 + $0x368] sm:$0xff]  ;;  %v1921_v57 = vsub.f32 %v897_v48, %v1409_v49  ;;  %v1418_v48 = vld [vmem:[%s4441_s28 + $0x400] sm:$0xff] }
 0x137   : > { %v2424_v2 = vmul.f32 %v1911_v51, %v375_v55  ;;  %v2935_v10 = vmul.f32 %v2423_v59, %v1910_v44  ;;  %v898_v55 = vld [vmem:[%s4435_s5 + $0x3c0] sm:$0xff] }
 0x138   : > { %v3434_v5 = vadd.f32 %v3433_v62, %v2923_v54  ;;  %v376_v62 = vld [vmem:[%s4428_s19 + $0x370] sm:$0xff]  ;;  %v1922_v0 = vsub.f32 %v898_v55, %v1410_v56  ;;  %v1419_v55 = vld [vmem:[%s4441_s28 + $0x408] sm:$0xff] }
 0x139   : > { %v2425_v9 = vmul.f32 %v1912_v58, %v376_v62  ;;  %v2936_v17 = vmul.f32 %v2424_v2, %v1911_v51  ;;  %v899_v62 = vld [vmem:[%s4435_s5 + $0x3c8] sm:$0xff] }
 0x13a   : > { %v3435_v12 = vadd.f32 %v3434_v5, %v2924_v61  ;;  %v377_v5 = vld [vmem:[%s4428_s19 + $0x378] sm:$0xff]  ;;  %v1923_v7 = vsub.f32 %v899_v62, %v1411_v63  ;;  %v1420_v62 = vld [vmem:[%s4441_s28 + $0x410] sm:$0xff] }
 0x13b   : > { %v2426_v16 = vmul.f32 %v1913_v1, %v377_v5  ;;  %v2937_v24 = vmul.f32 %v2425_v9, %v1912_v58  ;;  %v900_v5 = vld [vmem:[%s4435_s5 + $0x3d0] sm:$0xff] }
 0x13c   : > { %v3436_v19 = vadd.f32 %v3435_v12, %v2925_v4  ;;  %v378_v12 = vld [vmem:[%s4428_s19 + $0x380] sm:$0xff]  ;;  %v1924_v14 = vsub.f32 %v900_v5, %v1412_v6  ;;  %v1421_v5 = vld [vmem:[%s4441_s28 + $0x418] sm:$0xff] }
 0x13d   : > { %v2427_v23 = vmul.f32 %v1914_v8, %v378_v12  ;;  %v2938_v31 = vmul.f32 %v2426_v16, %v1913_v1  ;;  %v901_v12 = vld [vmem:[%s4435_s5 + $0x3d8] sm:$0xff] }
 0x13e   : > { %v3437_v26 = vadd.f32 %v3436_v19, %v2926_v11  ;;  %v379_v19 = vld [vmem:[%s4428_s19 + $0x388] sm:$0xff]  ;;  %v1925_v21 = vsub.f32 %v901_v12, %v1413_v13  ;;  %v1422_v12 = vld [vmem:[%s4441_s28 + $0x420] sm:$0xff] }
 0x13f   : > { %v2428_v30 = vmul.f32 %v1915_v15, %v379_v19  ;;  %v2939_v38 = vmul.f32 %v2427_v23, %v1914_v8  ;;  %v902_v19 = vld [vmem:[%s4435_s5 + $0x3e0] sm:$0xff] }
 0x140   : > { %v3438_v33 = vadd.f32 %v3437_v26, %v2927_v18  ;;  %v380_v26 = vld [vmem:[%s4428_s19 + $0x390] sm:$0xff]  ;;  %v1926_v28 = vsub.f32 %v902_v19, %v1414_v20  ;;  %v1423_v19 = vld [vmem:[%s4441_s28 + $0x428] sm:$0xff] }
 0x141   : > { %v2429_v37 = vmul.f32 %v1916_v22, %v380_v26  ;;  %v2940_v45 = vmul.f32 %v2428_v30, %v1915_v15  ;;  %v903_v26 = vld [vmem:[%s4435_s5 + $0x3e8] sm:$0xff] }
 0x142   : > { %v3439_v40 = vadd.f32 %v3438_v33, %v2928_v25  ;;  %v381_v33 = vld [vmem:[%s4428_s19 + $0x398] sm:$0xff]  ;;  %v1927_v35 = vsub.f32 %v903_v26, %v1415_v27  ;;  %v1424_v26 = vld [vmem:[%s4441_s28 + $0x430] sm:$0xff] }
 0x143   : > { %v2430_v44 = vmul.f32 %v1917_v29, %v381_v33  ;;  %v2941_v52 = vmul.f32 %v2429_v37, %v1916_v22  ;;  %v904_v33 = vld [vmem:[%s4435_s5 + $0x3f0] sm:$0xff] }
 0x144   : > { %v3440_v47 = vadd.f32 %v3439_v40, %v2929_v32  ;;  %v382_v40 = vld [vmem:[%s4428_s19 + $0x3a0] sm:$0xff]  ;;  %v1928_v42 = vsub.f32 %v904_v33, %v1416_v34  ;;  %v1425_v33 = vld [vmem:[%s4441_s28 + $0x438] sm:$0xff] }
 0x145   : > { %v2431_v51 = vmul.f32 %v1918_v36, %v382_v40  ;;  %v2942_v59 = vmul.f32 %v2430_v44, %v1917_v29  ;;  %v905_v40 = vld [vmem:[%s4435_s5 + $0x3f8] sm:$0xff] }
 0x146   : > { %v3441_v54 = vadd.f32 %v3440_v47, %v2930_v39  ;;  %v383_v47 = vld [vmem:[%s4428_s19 + $0x3a8] sm:$0xff]  ;;  %v1929_v49 = vsub.f32 %v905_v40, %v1417_v41  ;;  %v1426_v40 = vld [vmem:[%s4441_s28 + $0x440] sm:$0xff] }
 0x147   : > { %v2432_v58 = vmul.f32 %v1919_v43, %v383_v47  ;;  %v2943_v2 = vmul.f32 %v2431_v51, %v1918_v36  ;;  %v906_v47 = vld [vmem:[%s4435_s5 + $0x400] sm:$0xff] }
 0x148   : > { %v3442_v61 = vadd.f32 %v3441_v54, %v2931_v46  ;;  %v384_v54 = vld [vmem:[%s4428_s19 + $0x3b0] sm:$0xff]  ;;  %v1930_v56 = vsub.f32 %v906_v47, %v1418_v48  ;;  %v1427_v47 = vld [vmem:[%s4441_s28 + $0x448] sm:$0xff] }
 0x149   : > { %v2433_v1 = vmul.f32 %v1920_v50, %v384_v54  ;;  %v2944_v9 = vmul.f32 %v2432_v58, %v1919_v43  ;;  %v907_v54 = vld [vmem:[%s4435_s5 + $0x408] sm:$0xff] }
 0x14a   : > { %v3443_v4 = vadd.f32 %v3442_v61, %v2932_v53  ;;  %v385_v61 = vld [vmem:[%s4428_s19 + $0x3b8] sm:$0xff]  ;;  %v1931_v63 = vsub.f32 %v907_v54, %v1419_v55  ;;  %v1428_v54 = vld [vmem:[%s4441_s28 + $0x450] sm:$0xff] }
 0x14b   : > { %v2434_v8 = vmul.f32 %v1921_v57, %v385_v61  ;;  %v2945_v16 = vmul.f32 %v2433_v1, %v1920_v50  ;;  %v908_v61 = vld [vmem:[%s4435_s5 + $0x410] sm:$0xff] }
 0x14c   : > { %v3444_v11 = vadd.f32 %v3443_v4, %v2933_v60  ;;  %v386_v4 = vld [vmem:[%s4428_s19 + $0x3c0] sm:$0xff]  ;;  %v1932_v6 = vsub.f32 %v908_v61, %v1420_v62  ;;  %v1429_v61 = vld [vmem:[%s4441_s28 + $0x458] sm:$0xff] }
 0x14d   : > { %v2435_v15 = vmul.f32 %v1922_v0, %v386_v4  ;;  %v2946_v23 = vmul.f32 %v2434_v8, %v1921_v57  ;;  %v909_v4 = vld [vmem:[%s4435_s5 + $0x418] sm:$0xff] }
 0x14e   : > { %v3445_v18 = vadd.f32 %v3444_v11, %v2934_v3  ;;  %v387_v11 = vld [vmem:[%s4428_s19 + $0x3c8] sm:$0xff]  ;;  %v1933_v13 = vsub.f32 %v909_v4, %v1421_v5  ;;  %v1430_v4 = vld [vmem:[%s4441_s28 + $0x460] sm:$0xff] }
 0x14f   : > { %v2436_v22 = vmul.f32 %v1923_v7, %v387_v11  ;;  %v2947_v30 = vmul.f32 %v2435_v15, %v1922_v0  ;;  %v910_v11 = vld [vmem:[%s4435_s5 + $0x420] sm:$0xff] }
 0x150   : > { %v3446_v25 = vadd.f32 %v3445_v18, %v2935_v10  ;;  %v388_v18 = vld [vmem:[%s4428_s19 + $0x3d0] sm:$0xff]  ;;  %v1934_v20 = vsub.f32 %v910_v11, %v1422_v12  ;;  %v1431_v11 = vld [vmem:[%s4441_s28 + $0x468] sm:$0xff] }
 0x151   : > { %v2437_v29 = vmul.f32 %v1924_v14, %v388_v18  ;;  %v2948_v37 = vmul.f32 %v2436_v22, %v1923_v7  ;;  %v911_v18 = vld [vmem:[%s4435_s5 + $0x428] sm:$0xff] }
 0x152   : > { %v3447_v32 = vadd.f32 %v3446_v25, %v2936_v17  ;;  %v389_v25 = vld [vmem:[%s4428_s19 + $0x3d8] sm:$0xff]  ;;  %v1935_v27 = vsub.f32 %v911_v18, %v1423_v19  ;;  %v1432_v18 = vld [vmem:[%s4441_s28 + $0x470] sm:$0xff] }
 0x153   : > { %v2438_v36 = vmul.f32 %v1925_v21, %v389_v25  ;;  %v2949_v44 = vmul.f32 %v2437_v29, %v1924_v14  ;;  %v912_v25 = vld [vmem:[%s4435_s5 + $0x430] sm:$0xff] }
 0x154   : > { %v3448_v39 = vadd.f32 %v3447_v32, %v2937_v24  ;;  %v390_v32 = vld [vmem:[%s4428_s19 + $0x3e0] sm:$0xff]  ;;  %v1936_v34 = vsub.f32 %v912_v25, %v1424_v26  ;;  %v1433_v25 = vld [vmem:[%s4441_s28 + $0x478] sm:$0xff] }
 0x155   : > { %v2439_v43 = vmul.f32 %v1926_v28, %v390_v32  ;;  %v2950_v51 = vmul.f32 %v2438_v36, %v1925_v21  ;;  %v913_v32 = vld [vmem:[%s4435_s5 + $0x438] sm:$0xff] }
 0x156   : > { %v3449_v46 = vadd.f32 %v3448_v39, %v2938_v31  ;;  %v391_v39 = vld [vmem:[%s4428_s19 + $0x3e8] sm:$0xff]  ;;  %v1937_v41 = vsub.f32 %v913_v32, %v1425_v33  ;;  %v1434_v32 = vld [vmem:[%s4441_s28 + $0x480] sm:$0xff] }
 0x157   : > { %v2440_v50 = vmul.f32 %v1927_v35, %v391_v39  ;;  %v2951_v58 = vmul.f32 %v2439_v43, %v1926_v28  ;;  %v914_v39 = vld [vmem:[%s4435_s5 + $0x440] sm:$0xff] }
 0x158   : > { %v3450_v53 = vadd.f32 %v3449_v46, %v2939_v38  ;;  %v392_v46 = vld [vmem:[%s4428_s19 + $0x3f0] sm:$0xff]  ;;  %v1938_v48 = vsub.f32 %v914_v39, %v1426_v40  ;;  %v1435_v39 = vld [vmem:[%s4441_s28 + $0x488] sm:$0xff] }
 0x159   : > { %v2441_v57 = vmul.f32 %v1928_v42, %v392_v46  ;;  %v2952_v1 = vmul.f32 %v2440_v50, %v1927_v35  ;;  %v915_v46 = vld [vmem:[%s4435_s5 + $0x448] sm:$0xff] }
 0x15a   : > { %v3451_v60 = vadd.f32 %v3450_v53, %v2940_v45  ;;  %v393_v53 = vld [vmem:[%s4428_s19 + $0x3f8] sm:$0xff]  ;;  %v1939_v55 = vsub.f32 %v915_v46, %v1427_v47  ;;  %v1436_v46 = vld [vmem:[%s4441_s28 + $0x490] sm:$0xff] }
 0x15b   : > { %v2442_v0 = vmul.f32 %v1929_v49, %v393_v53  ;;  %v2953_v8 = vmul.f32 %v2441_v57, %v1928_v42  ;;  %v916_v53 = vld [vmem:[%s4435_s5 + $0x450] sm:$0xff] }
 0x15c   : > { %v3452_v3 = vadd.f32 %v3451_v60, %v2941_v52  ;;  %v394_v60 = vld [vmem:[%s4428_s19 + $0x400] sm:$0xff]  ;;  %v1940_v62 = vsub.f32 %v916_v53, %v1428_v54  ;;  %v1437_v53 = vld [vmem:[%s4441_s28 + $0x498] sm:$0xff] }
 0x15d   : > { %v2443_v7 = vmul.f32 %v1930_v56, %v394_v60  ;;  %v2954_v15 = vmul.f32 %v2442_v0, %v1929_v49  ;;  %v917_v60 = vld [vmem:[%s4435_s5 + $0x458] sm:$0xff] }
 0x15e   : > { %v3453_v10 = vadd.f32 %v3452_v3, %v2942_v59  ;;  %v395_v3 = vld [vmem:[%s4428_s19 + $0x408] sm:$0xff]  ;;  %v1941_v5 = vsub.f32 %v917_v60, %v1429_v61  ;;  %v1438_v60 = vld [vmem:[%s4441_s28 + $0x4a0] sm:$0xff] }
 0x15f   : > { %v2444_v14 = vmul.f32 %v1931_v63, %v395_v3  ;;  %v2955_v22 = vmul.f32 %v2443_v7, %v1930_v56  ;;  %v918_v3 = vld [vmem:[%s4435_s5 + $0x460] sm:$0xff] }
 0x160   : > { %v3454_v17 = vadd.f32 %v3453_v10, %v2943_v2  ;;  %v396_v10 = vld [vmem:[%s4428_s19 + $0x410] sm:$0xff]  ;;  %v1942_v12 = vsub.f32 %v918_v3, %v1430_v4  ;;  %v1439_v3 = vld [vmem:[%s4441_s28 + $0x4a8] sm:$0xff] }
 0x161   : > { %v2445_v21 = vmul.f32 %v1932_v6, %v396_v10  ;;  %v2956_v29 = vmul.f32 %v2444_v14, %v1931_v63  ;;  %v919_v10 = vld [vmem:[%s4435_s5 + $0x468] sm:$0xff] }
 0x162   : > { %v3455_v24 = vadd.f32 %v3454_v17, %v2944_v9  ;;  %v397_v17 = vld [vmem:[%s4428_s19 + $0x418] sm:$0xff]  ;;  %v1943_v19 = vsub.f32 %v919_v10, %v1431_v11  ;;  %v1440_v10 = vld [vmem:[%s4441_s28 + $0x4b0] sm:$0xff] }
 0x163   : > { %v2446_v28 = vmul.f32 %v1933_v13, %v397_v17  ;;  %v2957_v36 = vmul.f32 %v2445_v21, %v1932_v6  ;;  %v920_v17 = vld [vmem:[%s4435_s5 + $0x470] sm:$0xff] }
 0x164   : > { %v3456_v31 = vadd.f32 %v3455_v24, %v2945_v16  ;;  %v398_v24 = vld [vmem:[%s4428_s19 + $0x420] sm:$0xff]  ;;  %v1944_v26 = vsub.f32 %v920_v17, %v1432_v18  ;;  %v1441_v17 = vld [vmem:[%s4441_s28 + $0x4b8] sm:$0xff] }
 0x165   : > { %v2447_v35 = vmul.f32 %v1934_v20, %v398_v24  ;;  %v2958_v43 = vmul.f32 %v2446_v28, %v1933_v13  ;;  %v921_v24 = vld [vmem:[%s4435_s5 + $0x478] sm:$0xff] }
 0x166   : > { %v3457_v38 = vadd.f32 %v3456_v31, %v2946_v23  ;;  %v399_v31 = vld [vmem:[%s4428_s19 + $0x428] sm:$0xff]  ;;  %v1945_v33 = vsub.f32 %v921_v24, %v1433_v25  ;;  %v1442_v24 = vld [vmem:[%s4441_s28 + $0x4c0] sm:$0xff] }
 0x167   : > { %v2448_v42 = vmul.f32 %v1935_v27, %v399_v31  ;;  %v2959_v50 = vmul.f32 %v2447_v35, %v1934_v20  ;;  %v922_v31 = vld [vmem:[%s4435_s5 + $0x480] sm:$0xff] }
 0x168   : > { %v3458_v45 = vadd.f32 %v3457_v38, %v2947_v30  ;;  %v400_v38 = vld [vmem:[%s4428_s19 + $0x430] sm:$0xff]  ;;  %v1946_v40 = vsub.f32 %v922_v31, %v1434_v32  ;;  %v1443_v31 = vld [vmem:[%s4441_s28 + $0x4c8] sm:$0xff] }
 0x169   : > { %v2449_v49 = vmul.f32 %v1936_v34, %v400_v38  ;;  %v2960_v57 = vmul.f32 %v2448_v42, %v1935_v27  ;;  %v923_v38 = vld [vmem:[%s4435_s5 + $0x488] sm:$0xff] }
 0x16a   : > { %v3459_v52 = vadd.f32 %v3458_v45, %v2948_v37  ;;  %v401_v45 = vld [vmem:[%s4428_s19 + $0x438] sm:$0xff]  ;;  %v1947_v47 = vsub.f32 %v923_v38, %v1435_v39  ;;  %v1444_v38 = vld [vmem:[%s4441_s28 + $0x4d0] sm:$0xff] }
 0x16b   : > { %v2450_v56 = vmul.f32 %v1937_v41, %v401_v45  ;;  %v2961_v0 = vmul.f32 %v2449_v49, %v1936_v34  ;;  %v924_v45 = vld [vmem:[%s4435_s5 + $0x490] sm:$0xff] }
 0x16c   : > { %v3460_v59 = vadd.f32 %v3459_v52, %v2949_v44  ;;  %v402_v52 = vld [vmem:[%s4428_s19 + $0x440] sm:$0xff]  ;;  %v1948_v54 = vsub.f32 %v924_v45, %v1436_v46  ;;  %v1445_v45 = vld [vmem:[%s4441_s28 + $0x4d8] sm:$0xff] }
 0x16d   : > { %v2451_v63 = vmul.f32 %v1938_v48, %v402_v52  ;;  %v2962_v7 = vmul.f32 %v2450_v56, %v1937_v41  ;;  %v925_v52 = vld [vmem:[%s4435_s5 + $0x498] sm:$0xff] }
 0x16e   : > { %v3461_v2 = vadd.f32 %v3460_v59, %v2950_v51  ;;  %v403_v59 = vld [vmem:[%s4428_s19 + $0x448] sm:$0xff]  ;;  %v1949_v61 = vsub.f32 %v925_v52, %v1437_v53  ;;  %v1446_v52 = vld [vmem:[%s4441_s28 + $0x4e0] sm:$0xff] }
 0x16f   : > { %v2452_v6 = vmul.f32 %v1939_v55, %v403_v59  ;;  %v2963_v14 = vmul.f32 %v2451_v63, %v1938_v48  ;;  %v926_v59 = vld [vmem:[%s4435_s5 + $0x4a0] sm:$0xff] }
 0x170   : > { %v3462_v9 = vadd.f32 %v3461_v2, %v2951_v58  ;;  %v404_v2 = vld [vmem:[%s4428_s19 + $0x450] sm:$0xff]  ;;  %v1950_v4 = vsub.f32 %v926_v59, %v1438_v60  ;;  %v1447_v59 = vld [vmem:[%s4441_s28 + $0x4e8] sm:$0xff] }
 0x171   : > { %v2453_v13 = vmul.f32 %v1940_v62, %v404_v2  ;;  %v2964_v21 = vmul.f32 %v2452_v6, %v1939_v55  ;;  %v927_v2 = vld [vmem:[%s4435_s5 + $0x4a8] sm:$0xff] }
 0x172   : > { %v3463_v16 = vadd.f32 %v3462_v9, %v2952_v1  ;;  %v405_v9 = vld [vmem:[%s4428_s19 + $0x458] sm:$0xff]  ;;  %v1951_v11 = vsub.f32 %v927_v2, %v1439_v3  ;;  %v1448_v2 = vld [vmem:[%s4441_s28 + $0x4f0] sm:$0xff] }
 0x173   : > { %v2454_v20 = vmul.f32 %v1941_v5, %v405_v9  ;;  %v2965_v28 = vmul.f32 %v2453_v13, %v1940_v62  ;;  %v928_v9 = vld [vmem:[%s4435_s5 + $0x4b0] sm:$0xff] }
 0x174   : > { %v3464_v23 = vadd.f32 %v3463_v16, %v2953_v8  ;;  %v406_v16 = vld [vmem:[%s4428_s19 + $0x460] sm:$0xff]  ;;  %v1952_v18 = vsub.f32 %v928_v9, %v1440_v10  ;;  %v1449_v9 = vld [vmem:[%s4441_s28 + $0x4f8] sm:$0xff] }
 0x175   : > { %v2455_v27 = vmul.f32 %v1942_v12, %v406_v16  ;;  %v2966_v35 = vmul.f32 %v2454_v20, %v1941_v5  ;;  %v929_v16 = vld [vmem:[%s4435_s5 + $0x4b8] sm:$0xff] }
 0x176   : > { %v3465_v30 = vadd.f32 %v3464_v23, %v2954_v15  ;;  %v407_v23 = vld [vmem:[%s4428_s19 + $0x468] sm:$0xff]  ;;  %v1953_v25 = vsub.f32 %v929_v16, %v1441_v17  ;;  %v1450_v16 = vld [vmem:[%s4441_s28 + $0x500] sm:$0xff] }
 0x177   : > { %v2456_v34 = vmul.f32 %v1943_v19, %v407_v23  ;;  %v2967_v42 = vmul.f32 %v2455_v27, %v1942_v12  ;;  %v930_v23 = vld [vmem:[%s4435_s5 + $0x4c0] sm:$0xff] }
 0x178   : > { %v3466_v37 = vadd.f32 %v3465_v30, %v2955_v22  ;;  %v408_v30 = vld [vmem:[%s4428_s19 + $0x470] sm:$0xff]  ;;  %v1954_v32 = vsub.f32 %v930_v23, %v1442_v24  ;;  %v1451_v23 = vld [vmem:[%s4441_s28 + $0x508] sm:$0xff] }
 0x179   : > { %v2457_v41 = vmul.f32 %v1944_v26, %v408_v30  ;;  %v2968_v49 = vmul.f32 %v2456_v34, %v1943_v19  ;;  %v931_v30 = vld [vmem:[%s4435_s5 + $0x4c8] sm:$0xff] }
 0x17a   : > { %v3467_v44 = vadd.f32 %v3466_v37, %v2956_v29  ;;  %v409_v37 = vld [vmem:[%s4428_s19 + $0x478] sm:$0xff]  ;;  %v1955_v39 = vsub.f32 %v931_v30, %v1443_v31  ;;  %v1452_v30 = vld [vmem:[%s4441_s28 + $0x510] sm:$0xff] }
 0x17b   : > { %v2458_v48 = vmul.f32 %v1945_v33, %v409_v37  ;;  %v2969_v56 = vmul.f32 %v2457_v41, %v1944_v26  ;;  %v932_v37 = vld [vmem:[%s4435_s5 + $0x4d0] sm:$0xff] }
 0x17c   : > { %v3468_v51 = vadd.f32 %v3467_v44, %v2957_v36  ;;  %v410_v44 = vld [vmem:[%s4428_s19 + $0x480] sm:$0xff]  ;;  %v1956_v46 = vsub.f32 %v932_v37, %v1444_v38  ;;  %v1453_v37 = vld [vmem:[%s4441_s28 + $0x518] sm:$0xff] }
 0x17d   : > { %v2459_v55 = vmul.f32 %v1946_v40, %v410_v44  ;;  %v2970_v63 = vmul.f32 %v2458_v48, %v1945_v33  ;;  %v933_v44 = vld [vmem:[%s4435_s5 + $0x4d8] sm:$0xff] }
 0x17e   : > { %v3469_v58 = vadd.f32 %v3468_v51, %v2958_v43  ;;  %v411_v51 = vld [vmem:[%s4428_s19 + $0x488] sm:$0xff]  ;;  %v1957_v53 = vsub.f32 %v933_v44, %v1445_v45  ;;  %v1454_v44 = vld [vmem:[%s4441_s28 + $0x520] sm:$0xff] }
 0x17f   : > { %v2460_v62 = vmul.f32 %v1947_v47, %v411_v51  ;;  %v2971_v6 = vmul.f32 %v2459_v55, %v1946_v40  ;;  %v934_v51 = vld [vmem:[%s4435_s5 + $0x4e0] sm:$0xff] }
 0x180   : > { %v3470_v1 = vadd.f32 %v3469_v58, %v2959_v50  ;;  %v412_v58 = vld [vmem:[%s4428_s19 + $0x490] sm:$0xff]  ;;  %v1958_v60 = vsub.f32 %v934_v51, %v1446_v52  ;;  %v1455_v51 = vld [vmem:[%s4441_s28 + $0x528] sm:$0xff] }
 0x181   : > { %v2461_v5 = vmul.f32 %v1948_v54, %v412_v58  ;;  %v2972_v13 = vmul.f32 %v2460_v62, %v1947_v47  ;;  %v935_v58 = vld [vmem:[%s4435_s5 + $0x4e8] sm:$0xff] }
 0x182   : > { %v3471_v8 = vadd.f32 %v3470_v1, %v2960_v57  ;;  %v413_v1 = vld [vmem:[%s4428_s19 + $0x498] sm:$0xff]  ;;  %v1959_v3 = vsub.f32 %v935_v58, %v1447_v59  ;;  %v1456_v58 = vld [vmem:[%s4441_s28 + $0x530] sm:$0xff] }
 0x183   : > { %v2462_v12 = vmul.f32 %v1949_v61, %v413_v1  ;;  %v2973_v20 = vmul.f32 %v2461_v5, %v1948_v54  ;;  %v936_v1 = vld [vmem:[%s4435_s5 + $0x4f0] sm:$0xff] }
 0x184   : > { %v3472_v15 = vadd.f32 %v3471_v8, %v2961_v0  ;;  %v414_v8 = vld [vmem:[%s4428_s19 + $0x4a0] sm:$0xff]  ;;  %v1960_v10 = vsub.f32 %v936_v1, %v1448_v2  ;;  %v1457_v1 = vld [vmem:[%s4441_s28 + $0x538] sm:$0xff] }
 0x185   : > { %v2463_v19 = vmul.f32 %v1950_v4, %v414_v8  ;;  %v2974_v27 = vmul.f32 %v2462_v12, %v1949_v61  ;;  %v937_v8 = vld [vmem:[%s4435_s5 + $0x4f8] sm:$0xff] }
 0x186   : > { %v3473_v22 = vadd.f32 %v3472_v15, %v2962_v7  ;;  %v415_v15 = vld [vmem:[%s4428_s19 + $0x4a8] sm:$0xff]  ;;  %v1961_v17 = vsub.f32 %v937_v8, %v1449_v9  ;;  %v1458_v8 = vld [vmem:[%s4441_s28 + $0x540] sm:$0xff] }
 0x187   : > { %v2464_v26 = vmul.f32 %v1951_v11, %v415_v15  ;;  %v2975_v34 = vmul.f32 %v2463_v19, %v1950_v4  ;;  %v938_v15 = vld [vmem:[%s4435_s5 + $0x500] sm:$0xff] }
 0x188   : > { %v3474_v29 = vadd.f32 %v3473_v22, %v2963_v14  ;;  %v416_v22 = vld [vmem:[%s4428_s19 + $0x4b0] sm:$0xff]  ;;  %v1962_v24 = vsub.f32 %v938_v15, %v1450_v16  ;;  %v1459_v15 = vld [vmem:[%s4441_s28 + $0x548] sm:$0xff] }
 0x189   : > { %v2465_v33 = vmul.f32 %v1952_v18, %v416_v22  ;;  %v2976_v41 = vmul.f32 %v2464_v26, %v1951_v11  ;;  %v939_v22 = vld [vmem:[%s4435_s5 + $0x508] sm:$0xff] }
 0x18a   : > { %v3475_v36 = vadd.f32 %v3474_v29, %v2964_v21  ;;  %v417_v29 = vld [vmem:[%s4428_s19 + $0x4b8] sm:$0xff]  ;;  %v1963_v31 = vsub.f32 %v939_v22, %v1451_v23  ;;  %v1460_v22 = vld [vmem:[%s4441_s28 + $0x550] sm:$0xff] }
 0x18b   : > { %v2466_v40 = vmul.f32 %v1953_v25, %v417_v29  ;;  %v2977_v48 = vmul.f32 %v2465_v33, %v1952_v18  ;;  %v940_v29 = vld [vmem:[%s4435_s5 + $0x510] sm:$0xff] }
 0x18c   : > { %v3476_v43 = vadd.f32 %v3475_v36, %v2965_v28  ;;  %v418_v36 = vld [vmem:[%s4428_s19 + $0x4c0] sm:$0xff]  ;;  %v1964_v38 = vsub.f32 %v940_v29, %v1452_v30  ;;  %v1461_v29 = vld [vmem:[%s4441_s28 + $0x558] sm:$0xff] }
 0x18d   : > { %v2467_v47 = vmul.f32 %v1954_v32, %v418_v36  ;;  %v2978_v55 = vmul.f32 %v2466_v40, %v1953_v25  ;;  %v941_v36 = vld [vmem:[%s4435_s5 + $0x518] sm:$0xff] }
 0x18e   : > { %v3477_v50 = vadd.f32 %v3476_v43, %v2966_v35  ;;  %v419_v43 = vld [vmem:[%s4428_s19 + $0x4c8] sm:$0xff]  ;;  %v1965_v45 = vsub.f32 %v941_v36, %v1453_v37  ;;  %v1462_v36 = vld [vmem:[%s4441_s28 + $0x560] sm:$0xff] }
 0x18f   : > { %v2468_v54 = vmul.f32 %v1955_v39, %v419_v43  ;;  %v2979_v62 = vmul.f32 %v2467_v47, %v1954_v32  ;;  %v942_v43 = vld [vmem:[%s4435_s5 + $0x520] sm:$0xff] }
 0x190   : > { %v3478_v57 = vadd.f32 %v3477_v50, %v2967_v42  ;;  %v420_v50 = vld [vmem:[%s4428_s19 + $0x4d0] sm:$0xff]  ;;  %v1966_v52 = vsub.f32 %v942_v43, %v1454_v44  ;;  %v1463_v43 = vld [vmem:[%s4441_s28 + $0x568] sm:$0xff] }
 0x191   : > { %v2469_v61 = vmul.f32 %v1956_v46, %v420_v50  ;;  %v2980_v5 = vmul.f32 %v2468_v54, %v1955_v39  ;;  %v943_v50 = vld [vmem:[%s4435_s5 + $0x528] sm:$0xff] }
 0x192   : > { %v3479_v0 = vadd.f32 %v3478_v57, %v2968_v49  ;;  %v421_v57 = vld [vmem:[%s4428_s19 + $0x4d8] sm:$0xff]  ;;  %v1967_v59 = vsub.f32 %v943_v50, %v1455_v51  ;;  %v1464_v50 = vld [vmem:[%s4441_s28 + $0x570] sm:$0xff] }
 0x193   : > { %v2470_v4 = vmul.f32 %v1957_v53, %v421_v57  ;;  %v2981_v12 = vmul.f32 %v2469_v61, %v1956_v46  ;;  %v944_v57 = vld [vmem:[%s4435_s5 + $0x530] sm:$0xff] }
 0x194   : > { %v3480_v7 = vadd.f32 %v3479_v0, %v2969_v56  ;;  %v422_v0 = vld [vmem:[%s4428_s19 + $0x4e0] sm:$0xff]  ;;  %v1968_v2 = vsub.f32 %v944_v57, %v1456_v58  ;;  %v1465_v57 = vld [vmem:[%s4441_s28 + $0x578] sm:$0xff] }
 0x195   : > { %v2471_v11 = vmul.f32 %v1958_v60, %v422_v0  ;;  %v2982_v19 = vmul.f32 %v2470_v4, %v1957_v53  ;;  %v945_v0 = vld [vmem:[%s4435_s5 + $0x538] sm:$0xff] }
 0x196   : > { %v3481_v14 = vadd.f32 %v3480_v7, %v2970_v63  ;;  %v423_v7 = vld [vmem:[%s4428_s19 + $0x4e8] sm:$0xff]  ;;  %v1969_v9 = vsub.f32 %v945_v0, %v1457_v1  ;;  %v1466_v0 = vld [vmem:[%s4441_s28 + $0x580] sm:$0xff] }
 0x197   : > { %v2472_v18 = vmul.f32 %v1959_v3, %v423_v7  ;;  %v2983_v26 = vmul.f32 %v2471_v11, %v1958_v60  ;;  %v946_v7 = vld [vmem:[%s4435_s5 + $0x540] sm:$0xff] }
 0x198   : > { %v3482_v21 = vadd.f32 %v3481_v14, %v2971_v6  ;;  %v424_v14 = vld [vmem:[%s4428_s19 + $0x4f0] sm:$0xff]  ;;  %v1970_v16 = vsub.f32 %v946_v7, %v1458_v8  ;;  %v1467_v7 = vld [vmem:[%s4441_s28 + $0x588] sm:$0xff] }
 0x199   : > { %v2473_v25 = vmul.f32 %v1960_v10, %v424_v14  ;;  %v2984_v33 = vmul.f32 %v2472_v18, %v1959_v3  ;;  %v947_v14 = vld [vmem:[%s4435_s5 + $0x548] sm:$0xff] }
 0x19a   : > { %v3483_v28 = vadd.f32 %v3482_v21, %v2972_v13  ;;  %v425_v21 = vld [vmem:[%s4428_s19 + $0x4f8] sm:$0xff]  ;;  %v1971_v23 = vsub.f32 %v947_v14, %v1459_v15  ;;  %v1468_v14 = vld [vmem:[%s4441_s28 + $0x590] sm:$0xff] }
 0x19b   : > { %v2474_v32 = vmul.f32 %v1961_v17, %v425_v21  ;;  %v2985_v40 = vmul.f32 %v2473_v25, %v1960_v10  ;;  %v948_v21 = vld [vmem:[%s4435_s5 + $0x550] sm:$0xff] }
 0x19c   : > { %v3484_v35 = vadd.f32 %v3483_v28, %v2973_v20  ;;  %v426_v28 = vld [vmem:[%s4428_s19 + $0x500] sm:$0xff]  ;;  %v1972_v30 = vsub.f32 %v948_v21, %v1460_v22  ;;  %v1469_v21 = vld [vmem:[%s4441_s28 + $0x598] sm:$0xff] }
 0x19d   : > { %v2475_v39 = vmul.f32 %v1962_v24, %v426_v28  ;;  %v2986_v47 = vmul.f32 %v2474_v32, %v1961_v17  ;;  %v949_v28 = vld [vmem:[%s4435_s5 + $0x558] sm:$0xff] }
 0x19e   : > { %v3485_v42 = vadd.f32 %v3484_v35, %v2974_v27  ;;  %v427_v35 = vld [vmem:[%s4428_s19 + $0x508] sm:$0xff]  ;;  %v1973_v37 = vsub.f32 %v949_v28, %v1461_v29  ;;  %v1470_v28 = vld [vmem:[%s4441_s28 + $0x5a0] sm:$0xff] }
 0x19f   : > { %v2476_v46 = vmul.f32 %v1963_v31, %v427_v35  ;;  %v2987_v54 = vmul.f32 %v2475_v39, %v1962_v24  ;;  %v950_v35 = vld [vmem:[%s4435_s5 + $0x560] sm:$0xff] }
 0x1a0   : > { %v3486_v49 = vadd.f32 %v3485_v42, %v2975_v34  ;;  %v428_v42 = vld [vmem:[%s4428_s19 + $0x510] sm:$0xff]  ;;  %v1974_v44 = vsub.f32 %v950_v35, %v1462_v36  ;;  %v1471_v35 = vld [vmem:[%s4441_s28 + $0x5a8] sm:$0xff] }
 0x1a1   : > { %v2477_v53 = vmul.f32 %v1964_v38, %v428_v42  ;;  %v2988_v61 = vmul.f32 %v2476_v46, %v1963_v31  ;;  %v951_v42 = vld [vmem:[%s4435_s5 + $0x568] sm:$0xff] }
 0x1a2   : > { %v3487_v56 = vadd.f32 %v3486_v49, %v2976_v41  ;;  %v429_v49 = vld [vmem:[%s4428_s19 + $0x518] sm:$0xff]  ;;  %v1975_v51 = vsub.f32 %v951_v42, %v1463_v43  ;;  %v1472_v42 = vld [vmem:[%s4441_s28 + $0x5b0] sm:$0xff] }
 0x1a3   : > { %v2478_v60 = vmul.f32 %v1965_v45, %v429_v49  ;;  %v2989_v4 = vmul.f32 %v2477_v53, %v1964_v38  ;;  %v952_v49 = vld [vmem:[%s4435_s5 + $0x570] sm:$0xff] }
 0x1a4   : > { %v3488_v63 = vadd.f32 %v3487_v56, %v2977_v48  ;;  %v430_v56 = vld [vmem:[%s4428_s19 + $0x520] sm:$0xff]  ;;  %v1976_v58 = vsub.f32 %v952_v49, %v1464_v50  ;;  %v1473_v49 = vld [vmem:[%s4441_s28 + $0x5b8] sm:$0xff] }
 0x1a5   : > { %v2479_v3 = vmul.f32 %v1966_v52, %v430_v56  ;;  %v2990_v11 = vmul.f32 %v2478_v60, %v1965_v45  ;;  %v953_v56 = vld [vmem:[%s4435_s5 + $0x578] sm:$0xff] }
 0x1a6   : > { %v3489_v6 = vadd.f32 %v3488_v63, %v2978_v55  ;;  %v431_v63 = vld [vmem:[%s4428_s19 + $0x528] sm:$0xff]  ;;  %v1977_v1 = vsub.f32 %v953_v56, %v1465_v57  ;;  %v1474_v56 = vld [vmem:[%s4441_s28 + $0x5c0] sm:$0xff] }
 0x1a7   : > { %v2480_v10 = vmul.f32 %v1967_v59, %v431_v63  ;;  %v2991_v18 = vmul.f32 %v2479_v3, %v1966_v52  ;;  %v954_v63 = vld [vmem:[%s4435_s5 + $0x580] sm:$0xff] }
 0x1a8   : > { %v3490_v13 = vadd.f32 %v3489_v6, %v2979_v62  ;;  %v432_v6 = vld [vmem:[%s4428_s19 + $0x530] sm:$0xff]  ;;  %v1978_v8 = vsub.f32 %v954_v63, %v1466_v0  ;;  %v1475_v63 = vld [vmem:[%s4441_s28 + $0x5c8] sm:$0xff] }
 0x1a9   : > { %v2481_v17 = vmul.f32 %v1968_v2, %v432_v6  ;;  %v2992_v25 = vmul.f32 %v2480_v10, %v1967_v59  ;;  %v955_v6 = vld [vmem:[%s4435_s5 + $0x588] sm:$0xff] }
 0x1aa   : > { %v3491_v20 = vadd.f32 %v3490_v13, %v2980_v5  ;;  %v433_v13 = vld [vmem:[%s4428_s19 + $0x538] sm:$0xff]  ;;  %v1979_v15 = vsub.f32 %v955_v6, %v1467_v7  ;;  %v1476_v6 = vld [vmem:[%s4441_s28 + $0x5d0] sm:$0xff] }
 0x1ab   : > { %v2482_v24 = vmul.f32 %v1969_v9, %v433_v13  ;;  %v2993_v32 = vmul.f32 %v2481_v17, %v1968_v2  ;;  %v956_v13 = vld [vmem:[%s4435_s5 + $0x590] sm:$0xff] }
 0x1ac   : > { %v3492_v27 = vadd.f32 %v3491_v20, %v2981_v12  ;;  %v434_v20 = vld [vmem:[%s4428_s19 + $0x540] sm:$0xff]  ;;  %v1980_v22 = vsub.f32 %v956_v13, %v1468_v14  ;;  %v1477_v13 = vld [vmem:[%s4441_s28 + $0x5d8] sm:$0xff] }
 0x1ad   : > { %v2483_v31 = vmul.f32 %v1970_v16, %v434_v20  ;;  %v2994_v39 = vmul.f32 %v2482_v24, %v1969_v9  ;;  %v957_v20 = vld [vmem:[%s4435_s5 + $0x598] sm:$0xff] }
 0x1ae   : > { %v3493_v34 = vadd.f32 %v3492_v27, %v2982_v19  ;;  %v435_v27 = vld [vmem:[%s4428_s19 + $0x548] sm:$0xff]  ;;  %v1981_v29 = vsub.f32 %v957_v20, %v1469_v21  ;;  %v1478_v20 = vld [vmem:[%s4441_s28 + $0x5e0] sm:$0xff] }
 0x1af   : > { %v2484_v38 = vmul.f32 %v1971_v23, %v435_v27  ;;  %v2995_v46 = vmul.f32 %v2483_v31, %v1970_v16  ;;  %v958_v27 = vld [vmem:[%s4435_s5 + $0x5a0] sm:$0xff] }
 0x1b0   : > { %v3494_v41 = vadd.f32 %v3493_v34, %v2983_v26  ;;  %v436_v34 = vld [vmem:[%s4428_s19 + $0x550] sm:$0xff]  ;;  %v1982_v36 = vsub.f32 %v958_v27, %v1470_v28  ;;  %v1479_v27 = vld [vmem:[%s4441_s28 + $0x5e8] sm:$0xff] }
 0x1b1   : > { %v2485_v45 = vmul.f32 %v1972_v30, %v436_v34  ;;  %v2996_v53 = vmul.f32 %v2484_v38, %v1971_v23  ;;  %v959_v34 = vld [vmem:[%s4435_s5 + $0x5a8] sm:$0xff] }
 0x1b2   : > { %v3495_v48 = vadd.f32 %v3494_v41, %v2984_v33  ;;  %v437_v41 = vld [vmem:[%s4428_s19 + $0x558] sm:$0xff]  ;;  %v1983_v43 = vsub.f32 %v959_v34, %v1471_v35  ;;  %v1480_v34 = vld [vmem:[%s4441_s28 + $0x5f0] sm:$0xff] }
 0x1b3   : > { %v2486_v52 = vmul.f32 %v1973_v37, %v437_v41  ;;  %v2997_v60 = vmul.f32 %v2485_v45, %v1972_v30  ;;  %v960_v41 = vld [vmem:[%s4435_s5 + $0x5b0] sm:$0xff] }
 0x1b4   : > { %v3496_v55 = vadd.f32 %v3495_v48, %v2985_v40  ;;  %v438_v48 = vld [vmem:[%s4428_s19 + $0x560] sm:$0xff]  ;;  %v1984_v50 = vsub.f32 %v960_v41, %v1472_v42  ;;  %v1481_v41 = vld [vmem:[%s4441_s28 + $0x5f8] sm:$0xff] }
 0x1b5   : > { %v2487_v59 = vmul.f32 %v1974_v44, %v438_v48  ;;  %v2998_v3 = vmul.f32 %v2486_v52, %v1973_v37  ;;  %v961_v48 = vld [vmem:[%s4435_s5 + $0x5b8] sm:$0xff] }
 0x1b6   : > { %v3497_v62 = vadd.f32 %v3496_v55, %v2986_v47  ;;  %v439_v55 = vld [vmem:[%s4428_s19 + $0x568] sm:$0xff]  ;;  %v1985_v57 = vsub.f32 %v961_v48, %v1473_v49  ;;  %v1482_v48 = vld [vmem:[%s4441_s28 + $0x600] sm:$0xff] }
 0x1b7   : > { %v2488_v2 = vmul.f32 %v1975_v51, %v439_v55  ;;  %v2999_v10 = vmul.f32 %v2487_v59, %v1974_v44  ;;  %v962_v55 = vld [vmem:[%s4435_s5 + $0x5c0] sm:$0xff] }
 0x1b8   : > { %v3498_v5 = vadd.f32 %v3497_v62, %v2987_v54  ;;  %v440_v62 = vld [vmem:[%s4428_s19 + $0x570] sm:$0xff]  ;;  %v1986_v0 = vsub.f32 %v962_v55, %v1474_v56  ;;  %v1483_v55 = vld [vmem:[%s4441_s28 + $0x608] sm:$0xff] }
 0x1b9   : > { %v2489_v9 = vmul.f32 %v1976_v58, %v440_v62  ;;  %v3000_v17 = vmul.f32 %v2488_v2, %v1975_v51  ;;  %v963_v62 = vld [vmem:[%s4435_s5 + $0x5c8] sm:$0xff] }
 0x1ba   : > { %v3499_v12 = vadd.f32 %v3498_v5, %v2988_v61  ;;  %v441_v5 = vld [vmem:[%s4428_s19 + $0x578] sm:$0xff]  ;;  %v1987_v7 = vsub.f32 %v963_v62, %v1475_v63  ;;  %v1484_v62 = vld [vmem:[%s4441_s28 + $0x610] sm:$0xff] }
 0x1bb   : > { %v2490_v16 = vmul.f32 %v1977_v1, %v441_v5  ;;  %v3001_v24 = vmul.f32 %v2489_v9, %v1976_v58  ;;  %v964_v5 = vld [vmem:[%s4435_s5 + $0x5d0] sm:$0xff] }
 0x1bc   : > { %v3500_v19 = vadd.f32 %v3499_v12, %v2989_v4  ;;  %v442_v12 = vld [vmem:[%s4428_s19 + $0x580] sm:$0xff]  ;;  %v1988_v14 = vsub.f32 %v964_v5, %v1476_v6  ;;  %v1485_v5 = vld [vmem:[%s4441_s28 + $0x618] sm:$0xff] }
 0x1bd   : > { %v2491_v23 = vmul.f32 %v1978_v8, %v442_v12  ;;  %v3002_v31 = vmul.f32 %v2490_v16, %v1977_v1  ;;  %v965_v12 = vld [vmem:[%s4435_s5 + $0x5d8] sm:$0xff] }
 0x1be   : > { %v3501_v26 = vadd.f32 %v3500_v19, %v2990_v11  ;;  %v443_v19 = vld [vmem:[%s4428_s19 + $0x588] sm:$0xff]  ;;  %v1989_v21 = vsub.f32 %v965_v12, %v1477_v13  ;;  %v1486_v12 = vld [vmem:[%s4441_s28 + $0x620] sm:$0xff] }
 0x1bf   : > { %v2492_v30 = vmul.f32 %v1979_v15, %v443_v19  ;;  %v3003_v38 = vmul.f32 %v2491_v23, %v1978_v8  ;;  %v966_v19 = vld [vmem:[%s4435_s5 + $0x5e0] sm:$0xff] }
 0x1c0   : > { %v3502_v33 = vadd.f32 %v3501_v26, %v2991_v18  ;;  %v444_v26 = vld [vmem:[%s4428_s19 + $0x590] sm:$0xff]  ;;  %v1990_v28 = vsub.f32 %v966_v19, %v1478_v20  ;;  %v1487_v19 = vld [vmem:[%s4441_s28 + $0x628] sm:$0xff] }
 0x1c1   : > { %v2493_v37 = vmul.f32 %v1980_v22, %v444_v26  ;;  %v3004_v45 = vmul.f32 %v2492_v30, %v1979_v15  ;;  %v967_v26 = vld [vmem:[%s4435_s5 + $0x5e8] sm:$0xff] }
 0x1c2   : > { %v3503_v40 = vadd.f32 %v3502_v33, %v2992_v25  ;;  %v445_v33 = vld [vmem:[%s4428_s19 + $0x598] sm:$0xff]  ;;  %v1991_v35 = vsub.f32 %v967_v26, %v1479_v27  ;;  %v1488_v26 = vld [vmem:[%s4441_s28 + $0x630] sm:$0xff] }
 0x1c3   : > { %v2494_v44 = vmul.f32 %v1981_v29, %v445_v33  ;;  %v3005_v52 = vmul.f32 %v2493_v37, %v1980_v22  ;;  %v968_v33 = vld [vmem:[%s4435_s5 + $0x5f0] sm:$0xff] }
 0x1c4   : > { %v3504_v47 = vadd.f32 %v3503_v40, %v2993_v32  ;;  %v446_v40 = vld [vmem:[%s4428_s19 + $0x5a0] sm:$0xff]  ;;  %v1992_v42 = vsub.f32 %v968_v33, %v1480_v34  ;;  %v1489_v33 = vld [vmem:[%s4441_s28 + $0x638] sm:$0xff] }
 0x1c5   : > { %v2495_v51 = vmul.f32 %v1982_v36, %v446_v40  ;;  %v3006_v59 = vmul.f32 %v2494_v44, %v1981_v29  ;;  %v969_v40 = vld [vmem:[%s4435_s5 + $0x5f8] sm:$0xff] }
 0x1c6   : > { %v3505_v54 = vadd.f32 %v3504_v47, %v2994_v39  ;;  %v447_v47 = vld [vmem:[%s4428_s19 + $0x5a8] sm:$0xff]  ;;  %v1993_v49 = vsub.f32 %v969_v40, %v1481_v41  ;;  %v1490_v40 = vld [vmem:[%s4441_s28 + $0x640] sm:$0xff] }
 0x1c7   : > { %v2496_v58 = vmul.f32 %v1983_v43, %v447_v47  ;;  %v3007_v2 = vmul.f32 %v2495_v51, %v1982_v36  ;;  %v970_v47 = vld [vmem:[%s4435_s5 + $0x600] sm:$0xff] }
 0x1c8   : > { %v3506_v61 = vadd.f32 %v3505_v54, %v2995_v46  ;;  %v448_v54 = vld [vmem:[%s4428_s19 + $0x5b0] sm:$0xff]  ;;  %v1994_v56 = vsub.f32 %v970_v47, %v1482_v48  ;;  %v1491_v47 = vld [vmem:[%s4441_s28 + $0x648] sm:$0xff] }
 0x1c9   : > { %v2497_v1 = vmul.f32 %v1984_v50, %v448_v54  ;;  %v3008_v9 = vmul.f32 %v2496_v58, %v1983_v43  ;;  %v971_v54 = vld [vmem:[%s4435_s5 + $0x608] sm:$0xff] }
 0x1ca   : > { %v3507_v4 = vadd.f32 %v3506_v61, %v2996_v53  ;;  %v449_v61 = vld [vmem:[%s4428_s19 + $0x5b8] sm:$0xff]  ;;  %v1995_v63 = vsub.f32 %v971_v54, %v1483_v55  ;;  %v1492_v54 = vld [vmem:[%s4441_s28 + $0x650] sm:$0xff] }
 0x1cb   : > { %v2498_v8 = vmul.f32 %v1985_v57, %v449_v61  ;;  %v3009_v16 = vmul.f32 %v2497_v1, %v1984_v50  ;;  %v972_v61 = vld [vmem:[%s4435_s5 + $0x610] sm:$0xff] }
 0x1cc   : > { %v3508_v11 = vadd.f32 %v3507_v4, %v2997_v60  ;;  %v450_v4 = vld [vmem:[%s4428_s19 + $0x5c0] sm:$0xff]  ;;  %v1996_v6 = vsub.f32 %v972_v61, %v1484_v62  ;;  %v1493_v61 = vld [vmem:[%s4441_s28 + $0x658] sm:$0xff] }
 0x1cd   : > { %v2499_v15 = vmul.f32 %v1986_v0, %v450_v4  ;;  %v3010_v23 = vmul.f32 %v2498_v8, %v1985_v57  ;;  %v973_v4 = vld [vmem:[%s4435_s5 + $0x618] sm:$0xff] }
 0x1ce   : > { %v3509_v18 = vadd.f32 %v3508_v11, %v2998_v3  ;;  %v451_v11 = vld [vmem:[%s4428_s19 + $0x5c8] sm:$0xff]  ;;  %v1997_v13 = vsub.f32 %v973_v4, %v1485_v5  ;;  %v1494_v4 = vld [vmem:[%s4441_s28 + $0x660] sm:$0xff] }
 0x1cf   : > { %v2500_v22 = vmul.f32 %v1987_v7, %v451_v11  ;;  %v3011_v30 = vmul.f32 %v2499_v15, %v1986_v0  ;;  %v974_v11 = vld [vmem:[%s4435_s5 + $0x620] sm:$0xff] }
 0x1d0   : > { %v3510_v25 = vadd.f32 %v3509_v18, %v2999_v10  ;;  %v452_v18 = vld [vmem:[%s4428_s19 + $0x5d0] sm:$0xff]  ;;  %v1998_v20 = vsub.f32 %v974_v11, %v1486_v12  ;;  %v1495_v11 = vld [vmem:[%s4441_s28 + $0x668] sm:$0xff] }
 0x1d1   : > { %v2501_v29 = vmul.f32 %v1988_v14, %v452_v18  ;;  %v3012_v37 = vmul.f32 %v2500_v22, %v1987_v7  ;;  %v975_v18 = vld [vmem:[%s4435_s5 + $0x628] sm:$0xff] }
 0x1d2   : > { %v3511_v32 = vadd.f32 %v3510_v25, %v3000_v17  ;;  %v453_v25 = vld [vmem:[%s4428_s19 + $0x5d8] sm:$0xff]  ;;  %v1999_v27 = vsub.f32 %v975_v18, %v1487_v19  ;;  %v1496_v18 = vld [vmem:[%s4441_s28 + $0x670] sm:$0xff] }
 0x1d3   : > { %v2502_v36 = vmul.f32 %v1989_v21, %v453_v25  ;;  %v3013_v44 = vmul.f32 %v2501_v29, %v1988_v14  ;;  %v976_v25 = vld [vmem:[%s4435_s5 + $0x630] sm:$0xff] }
 0x1d4   : > { %v3512_v39 = vadd.f32 %v3511_v32, %v3001_v24  ;;  %v454_v32 = vld [vmem:[%s4428_s19 + $0x5e0] sm:$0xff]  ;;  %v2000_v34 = vsub.f32 %v976_v25, %v1488_v26  ;;  %v1497_v25 = vld [vmem:[%s4441_s28 + $0x678] sm:$0xff] }
 0x1d5   : > { %v2503_v43 = vmul.f32 %v1990_v28, %v454_v32  ;;  %v3014_v51 = vmul.f32 %v2502_v36, %v1989_v21  ;;  %v977_v32 = vld [vmem:[%s4435_s5 + $0x638] sm:$0xff] }
 0x1d6   : > { %v3513_v46 = vadd.f32 %v3512_v39, %v3002_v31  ;;  %v455_v39 = vld [vmem:[%s4428_s19 + $0x5e8] sm:$0xff]  ;;  %v2001_v41 = vsub.f32 %v977_v32, %v1489_v33  ;;  %v1498_v32 = vld [vmem:[%s4441_s28 + $0x680] sm:$0xff] }
 0x1d7   : > { %v2504_v50 = vmul.f32 %v1991_v35, %v455_v39  ;;  %v3015_v58 = vmul.f32 %v2503_v43, %v1990_v28  ;;  %v978_v39 = vld [vmem:[%s4435_s5 + $0x640] sm:$0xff] }
 0x1d8   : > { %v3514_v53 = vadd.f32 %v3513_v46, %v3003_v38  ;;  %v456_v46 = vld [vmem:[%s4428_s19 + $0x5f0] sm:$0xff]  ;;  %v2002_v48 = vsub.f32 %v978_v39, %v1490_v40  ;;  %v1499_v39 = vld [vmem:[%s4441_s28 + $0x688] sm:$0xff] }
 0x1d9   : > { %v2505_v57 = vmul.f32 %v1992_v42, %v456_v46  ;;  %v3016_v1 = vmul.f32 %v2504_v50, %v1991_v35  ;;  %v979_v46 = vld [vmem:[%s4435_s5 + $0x648] sm:$0xff] }
 0x1da   : > { %v3515_v60 = vadd.f32 %v3514_v53, %v3004_v45  ;;  %v457_v53 = vld [vmem:[%s4428_s19 + $0x5f8] sm:$0xff]  ;;  %v2003_v55 = vsub.f32 %v979_v46, %v1491_v47  ;;  %v1500_v46 = vld [vmem:[%s4441_s28 + $0x690] sm:$0xff] }
 0x1db   : > { %v2506_v0 = vmul.f32 %v1993_v49, %v457_v53  ;;  %v3017_v8 = vmul.f32 %v2505_v57, %v1992_v42  ;;  %v980_v53 = vld [vmem:[%s4435_s5 + $0x650] sm:$0xff] }
 0x1dc   : > { %v3516_v3 = vadd.f32 %v3515_v60, %v3005_v52  ;;  %v458_v60 = vld [vmem:[%s4428_s19 + $0x600] sm:$0xff]  ;;  %v2004_v62 = vsub.f32 %v980_v53, %v1492_v54  ;;  %v1501_v53 = vld [vmem:[%s4441_s28 + $0x698] sm:$0xff] }
 0x1dd   : > { %v2507_v7 = vmul.f32 %v1994_v56, %v458_v60  ;;  %v3018_v15 = vmul.f32 %v2506_v0, %v1993_v49  ;;  %v981_v60 = vld [vmem:[%s4435_s5 + $0x658] sm:$0xff] }
 0x1de   : > { %v3517_v10 = vadd.f32 %v3516_v3, %v3006_v59  ;;  %v459_v3 = vld [vmem:[%s4428_s19 + $0x608] sm:$0xff]  ;;  %v2005_v5 = vsub.f32 %v981_v60, %v1493_v61  ;;  %v1502_v60 = vld [vmem:[%s4441_s28 + $0x6a0] sm:$0xff] }
 0x1df   : > { %v2508_v14 = vmul.f32 %v1995_v63, %v459_v3  ;;  %v3019_v22 = vmul.f32 %v2507_v7, %v1994_v56  ;;  %v982_v3 = vld [vmem:[%s4435_s5 + $0x660] sm:$0xff] }
 0x1e0   : > { %v3518_v17 = vadd.f32 %v3517_v10, %v3007_v2  ;;  %v460_v10 = vld [vmem:[%s4428_s19 + $0x610] sm:$0xff]  ;;  %v2006_v12 = vsub.f32 %v982_v3, %v1494_v4  ;;  %v1503_v3 = vld [vmem:[%s4441_s28 + $0x6a8] sm:$0xff] }
 0x1e1   : > { %v2509_v21 = vmul.f32 %v1996_v6, %v460_v10  ;;  %v3020_v29 = vmul.f32 %v2508_v14, %v1995_v63  ;;  %v983_v10 = vld [vmem:[%s4435_s5 + $0x668] sm:$0xff] }
 0x1e2   : > { %v3519_v24 = vadd.f32 %v3518_v17, %v3008_v9  ;;  %v461_v17 = vld [vmem:[%s4428_s19 + $0x618] sm:$0xff]  ;;  %v2007_v19 = vsub.f32 %v983_v10, %v1495_v11  ;;  %v1504_v10 = vld [vmem:[%s4441_s28 + $0x6b0] sm:$0xff] }
 0x1e3   : > { %v2510_v28 = vmul.f32 %v1997_v13, %v461_v17  ;;  %v3021_v36 = vmul.f32 %v2509_v21, %v1996_v6  ;;  %v984_v17 = vld [vmem:[%s4435_s5 + $0x670] sm:$0xff] }
 0x1e4   : > { %v3520_v31 = vadd.f32 %v3519_v24, %v3009_v16  ;;  %v462_v24 = vld [vmem:[%s4428_s19 + $0x620] sm:$0xff]  ;;  %v2008_v26 = vsub.f32 %v984_v17, %v1496_v18  ;;  %v1505_v17 = vld [vmem:[%s4441_s28 + $0x6b8] sm:$0xff] }
 0x1e5   : > { %v2511_v35 = vmul.f32 %v1998_v20, %v462_v24  ;;  %v3022_v43 = vmul.f32 %v2510_v28, %v1997_v13  ;;  %v985_v24 = vld [vmem:[%s4435_s5 + $0x678] sm:$0xff] }
 0x1e6   : > { %v3521_v38 = vadd.f32 %v3520_v31, %v3010_v23  ;;  %v463_v31 = vld [vmem:[%s4428_s19 + $0x628] sm:$0xff]  ;;  %v2009_v33 = vsub.f32 %v985_v24, %v1497_v25  ;;  %v1506_v24 = vld [vmem:[%s4441_s28 + $0x6c0] sm:$0xff] }
 0x1e7   : > { %v2512_v42 = vmul.f32 %v1999_v27, %v463_v31  ;;  %v3023_v50 = vmul.f32 %v2511_v35, %v1998_v20  ;;  %v986_v31 = vld [vmem:[%s4435_s5 + $0x680] sm:$0xff] }
 0x1e8   : > { %v3522_v45 = vadd.f32 %v3521_v38, %v3011_v30  ;;  %v464_v38 = vld [vmem:[%s4428_s19 + $0x630] sm:$0xff]  ;;  %v2010_v40 = vsub.f32 %v986_v31, %v1498_v32  ;;  %v1507_v31 = vld [vmem:[%s4441_s28 + $0x6c8] sm:$0xff] }
 0x1e9   : > { %v2513_v49 = vmul.f32 %v2000_v34, %v464_v38  ;;  %v3024_v57 = vmul.f32 %v2512_v42, %v1999_v27  ;;  %v987_v38 = vld [vmem:[%s4435_s5 + $0x688] sm:$0xff] }
 0x1ea   : > { %v3523_v52 = vadd.f32 %v3522_v45, %v3012_v37  ;;  %v465_v45 = vld [vmem:[%s4428_s19 + $0x638] sm:$0xff]  ;;  %v2011_v47 = vsub.f32 %v987_v38, %v1499_v39  ;;  %v1508_v38 = vld [vmem:[%s4441_s28 + $0x6d0] sm:$0xff] }
 0x1eb   : > { %v2514_v56 = vmul.f32 %v2001_v41, %v465_v45  ;;  %v3025_v0 = vmul.f32 %v2513_v49, %v2000_v34  ;;  %v988_v45 = vld [vmem:[%s4435_s5 + $0x690] sm:$0xff] }
 0x1ec   : > { %v3524_v59 = vadd.f32 %v3523_v52, %v3013_v44  ;;  %v466_v52 = vld [vmem:[%s4428_s19 + $0x640] sm:$0xff]  ;;  %v2012_v54 = vsub.f32 %v988_v45, %v1500_v46  ;;  %v1509_v45 = vld [vmem:[%s4441_s28 + $0x6d8] sm:$0xff] }
 0x1ed   : > { %v2515_v63 = vmul.f32 %v2002_v48, %v466_v52  ;;  %v3026_v7 = vmul.f32 %v2514_v56, %v2001_v41  ;;  %v989_v52 = vld [vmem:[%s4435_s5 + $0x698] sm:$0xff] }
 0x1ee   : > { %v3525_v2 = vadd.f32 %v3524_v59, %v3014_v51  ;;  %v467_v59 = vld [vmem:[%s4428_s19 + $0x648] sm:$0xff]  ;;  %v2013_v61 = vsub.f32 %v989_v52, %v1501_v53  ;;  %v1510_v52 = vld [vmem:[%s4441_s28 + $0x6e0] sm:$0xff] }
 0x1ef   : > { %v2516_v6 = vmul.f32 %v2003_v55, %v467_v59  ;;  %v3027_v14 = vmul.f32 %v2515_v63, %v2002_v48  ;;  %v990_v59 = vld [vmem:[%s4435_s5 + $0x6a0] sm:$0xff] }
 0x1f0   : > { %v3526_v9 = vadd.f32 %v3525_v2, %v3015_v58  ;;  %v468_v2 = vld [vmem:[%s4428_s19 + $0x650] sm:$0xff]  ;;  %v2014_v4 = vsub.f32 %v990_v59, %v1502_v60  ;;  %v1511_v59 = vld [vmem:[%s4441_s28 + $0x6e8] sm:$0xff] }
 0x1f1   : > { %v2517_v13 = vmul.f32 %v2004_v62, %v468_v2  ;;  %v3028_v21 = vmul.f32 %v2516_v6, %v2003_v55  ;;  %v991_v2 = vld [vmem:[%s4435_s5 + $0x6a8] sm:$0xff] }
 0x1f2   : > { %v3527_v16 = vadd.f32 %v3526_v9, %v3016_v1  ;;  %v469_v9 = vld [vmem:[%s4428_s19 + $0x658] sm:$0xff]  ;;  %v2015_v11 = vsub.f32 %v991_v2, %v1503_v3  ;;  %v1512_v2 = vld [vmem:[%s4441_s28 + $0x6f0] sm:$0xff] }
 0x1f3   : > { %v2518_v20 = vmul.f32 %v2005_v5, %v469_v9  ;;  %v3029_v28 = vmul.f32 %v2517_v13, %v2004_v62  ;;  %v992_v9 = vld [vmem:[%s4435_s5 + $0x6b0] sm:$0xff] }
 0x1f4   : > { %v3528_v23 = vadd.f32 %v3527_v16, %v3017_v8  ;;  %v470_v16 = vld [vmem:[%s4428_s19 + $0x660] sm:$0xff]  ;;  %v2016_v18 = vsub.f32 %v992_v9, %v1504_v10  ;;  %v1513_v9 = vld [vmem:[%s4441_s28 + $0x6f8] sm:$0xff] }
 0x1f5   : > { %v2519_v27 = vmul.f32 %v2006_v12, %v470_v16  ;;  %v3030_v35 = vmul.f32 %v2518_v20, %v2005_v5  ;;  %v993_v16 = vld [vmem:[%s4435_s5 + $0x6b8] sm:$0xff] }
 0x1f6   : > { %v3529_v30 = vadd.f32 %v3528_v23, %v3018_v15  ;;  %v471_v23 = vld [vmem:[%s4428_s19 + $0x668] sm:$0xff]  ;;  %v2017_v25 = vsub.f32 %v993_v16, %v1505_v17  ;;  %v1514_v16 = vld [vmem:[%s4441_s28 + $0x700] sm:$0xff] }
 0x1f7   : > { %v2520_v34 = vmul.f32 %v2007_v19, %v471_v23  ;;  %v3031_v42 = vmul.f32 %v2519_v27, %v2006_v12  ;;  %v994_v23 = vld [vmem:[%s4435_s5 + $0x6c0] sm:$0xff] }
 0x1f8   : > { %v3530_v37 = vadd.f32 %v3529_v30, %v3019_v22  ;;  %v472_v30 = vld [vmem:[%s4428_s19 + $0x670] sm:$0xff]  ;;  %v2018_v32 = vsub.f32 %v994_v23, %v1506_v24  ;;  %v1515_v23 = vld [vmem:[%s4441_s28 + $0x708] sm:$0xff] }
 0x1f9   : > { %v2521_v41 = vmul.f32 %v2008_v26, %v472_v30  ;;  %v3032_v49 = vmul.f32 %v2520_v34, %v2007_v19  ;;  %v995_v30 = vld [vmem:[%s4435_s5 + $0x6c8] sm:$0xff] }
 0x1fa   : > { %v3531_v44 = vadd.f32 %v3530_v37, %v3020_v29  ;;  %v473_v37 = vld [vmem:[%s4428_s19 + $0x678] sm:$0xff]  ;;  %v2019_v39 = vsub.f32 %v995_v30, %v1507_v31  ;;  %v1516_v30 = vld [vmem:[%s4441_s28 + $0x710] sm:$0xff] }
 0x1fb   : > { %v2522_v48 = vmul.f32 %v2009_v33, %v473_v37  ;;  %v3033_v56 = vmul.f32 %v2521_v41, %v2008_v26  ;;  %v996_v37 = vld [vmem:[%s4435_s5 + $0x6d0] sm:$0xff] }
 0x1fc   : > { %v3532_v51 = vadd.f32 %v3531_v44, %v3021_v36  ;;  %v474_v44 = vld [vmem:[%s4428_s19 + $0x680] sm:$0xff]  ;;  %v2020_v46 = vsub.f32 %v996_v37, %v1508_v38  ;;  %v1517_v37 = vld [vmem:[%s4441_s28 + $0x718] sm:$0xff] }
 0x1fd   : > { %v2523_v55 = vmul.f32 %v2010_v40, %v474_v44  ;;  %v3034_v63 = vmul.f32 %v2522_v48, %v2009_v33  ;;  %v997_v44 = vld [vmem:[%s4435_s5 + $0x6d8] sm:$0xff] }
 0x1fe   : > { %v3533_v58 = vadd.f32 %v3532_v51, %v3022_v43  ;;  %v475_v51 = vld [vmem:[%s4428_s19 + $0x688] sm:$0xff]  ;;  %v2021_v53 = vsub.f32 %v997_v44, %v1509_v45  ;;  %v1518_v44 = vld [vmem:[%s4441_s28 + $0x720] sm:$0xff] }
 0x1ff   : > { %v2524_v62 = vmul.f32 %v2011_v47, %v475_v51  ;;  %v3035_v6 = vmul.f32 %v2523_v55, %v2010_v40  ;;  %v998_v51 = vld [vmem:[%s4435_s5 + $0x6e0] sm:$0xff] }
 0x200   : > { %v3534_v1 = vadd.f32 %v3533_v58, %v3023_v50  ;;  %v476_v58 = vld [vmem:[%s4428_s19 + $0x690] sm:$0xff]  ;;  %v2022_v60 = vsub.f32 %v998_v51, %v1510_v52  ;;  %v1519_v51 = vld [vmem:[%s4441_s28 + $0x728] sm:$0xff] }
 0x201   : > { %v2525_v5 = vmul.f32 %v2012_v54, %v476_v58  ;;  %v3036_v13 = vmul.f32 %v2524_v62, %v2011_v47  ;;  %v999_v58 = vld [vmem:[%s4435_s5 + $0x6e8] sm:$0xff] }
 0x202   : > { %v3535_v8 = vadd.f32 %v3534_v1, %v3024_v57  ;;  %v477_v1 = vld [vmem:[%s4428_s19 + $0x698] sm:$0xff]  ;;  %v2023_v3 = vsub.f32 %v999_v58, %v1511_v59  ;;  %v1520_v58 = vld [vmem:[%s4441_s28 + $0x730] sm:$0xff] }
 0x203   : > { %v2526_v12 = vmul.f32 %v2013_v61, %v477_v1  ;;  %v3037_v20 = vmul.f32 %v2525_v5, %v2012_v54  ;;  %v1000_v1 = vld [vmem:[%s4435_s5 + $0x6f0] sm:$0xff] }
 0x204   : > { %v3536_v15 = vadd.f32 %v3535_v8, %v3025_v0  ;;  %v478_v8 = vld [vmem:[%s4428_s19 + $0x6a0] sm:$0xff]  ;;  %v2024_v10 = vsub.f32 %v1000_v1, %v1512_v2  ;;  %v1521_v1 = vld [vmem:[%s4441_s28 + $0x738] sm:$0xff] }
 0x205   : > { %v2527_v19 = vmul.f32 %v2014_v4, %v478_v8  ;;  %v3038_v27 = vmul.f32 %v2526_v12, %v2013_v61  ;;  %v1001_v8 = vld [vmem:[%s4435_s5 + $0x6f8] sm:$0xff] }
 0x206   : > { %v3537_v22 = vadd.f32 %v3536_v15, %v3026_v7  ;;  %v479_v15 = vld [vmem:[%s4428_s19 + $0x6a8] sm:$0xff]  ;;  %v2025_v17 = vsub.f32 %v1001_v8, %v1513_v9  ;;  %v1522_v8 = vld [vmem:[%s4441_s28 + $0x740] sm:$0xff] }
 0x207   : > { %v2528_v26 = vmul.f32 %v2015_v11, %v479_v15  ;;  %v3039_v34 = vmul.f32 %v2527_v19, %v2014_v4  ;;  %v1002_v15 = vld [vmem:[%s4435_s5 + $0x700] sm:$0xff] }
 0x208   : > { %v3538_v29 = vadd.f32 %v3537_v22, %v3027_v14  ;;  %v480_v22 = vld [vmem:[%s4428_s19 + $0x6b0] sm:$0xff]  ;;  %v2026_v24 = vsub.f32 %v1002_v15, %v1514_v16  ;;  %v1523_v15 = vld [vmem:[%s4441_s28 + $0x748] sm:$0xff] }
 0x209   : > { %v2529_v33 = vmul.f32 %v2016_v18, %v480_v22  ;;  %v3040_v41 = vmul.f32 %v2528_v26, %v2015_v11  ;;  %v1003_v22 = vld [vmem:[%s4435_s5 + $0x708] sm:$0xff] }
 0x20a   : > { %v3539_v36 = vadd.f32 %v3538_v29, %v3028_v21  ;;  %v481_v29 = vld [vmem:[%s4428_s19 + $0x6b8] sm:$0xff]  ;;  %v2027_v31 = vsub.f32 %v1003_v22, %v1515_v23  ;;  %v1524_v22 = vld [vmem:[%s4441_s28 + $0x750] sm:$0xff] }
 0x20b   : > { %v2530_v40 = vmul.f32 %v2017_v25, %v481_v29  ;;  %v3041_v48 = vmul.f32 %v2529_v33, %v2016_v18  ;;  %v1004_v29 = vld [vmem:[%s4435_s5 + $0x710] sm:$0xff] }
 0x20c   : > { %v3540_v43 = vadd.f32 %v3539_v36, %v3029_v28  ;;  %v482_v36 = vld [vmem:[%s4428_s19 + $0x6c0] sm:$0xff]  ;;  %v2028_v38 = vsub.f32 %v1004_v29, %v1516_v30  ;;  %v1525_v29 = vld [vmem:[%s4441_s28 + $0x758] sm:$0xff] }
 0x20d   : > { %v2531_v47 = vmul.f32 %v2018_v32, %v482_v36  ;;  %v3042_v55 = vmul.f32 %v2530_v40, %v2017_v25  ;;  %v1005_v36 = vld [vmem:[%s4435_s5 + $0x718] sm:$0xff] }
 0x20e   : > { %v3541_v50 = vadd.f32 %v3540_v43, %v3030_v35  ;;  %v483_v43 = vld [vmem:[%s4428_s19 + $0x6c8] sm:$0xff]  ;;  %v2029_v45 = vsub.f32 %v1005_v36, %v1517_v37  ;;  %v1526_v36 = vld [vmem:[%s4441_s28 + $0x760] sm:$0xff] }
 0x20f   : > { %v2532_v54 = vmul.f32 %v2019_v39, %v483_v43  ;;  %v3043_v62 = vmul.f32 %v2531_v47, %v2018_v32  ;;  %v1006_v43 = vld [vmem:[%s4435_s5 + $0x720] sm:$0xff] }
 0x210   : > { %v3542_v57 = vadd.f32 %v3541_v50, %v3031_v42  ;;  %v484_v50 = vld [vmem:[%s4428_s19 + $0x6d0] sm:$0xff]  ;;  %v2030_v52 = vsub.f32 %v1006_v43, %v1518_v44  ;;  %v1527_v43 = vld [vmem:[%s4441_s28 + $0x768] sm:$0xff] }
 0x211   : > { %v2533_v61 = vmul.f32 %v2020_v46, %v484_v50  ;;  %v3044_v5 = vmul.f32 %v2532_v54, %v2019_v39  ;;  %v1007_v50 = vld [vmem:[%s4435_s5 + $0x728] sm:$0xff] }
 0x212   : > { %v3543_v0 = vadd.f32 %v3542_v57, %v3032_v49  ;;  %v485_v57 = vld [vmem:[%s4428_s19 + $0x6d8] sm:$0xff]  ;;  %v2031_v59 = vsub.f32 %v1007_v50, %v1519_v51  ;;  %v1528_v50 = vld [vmem:[%s4441_s28 + $0x770] sm:$0xff] }
 0x213   : > { %v2534_v4 = vmul.f32 %v2021_v53, %v485_v57  ;;  %v3045_v12 = vmul.f32 %v2533_v61, %v2020_v46  ;;  %v1008_v57 = vld [vmem:[%s4435_s5 + $0x730] sm:$0xff] }
 0x214   : > { %v3544_v7 = vadd.f32 %v3543_v0, %v3033_v56  ;;  %v486_v0 = vld [vmem:[%s4428_s19 + $0x6e0] sm:$0xff]  ;;  %v2032_v2 = vsub.f32 %v1008_v57, %v1520_v58  ;;  %v1529_v57 = vld [vmem:[%s4441_s28 + $0x778] sm:$0xff] }
 0x215   : > { %v2535_v11 = vmul.f32 %v2022_v60, %v486_v0  ;;  %v3046_v19 = vmul.f32 %v2534_v4, %v2021_v53  ;;  %v1009_v0 = vld [vmem:[%s4435_s5 + $0x738] sm:$0xff] }
 0x216   : > { %v3545_v14 = vadd.f32 %v3544_v7, %v3034_v63  ;;  %v487_v7 = vld [vmem:[%s4428_s19 + $0x6e8] sm:$0xff]  ;;  %v2033_v9 = vsub.f32 %v1009_v0, %v1521_v1  ;;  %v1530_v0 = vld [vmem:[%s4441_s28 + $0x780] sm:$0xff] }
 0x217   : > { %v2536_v18 = vmul.f32 %v2023_v3, %v487_v7  ;;  %v3047_v26 = vmul.f32 %v2535_v11, %v2022_v60  ;;  %v1010_v7 = vld [vmem:[%s4435_s5 + $0x740] sm:$0xff] }
 0x218   : > { %v3546_v21 = vadd.f32 %v3545_v14, %v3035_v6  ;;  %v488_v14 = vld [vmem:[%s4428_s19 + $0x6f0] sm:$0xff]  ;;  %v2034_v16 = vsub.f32 %v1010_v7, %v1522_v8  ;;  %v1531_v7 = vld [vmem:[%s4441_s28 + $0x788] sm:$0xff] }
 0x219   : > { %v2537_v25 = vmul.f32 %v2024_v10, %v488_v14  ;;  %v3048_v33 = vmul.f32 %v2536_v18, %v2023_v3  ;;  %v1011_v14 = vld [vmem:[%s4435_s5 + $0x748] sm:$0xff] }
 0x21a   : > { %v3547_v28 = vadd.f32 %v3546_v21, %v3036_v13  ;;  %v489_v21 = vld [vmem:[%s4428_s19 + $0x6f8] sm:$0xff]  ;;  %v2035_v23 = vsub.f32 %v1011_v14, %v1523_v15  ;;  %v1532_v14 = vld [vmem:[%s4441_s28 + $0x790] sm:$0xff] }
 0x21b   : > { %v2538_v32 = vmul.f32 %v2025_v17, %v489_v21  ;;  %v3049_v40 = vmul.f32 %v2537_v25, %v2024_v10  ;;  %v1012_v21 = vld [vmem:[%s4435_s5 + $0x750] sm:$0xff] }
 0x21c   : > { %v3548_v35 = vadd.f32 %v3547_v28, %v3037_v20  ;;  %v490_v28 = vld [vmem:[%s4428_s19 + $0x700] sm:$0xff]  ;;  %v2036_v30 = vsub.f32 %v1012_v21, %v1524_v22  ;;  %v1533_v21 = vld [vmem:[%s4441_s28 + $0x798] sm:$0xff] }
 0x21d   : > { %v2539_v39 = vmul.f32 %v2026_v24, %v490_v28  ;;  %v3050_v47 = vmul.f32 %v2538_v32, %v2025_v17  ;;  %v1013_v28 = vld [vmem:[%s4435_s5 + $0x758] sm:$0xff] }
 0x21e   : > { %v3549_v42 = vadd.f32 %v3548_v35, %v3038_v27  ;;  %v491_v35 = vld [vmem:[%s4428_s19 + $0x708] sm:$0xff]  ;;  %v2037_v37 = vsub.f32 %v1013_v28, %v1525_v29  ;;  %v1534_v28 = vld [vmem:[%s4441_s28 + $0x7a0] sm:$0xff] }
 0x21f   : > { %v2540_v46 = vmul.f32 %v2027_v31, %v491_v35  ;;  %v3051_v54 = vmul.f32 %v2539_v39, %v2026_v24  ;;  %v1014_v35 = vld [vmem:[%s4435_s5 + $0x760] sm:$0xff] }
 0x220   : > { %v3550_v49 = vadd.f32 %v3549_v42, %v3039_v34  ;;  %v492_v42 = vld [vmem:[%s4428_s19 + $0x710] sm:$0xff]  ;;  %v2038_v44 = vsub.f32 %v1014_v35, %v1526_v36  ;;  %v1535_v35 = vld [vmem:[%s4441_s28 + $0x7a8] sm:$0xff] }
 0x221   : > { %v2541_v53 = vmul.f32 %v2028_v38, %v492_v42  ;;  %v3052_v61 = vmul.f32 %v2540_v46, %v2027_v31  ;;  %v1015_v42 = vld [vmem:[%s4435_s5 + $0x768] sm:$0xff] }
 0x222   : > { %v3551_v56 = vadd.f32 %v3550_v49, %v3040_v41  ;;  %v493_v49 = vld [vmem:[%s4428_s19 + $0x718] sm:$0xff]  ;;  %v2039_v51 = vsub.f32 %v1015_v42, %v1527_v43  ;;  %v1536_v42 = vld [vmem:[%s4441_s28 + $0x7b0] sm:$0xff] }
 0x223   : > { %v2542_v60 = vmul.f32 %v2029_v45, %v493_v49  ;;  %v3053_v4 = vmul.f32 %v2541_v53, %v2028_v38  ;;  %v1016_v49 = vld [vmem:[%s4435_s5 + $0x770] sm:$0xff] }
 0x224   : > { %v3552_v63 = vadd.f32 %v3551_v56, %v3041_v48  ;;  %v494_v56 = vld [vmem:[%s4428_s19 + $0x720] sm:$0xff]  ;;  %v2040_v58 = vsub.f32 %v1016_v49, %v1528_v50  ;;  %v1537_v49 = vld [vmem:[%s4441_s28 + $0x7b8] sm:$0xff] }
 0x225   : > { %v2543_v3 = vmul.f32 %v2030_v52, %v494_v56  ;;  %v3054_v11 = vmul.f32 %v2542_v60, %v2029_v45  ;;  %v1017_v56 = vld [vmem:[%s4435_s5 + $0x778] sm:$0xff] }
 0x226   : > { %v3553_v6 = vadd.f32 %v3552_v63, %v3042_v55  ;;  %v495_v63 = vld [vmem:[%s4428_s19 + $0x728] sm:$0xff]  ;;  %v2041_v1 = vsub.f32 %v1017_v56, %v1529_v57  ;;  %v1538_v56 = vld [vmem:[%s4441_s28 + $0x7c0] sm:$0xff] }
 0x227   : > { %v2544_v10 = vmul.f32 %v2031_v59, %v495_v63  ;;  %v3055_v18 = vmul.f32 %v2543_v3, %v2030_v52  ;;  %v1018_v63 = vld [vmem:[%s4435_s5 + $0x780] sm:$0xff] }
 0x228   : > { %v3554_v13 = vadd.f32 %v3553_v6, %v3043_v62  ;;  %v496_v6 = vld [vmem:[%s4428_s19 + $0x730] sm:$0xff]  ;;  %v2042_v8 = vsub.f32 %v1018_v63, %v1530_v0  ;;  %v1539_v63 = vld [vmem:[%s4441_s28 + $0x7c8] sm:$0xff] }
 0x229   : > { %v2545_v17 = vmul.f32 %v2032_v2, %v496_v6  ;;  %v3056_v25 = vmul.f32 %v2544_v10, %v2031_v59  ;;  %v1019_v6 = vld [vmem:[%s4435_s5 + $0x788] sm:$0xff] }
 0x22a   : > { %v3555_v20 = vadd.f32 %v3554_v13, %v3044_v5  ;;  %v497_v13 = vld [vmem:[%s4428_s19 + $0x738] sm:$0xff]  ;;  %v2043_v15 = vsub.f32 %v1019_v6, %v1531_v7  ;;  %v1540_v6 = vld [vmem:[%s4441_s28 + $0x7d0] sm:$0xff] }
 0x22b   : > { %v2546_v24 = vmul.f32 %v2033_v9, %v497_v13  ;;  %v3057_v32 = vmul.f32 %v2545_v17, %v2032_v2  ;;  %v1020_v13 = vld [vmem:[%s4435_s5 + $0x790] sm:$0xff] }
 0x22c   : > { %v3556_v27 = vadd.f32 %v3555_v20, %v3045_v12  ;;  %v498_v20 = vld [vmem:[%s4428_s19 + $0x740] sm:$0xff]  ;;  %v2044_v22 = vsub.f32 %v1020_v13, %v1532_v14  ;;  %v1541_v13 = vld [vmem:[%s4441_s28 + $0x7d8] sm:$0xff] }
 0x22d   : > { %v2547_v31 = vmul.f32 %v2034_v16, %v498_v20  ;;  %v3058_v39 = vmul.f32 %v2546_v24, %v2033_v9  ;;  %v1021_v20 = vld [vmem:[%s4435_s5 + $0x798] sm:$0xff] }
 0x22e   : > { %v3557_v34 = vadd.f32 %v3556_v27, %v3046_v19  ;;  %v499_v27 = vld [vmem:[%s4428_s19 + $0x748] sm:$0xff]  ;;  %v2045_v29 = vsub.f32 %v1021_v20, %v1533_v21  ;;  %v1542_v20 = vld [vmem:[%s4441_s28 + $0x7e0] sm:$0xff] }
 0x22f   : > { %v2548_v38 = vmul.f32 %v2035_v23, %v499_v27  ;;  %v3059_v46 = vmul.f32 %v2547_v31, %v2034_v16  ;;  %v1022_v27 = vld [vmem:[%s4435_s5 + $0x7a0] sm:$0xff] }
 0x230   : > { %v3558_v41 = vadd.f32 %v3557_v34, %v3047_v26  ;;  %v500_v34 = vld [vmem:[%s4428_s19 + $0x750] sm:$0xff]  ;;  %v2046_v36 = vsub.f32 %v1022_v27, %v1534_v28  ;;  %v1543_v27 = vld [vmem:[%s4441_s28 + $0x7e8] sm:$0xff] }
 0x231   : > { %v2549_v45 = vmul.f32 %v2036_v30, %v500_v34  ;;  %v3060_v53 = vmul.f32 %v2548_v38, %v2035_v23  ;;  %v1023_v34 = vld [vmem:[%s4435_s5 + $0x7a8] sm:$0xff] }
 0x232   : > { %v3559_v48 = vadd.f32 %v3558_v41, %v3048_v33  ;;  %v501_v41 = vld [vmem:[%s4428_s19 + $0x758] sm:$0xff]  ;;  %v2047_v43 = vsub.f32 %v1023_v34, %v1535_v35  ;;  %v1544_v34 = vld [vmem:[%s4441_s28 + $0x7f0] sm:$0xff] }
 0x233   : > { %v2550_v52 = vmul.f32 %v2037_v37, %v501_v41  ;;  %v3061_v60 = vmul.f32 %v2549_v45, %v2036_v30  ;;  %v1024_v41 = vld [vmem:[%s4435_s5 + $0x7b0] sm:$0xff] }
 0x234   : > { %v3560_v55 = vadd.f32 %v3559_v48, %v3049_v40  ;;  %v502_v48 = vld [vmem:[%s4428_s19 + $0x760] sm:$0xff]  ;;  %v2048_v50 = vsub.f32 %v1024_v41, %v1536_v42  ;;  %v1545_v41 = vld [vmem:[%s4441_s28 + $0x7f8] sm:$0xff] }
 0x235   : > { %v2551_v59 = vmul.f32 %v2038_v44, %v502_v48  ;;  %v3062_v3 = vmul.f32 %v2550_v52, %v2037_v37  ;;  %v1025_v48 = vld [vmem:[%s4435_s5 + $0x7b8] sm:$0xff] }
 0x236   : > { %v3561_v62 = vadd.f32 %v3560_v55, %v3050_v47  ;;  %v503_v55 = vld [vmem:[%s4428_s19 + $0x768] sm:$0xff]  ;;  %v2049_v57 = vsub.f32 %v1025_v48, %v1537_v49  ;;  %v1546_v48 = vld [vmem:[%s4441_s28 + $0x800] sm:$0xff] }
 0x237   : > { %v2552_v2 = vmul.f32 %v2039_v51, %v503_v55  ;;  %v3063_v10 = vmul.f32 %v2551_v59, %v2038_v44  ;;  %v1026_v55 = vld [vmem:[%s4435_s5 + $0x7c0] sm:$0xff] }
 0x238   : > { %v3562_v5 = vadd.f32 %v3561_v62, %v3051_v54  ;;  %v504_v62 = vld [vmem:[%s4428_s19 + $0x770] sm:$0xff]  ;;  %v2050_v0 = vsub.f32 %v1026_v55, %v1538_v56  ;;  %v1547_v55 = vld [vmem:[%s4441_s28 + $0x808] sm:$0xff] }
 0x239   : > { %v2553_v9 = vmul.f32 %v2040_v58, %v504_v62  ;;  %v3064_v17 = vmul.f32 %v2552_v2, %v2039_v51  ;;  %v1027_v62 = vld [vmem:[%s4435_s5 + $0x7c8] sm:$0xff] }
 0x23a   : > { %v3563_v12 = vadd.f32 %v3562_v5, %v3052_v61  ;;  %v505_v5 = vld [vmem:[%s4428_s19 + $0x778] sm:$0xff]  ;;  %v2051_v7 = vsub.f32 %v1027_v62, %v1539_v63  ;;  %v1548_v62 = vld [vmem:[%s4441_s28 + $0x810] sm:$0xff] }
 0x23b   : > { %v2554_v16 = vmul.f32 %v2041_v1, %v505_v5  ;;  %v3065_v24 = vmul.f32 %v2553_v9, %v2040_v58  ;;  %v1028_v5 = vld [vmem:[%s4435_s5 + $0x7d0] sm:$0xff] }
 0x23c   : > { %v3564_v19 = vadd.f32 %v3563_v12, %v3053_v4  ;;  %v506_v12 = vld [vmem:[%s4428_s19 + $0x780] sm:$0xff]  ;;  %v2052_v14 = vsub.f32 %v1028_v5, %v1540_v6  ;;  %v1549_v5 = vld [vmem:[%s4441_s28 + $0x818] sm:$0xff] }
 0x23d   : > { %v2555_v23 = vmul.f32 %v2042_v8, %v506_v12  ;;  %v3066_v31 = vmul.f32 %v2554_v16, %v2041_v1  ;;  %v1029_v12 = vld [vmem:[%s4435_s5 + $0x7d8] sm:$0xff] }
 0x23e   : > { %v3565_v26 = vadd.f32 %v3564_v19, %v3054_v11  ;;  %v507_v19 = vld [vmem:[%s4428_s19 + $0x788] sm:$0xff]  ;;  %v2053_v21 = vsub.f32 %v1029_v12, %v1541_v13  ;;  %v1550_v12 = vld [vmem:[%s4441_s28 + $0x820] sm:$0xff] }
 0x23f   : > { %v2556_v30 = vmul.f32 %v2043_v15, %v507_v19  ;;  %v3067_v38 = vmul.f32 %v2555_v23, %v2042_v8  ;;  %v1030_v19 = vld [vmem:[%s4435_s5 + $0x7e0] sm:$0xff] }
 0x240   : > { %v3566_v33 = vadd.f32 %v3565_v26, %v3055_v18  ;;  %v508_v26 = vld [vmem:[%s4428_s19 + $0x790] sm:$0xff]  ;;  %v2054_v28 = vsub.f32 %v1030_v19, %v1542_v20  ;;  %v1551_v19 = vld [vmem:[%s4441_s28 + $0x828] sm:$0xff] }
 0x241   : > { %v2557_v37 = vmul.f32 %v2044_v22, %v508_v26  ;;  %v3068_v45 = vmul.f32 %v2556_v30, %v2043_v15  ;;  %v1031_v26 = vld [vmem:[%s4435_s5 + $0x7e8] sm:$0xff] }
 0x242   : > { %v3567_v40 = vadd.f32 %v3566_v33, %v3056_v25  ;;  %v509_v33 = vld [vmem:[%s4428_s19 + $0x798] sm:$0xff]  ;;  %v2055_v35 = vsub.f32 %v1031_v26, %v1543_v27  ;;  %v1552_v26 = vld [vmem:[%s4441_s28 + $0x830] sm:$0xff] }
 0x243   : > { %v2558_v44 = vmul.f32 %v2045_v29, %v509_v33  ;;  %v3069_v52 = vmul.f32 %v2557_v37, %v2044_v22  ;;  %v1032_v33 = vld [vmem:[%s4435_s5 + $0x7f0] sm:$0xff] }
 0x244   : > { %v3568_v47 = vadd.f32 %v3567_v40, %v3057_v32  ;;  %v510_v40 = vld [vmem:[%s4428_s19 + $0x7a0] sm:$0xff]  ;;  %v2056_v42 = vsub.f32 %v1032_v33, %v1544_v34  ;;  %v1553_v33 = vld [vmem:[%s4441_s28 + $0x838] sm:$0xff] }
 0x245   : > { %v2559_v51 = vmul.f32 %v2046_v36, %v510_v40  ;;  %v3070_v59 = vmul.f32 %v2558_v44, %v2045_v29  ;;  %v1033_v40 = vld [vmem:[%s4435_s5 + $0x7f8] sm:$0xff] }
 0x246   : > { %v3569_v54 = vadd.f32 %v3568_v47, %v3058_v39  ;;  %v511_v47 = vld [vmem:[%s4428_s19 + $0x7a8] sm:$0xff]  ;;  %v2057_v49 = vsub.f32 %v1033_v40, %v1545_v41  ;;  %v1554_v40 = vld [vmem:[%s4441_s28 + $0x840] sm:$0xff] }
 0x247   : > { %v2560_v58 = vmul.f32 %v2047_v43, %v511_v47  ;;  %v3071_v2 = vmul.f32 %v2559_v51, %v2046_v36  ;;  %v1034_v47 = vld [vmem:[%s4435_s5 + $0x800] sm:$0xff] }
 0x248   : > { %v3570_v61 = vadd.f32 %v3569_v54, %v3059_v46  ;;  %v512_v54 = vld [vmem:[%s4428_s19 + $0x7b0] sm:$0xff]  ;;  %v2058_v56 = vsub.f32 %v1034_v47, %v1546_v48  ;;  %v1555_v47 = vld [vmem:[%s4441_s28 + $0x848] sm:$0xff] }
 0x249   : > { %v2561_v1 = vmul.f32 %v2048_v50, %v512_v54  ;;  %v3072_v9 = vmul.f32 %v2560_v58, %v2047_v43  ;;  %v1035_v54 = vld [vmem:[%s4435_s5 + $0x808] sm:$0xff] }
 0x24a   : > { %v3571_v4 = vadd.f32 %v3570_v61, %v3060_v53  ;;  %v513_v61 = vld [vmem:[%s4428_s19 + $0x7b8] sm:$0xff]  ;;  %v2059_v63 = vsub.f32 %v1035_v54, %v1547_v55  ;;  %v1556_v54 = vld [vmem:[%s4441_s28 + $0x850] sm:$0xff] }
 0x24b   : > { %v2562_v8 = vmul.f32 %v2049_v57, %v513_v61  ;;  %v3073_v16 = vmul.f32 %v2561_v1, %v2048_v50  ;;  %v1036_v61 = vld [vmem:[%s4435_s5 + $0x810] sm:$0xff] }
 0x24c   : > { %v3572_v11 = vadd.f32 %v3571_v4, %v3061_v60  ;;  %v514_v4 = vld [vmem:[%s4428_s19 + $0x7c0] sm:$0xff]  ;;  %v2060_v6 = vsub.f32 %v1036_v61, %v1548_v62  ;;  %v1557_v61 = vld [vmem:[%s4441_s28 + $0x858] sm:$0xff] }
 0x24d   : > { %v2563_v15 = vmul.f32 %v2050_v0, %v514_v4  ;;  %v3074_v23 = vmul.f32 %v2562_v8, %v2049_v57  ;;  %v1037_v4 = vld [vmem:[%s4435_s5 + $0x818] sm:$0xff] }
 0x24e   : > { %v3573_v18 = vadd.f32 %v3572_v11, %v3062_v3  ;;  %v515_v11 = vld [vmem:[%s4428_s19 + $0x7c8] sm:$0xff]  ;;  %v2061_v13 = vsub.f32 %v1037_v4, %v1549_v5  ;;  %v1558_v4 = vld [vmem:[%s4441_s28 + $0x860] sm:$0xff] }
 0x24f   : > { %v2564_v22 = vmul.f32 %v2051_v7, %v515_v11  ;;  %v3075_v30 = vmul.f32 %v2563_v15, %v2050_v0  ;;  %v1038_v11 = vld [vmem:[%s4435_s5 + $0x820] sm:$0xff] }
 0x250   : > { %v3574_v25 = vadd.f32 %v3573_v18, %v3063_v10  ;;  %v516_v18 = vld [vmem:[%s4428_s19 + $0x7d0] sm:$0xff]  ;;  %v2062_v20 = vsub.f32 %v1038_v11, %v1550_v12  ;;  %v1559_v11 = vld [vmem:[%s4441_s28 + $0x868] sm:$0xff] }
 0x251   : > { %v2565_v29 = vmul.f32 %v2052_v14, %v516_v18  ;;  %v3076_v37 = vmul.f32 %v2564_v22, %v2051_v7  ;;  %v1039_v18 = vld [vmem:[%s4435_s5 + $0x828] sm:$0xff] }
 0x252   : > { %v3575_v32 = vadd.f32 %v3574_v25, %v3064_v17  ;;  %v517_v25 = vld [vmem:[%s4428_s19 + $0x7d8] sm:$0xff]  ;;  %v2063_v27 = vsub.f32 %v1039_v18, %v1551_v19  ;;  %v1560_v18 = vld [vmem:[%s4441_s28 + $0x870] sm:$0xff] }
 0x253   : > { %v2566_v36 = vmul.f32 %v2053_v21, %v517_v25  ;;  %v3077_v44 = vmul.f32 %v2565_v29, %v2052_v14  ;;  %v1040_v25 = vld [vmem:[%s4435_s5 + $0x830] sm:$0xff] }
 0x254   : > { %v3576_v39 = vadd.f32 %v3575_v32, %v3065_v24  ;;  %v518_v32 = vld [vmem:[%s4428_s19 + $0x7e0] sm:$0xff]  ;;  %v2064_v34 = vsub.f32 %v1040_v25, %v1552_v26  ;;  %v1561_v25 = vld [vmem:[%s4441_s28 + $0x878] sm:$0xff] }
 0x255   : > { %v2567_v43 = vmul.f32 %v2054_v28, %v518_v32  ;;  %v3078_v51 = vmul.f32 %v2566_v36, %v2053_v21  ;;  %v1041_v32 = vld [vmem:[%s4435_s5 + $0x838] sm:$0xff] }
 0x256   : > { %v3577_v46 = vadd.f32 %v3576_v39, %v3066_v31  ;;  %v519_v39 = vld [vmem:[%s4428_s19 + $0x7e8] sm:$0xff]  ;;  %v2065_v41 = vsub.f32 %v1041_v32, %v1553_v33  ;;  %v1562_v32 = vld [vmem:[%s4441_s28 + $0x880] sm:$0xff] }
 0x257   : > { %v2568_v50 = vmul.f32 %v2055_v35, %v519_v39  ;;  %v3079_v58 = vmul.f32 %v2567_v43, %v2054_v28  ;;  %v1042_v39 = vld [vmem:[%s4435_s5 + $0x840] sm:$0xff] }
 0x258   : > { %v3578_v53 = vadd.f32 %v3577_v46, %v3067_v38  ;;  %v520_v46 = vld [vmem:[%s4428_s19 + $0x7f0] sm:$0xff]  ;;  %v2066_v48 = vsub.f32 %v1042_v39, %v1554_v40  ;;  %v1563_v39 = vld [vmem:[%s4441_s28 + $0x888] sm:$0xff] }
 0x259   : > { %v2569_v57 = vmul.f32 %v2056_v42, %v520_v46  ;;  %v3080_v1 = vmul.f32 %v2568_v50, %v2055_v35  ;;  %v1043_v46 = vld [vmem:[%s4435_s5 + $0x848] sm:$0xff] }
 0x25a   : > { %v3579_v60 = vadd.f32 %v3578_v53, %v3068_v45  ;;  %v521_v53 = vld [vmem:[%s4428_s19 + $0x7f8] sm:$0xff]  ;;  %v2067_v55 = vsub.f32 %v1043_v46, %v1555_v47  ;;  %v1564_v46 = vld [vmem:[%s4441_s28 + $0x890] sm:$0xff] }
 0x25b   : > { %v2570_v0 = vmul.f32 %v2057_v49, %v521_v53  ;;  %v3081_v8 = vmul.f32 %v2569_v57, %v2056_v42  ;;  %v1044_v53 = vld [vmem:[%s4435_s5 + $0x850] sm:$0xff] }
 0x25c   : > { %v3580_v3 = vadd.f32 %v3579_v60, %v3069_v52  ;;  %v522_v60 = vld [vmem:[%s4428_s19 + $0x800] sm:$0xff]  ;;  %v2068_v62 = vsub.f32 %v1044_v53, %v1556_v54  ;;  %v1565_v53 = vld [vmem:[%s4441_s28 + $0x898] sm:$0xff] }
 0x25d   : > { %v2571_v7 = vmul.f32 %v2058_v56, %v522_v60  ;;  %v3082_v15 = vmul.f32 %v2570_v0, %v2057_v49  ;;  %v1045_v60 = vld [vmem:[%s4435_s5 + $0x858] sm:$0xff] }
 0x25e   : > { %v3581_v10 = vadd.f32 %v3580_v3, %v3070_v59  ;;  %v523_v3 = vld [vmem:[%s4428_s19 + $0x808] sm:$0xff]  ;;  %v2069_v5 = vsub.f32 %v1045_v60, %v1557_v61  ;;  %v1566_v60 = vld [vmem:[%s4441_s28 + $0x8a0] sm:$0xff] }
 0x25f   : > { %v2572_v14 = vmul.f32 %v2059_v63, %v523_v3  ;;  %v3083_v22 = vmul.f32 %v2571_v7, %v2058_v56  ;;  %v1046_v3 = vld [vmem:[%s4435_s5 + $0x860] sm:$0xff] }
 0x260   : > { %v3582_v17 = vadd.f32 %v3581_v10, %v3071_v2  ;;  %v524_v10 = vld [vmem:[%s4428_s19 + $0x810] sm:$0xff]  ;;  %v2070_v12 = vsub.f32 %v1046_v3, %v1558_v4  ;;  %v1567_v3 = vld [vmem:[%s4441_s28 + $0x8a8] sm:$0xff] }
 0x261   : > { %v2573_v21 = vmul.f32 %v2060_v6, %v524_v10  ;;  %v3084_v29 = vmul.f32 %v2572_v14, %v2059_v63  ;;  %v1047_v10 = vld [vmem:[%s4435_s5 + $0x868] sm:$0xff] }
 0x262   : > { %v3583_v24 = vadd.f32 %v3582_v17, %v3072_v9  ;;  %v525_v17 = vld [vmem:[%s4428_s19 + $0x818] sm:$0xff]  ;;  %v2071_v19 = vsub.f32 %v1047_v10, %v1559_v11  ;;  %v1568_v10 = vld [vmem:[%s4441_s28 + $0x8b0] sm:$0xff] }
 0x263   : > { %v2574_v28 = vmul.f32 %v2061_v13, %v525_v17  ;;  %v3085_v36 = vmul.f32 %v2573_v21, %v2060_v6  ;;  %v1048_v17 = vld [vmem:[%s4435_s5 + $0x870] sm:$0xff] }
 0x264   : > { %v3584_v31 = vadd.f32 %v3583_v24, %v3073_v16  ;;  %v526_v24 = vld [vmem:[%s4428_s19 + $0x820] sm:$0xff]  ;;  %v2072_v26 = vsub.f32 %v1048_v17, %v1560_v18  ;;  %v1569_v17 = vld [vmem:[%s4441_s28 + $0x8b8] sm:$0xff] }
 0x265   : > { %v2575_v35 = vmul.f32 %v2062_v20, %v526_v24  ;;  %v3086_v43 = vmul.f32 %v2574_v28, %v2061_v13  ;;  %v1049_v24 = vld [vmem:[%s4435_s5 + $0x878] sm:$0xff] }
 0x266   : > { %v3585_v38 = vadd.f32 %v3584_v31, %v3074_v23  ;;  %v527_v31 = vld [vmem:[%s4428_s19 + $0x828] sm:$0xff]  ;;  %v2073_v33 = vsub.f32 %v1049_v24, %v1561_v25  ;;  %v1570_v24 = vld [vmem:[%s4441_s28 + $0x8c0] sm:$0xff] }
 0x267   : > { %v2576_v42 = vmul.f32 %v2063_v27, %v527_v31  ;;  %v3087_v50 = vmul.f32 %v2575_v35, %v2062_v20  ;;  %v1050_v31 = vld [vmem:[%s4435_s5 + $0x880] sm:$0xff] }
 0x268   : > { %v3586_v45 = vadd.f32 %v3585_v38, %v3075_v30  ;;  %v528_v38 = vld [vmem:[%s4428_s19 + $0x830] sm:$0xff]  ;;  %v2074_v40 = vsub.f32 %v1050_v31, %v1562_v32  ;;  %v1571_v31 = vld [vmem:[%s4441_s28 + $0x8c8] sm:$0xff] }
 0x269   : > { %v2577_v49 = vmul.f32 %v2064_v34, %v528_v38  ;;  %v3088_v57 = vmul.f32 %v2576_v42, %v2063_v27  ;;  %v1051_v38 = vld [vmem:[%s4435_s5 + $0x888] sm:$0xff] }
 0x26a   : > { %v3587_v52 = vadd.f32 %v3586_v45, %v3076_v37  ;;  %v529_v45 = vld [vmem:[%s4428_s19 + $0x838] sm:$0xff]  ;;  %v2075_v47 = vsub.f32 %v1051_v38, %v1563_v39  ;;  %v1572_v38 = vld [vmem:[%s4441_s28 + $0x8d0] sm:$0xff] }
 0x26b   : > { %v2578_v56 = vmul.f32 %v2065_v41, %v529_v45  ;;  %v3089_v0 = vmul.f32 %v2577_v49, %v2064_v34  ;;  %v1052_v45 = vld [vmem:[%s4435_s5 + $0x890] sm:$0xff] }
 0x26c   : > { %v3588_v59 = vadd.f32 %v3587_v52, %v3077_v44  ;;  %v530_v52 = vld [vmem:[%s4428_s19 + $0x840] sm:$0xff]  ;;  %v2076_v54 = vsub.f32 %v1052_v45, %v1564_v46  ;;  %v1573_v45 = vld [vmem:[%s4441_s28 + $0x8d8] sm:$0xff] }
 0x26d   : > { %v2579_v63 = vmul.f32 %v2066_v48, %v530_v52  ;;  %v3090_v7 = vmul.f32 %v2578_v56, %v2065_v41  ;;  %v1053_v52 = vld [vmem:[%s4435_s5 + $0x898] sm:$0xff] }
 0x26e   : > { %v3589_v2 = vadd.f32 %v3588_v59, %v3078_v51  ;;  %v531_v59 = vld [vmem:[%s4428_s19 + $0x848] sm:$0xff]  ;;  %v2077_v61 = vsub.f32 %v1053_v52, %v1565_v53  ;;  %v1574_v52 = vld [vmem:[%s4441_s28 + $0x8e0] sm:$0xff] }
 0x26f   : > { %v2580_v6 = vmul.f32 %v2067_v55, %v531_v59  ;;  %v3091_v14 = vmul.f32 %v2579_v63, %v2066_v48  ;;  %v1054_v59 = vld [vmem:[%s4435_s5 + $0x8a0] sm:$0xff] }
 0x270   : > { %v3590_v9 = vadd.f32 %v3589_v2, %v3079_v58  ;;  %v532_v2 = vld [vmem:[%s4428_s19 + $0x850] sm:$0xff]  ;;  %v2078_v4 = vsub.f32 %v1054_v59, %v1566_v60  ;;  %v1575_v59 = vld [vmem:[%s4441_s28 + $0x8e8] sm:$0xff] }
 0x271   : > { %v2581_v13 = vmul.f32 %v2068_v62, %v532_v2  ;;  %v3092_v21 = vmul.f32 %v2580_v6, %v2067_v55  ;;  %v1055_v2 = vld [vmem:[%s4435_s5 + $0x8a8] sm:$0xff] }
 0x272   : > { %v3591_v16 = vadd.f32 %v3590_v9, %v3080_v1  ;;  %v533_v9 = vld [vmem:[%s4428_s19 + $0x858] sm:$0xff]  ;;  %v2079_v11 = vsub.f32 %v1055_v2, %v1567_v3  ;;  %v1576_v2 = vld [vmem:[%s4441_s28 + $0x8f0] sm:$0xff] }
 0x273   : > { %v2582_v20 = vmul.f32 %v2069_v5, %v533_v9  ;;  %v3093_v28 = vmul.f32 %v2581_v13, %v2068_v62  ;;  %v1056_v9 = vld [vmem:[%s4435_s5 + $0x8b0] sm:$0xff] }
 0x274   : > { %v3592_v23 = vadd.f32 %v3591_v16, %v3081_v8  ;;  %v534_v16 = vld [vmem:[%s4428_s19 + $0x860] sm:$0xff]  ;;  %v2080_v18 = vsub.f32 %v1056_v9, %v1568_v10  ;;  %v1577_v9 = vld [vmem:[%s4441_s28 + $0x8f8] sm:$0xff] }
 0x275   : > { %v2583_v27 = vmul.f32 %v2070_v12, %v534_v16  ;;  %v3094_v35 = vmul.f32 %v2582_v20, %v2069_v5  ;;  %v1057_v16 = vld [vmem:[%s4435_s5 + $0x8b8] sm:$0xff] }
 0x276   : > { %v3593_v30 = vadd.f32 %v3592_v23, %v3082_v15  ;;  %v535_v23 = vld [vmem:[%s4428_s19 + $0x868] sm:$0xff]  ;;  %v2081_v25 = vsub.f32 %v1057_v16, %v1569_v17  ;;  %v1578_v16 = vld [vmem:[%s4441_s28 + $0x900] sm:$0xff] }
 0x277   : > { %v2584_v34 = vmul.f32 %v2071_v19, %v535_v23  ;;  %v3095_v42 = vmul.f32 %v2583_v27, %v2070_v12  ;;  %v1058_v23 = vld [vmem:[%s4435_s5 + $0x8c0] sm:$0xff] }
 0x278   : > { %v3594_v37 = vadd.f32 %v3593_v30, %v3083_v22  ;;  %v536_v30 = vld [vmem:[%s4428_s19 + $0x870] sm:$0xff]  ;;  %v2082_v32 = vsub.f32 %v1058_v23, %v1570_v24  ;;  %v1579_v23 = vld [vmem:[%s4441_s28 + $0x908] sm:$0xff] }
 0x279   : > { %v2585_v41 = vmul.f32 %v2072_v26, %v536_v30  ;;  %v3096_v49 = vmul.f32 %v2584_v34, %v2071_v19  ;;  %v1059_v30 = vld [vmem:[%s4435_s5 + $0x8c8] sm:$0xff] }
 0x27a   : > { %v3595_v44 = vadd.f32 %v3594_v37, %v3084_v29  ;;  %v537_v37 = vld [vmem:[%s4428_s19 + $0x878] sm:$0xff]  ;;  %v2083_v39 = vsub.f32 %v1059_v30, %v1571_v31  ;;  %v1580_v30 = vld [vmem:[%s4441_s28 + $0x910] sm:$0xff] }
 0x27b   : > { %v2586_v48 = vmul.f32 %v2073_v33, %v537_v37  ;;  %v3097_v56 = vmul.f32 %v2585_v41, %v2072_v26  ;;  %v1060_v37 = vld [vmem:[%s4435_s5 + $0x8d0] sm:$0xff] }
 0x27c   : > { %v3596_v51 = vadd.f32 %v3595_v44, %v3085_v36  ;;  %v538_v44 = vld [vmem:[%s4428_s19 + $0x880] sm:$0xff]  ;;  %v2084_v46 = vsub.f32 %v1060_v37, %v1572_v38  ;;  %v1581_v37 = vld [vmem:[%s4441_s28 + $0x918] sm:$0xff] }
 0x27d   : > { %v2587_v55 = vmul.f32 %v2074_v40, %v538_v44  ;;  %v3098_v63 = vmul.f32 %v2586_v48, %v2073_v33  ;;  %v1061_v44 = vld [vmem:[%s4435_s5 + $0x8d8] sm:$0xff] }
 0x27e   : > { %v3597_v58 = vadd.f32 %v3596_v51, %v3086_v43  ;;  %v539_v51 = vld [vmem:[%s4428_s19 + $0x888] sm:$0xff]  ;;  %v2085_v53 = vsub.f32 %v1061_v44, %v1573_v45  ;;  %v1582_v44 = vld [vmem:[%s4441_s28 + $0x920] sm:$0xff] }
 0x27f   : > { %v2588_v62 = vmul.f32 %v2075_v47, %v539_v51  ;;  %v3099_v6 = vmul.f32 %v2587_v55, %v2074_v40  ;;  %v1062_v51 = vld [vmem:[%s4435_s5 + $0x8e0] sm:$0xff] }
 0x280   : > { %v3598_v1 = vadd.f32 %v3597_v58, %v3087_v50  ;;  %v540_v58 = vld [vmem:[%s4428_s19 + $0x890] sm:$0xff]  ;;  %v2086_v60 = vsub.f32 %v1062_v51, %v1574_v52  ;;  %v1583_v51 = vld [vmem:[%s4441_s28 + $0x928] sm:$0xff] }
 0x281   : > { %v2589_v5 = vmul.f32 %v2076_v54, %v540_v58  ;;  %v3100_v13 = vmul.f32 %v2588_v62, %v2075_v47  ;;  %v1063_v58 = vld [vmem:[%s4435_s5 + $0x8e8] sm:$0xff] }
 0x282   : > { %v3599_v8 = vadd.f32 %v3598_v1, %v3088_v57  ;;  %v541_v1 = vld [vmem:[%s4428_s19 + $0x898] sm:$0xff]  ;;  %v2087_v3 = vsub.f32 %v1063_v58, %v1575_v59  ;;  %v1584_v58 = vld [vmem:[%s4441_s28 + $0x930] sm:$0xff] }
 0x283   : > { %v2590_v12 = vmul.f32 %v2077_v61, %v541_v1  ;;  %v3101_v20 = vmul.f32 %v2589_v5, %v2076_v54  ;;  %v1064_v1 = vld [vmem:[%s4435_s5 + $0x8f0] sm:$0xff] }
 0x284   : > { %v3600_v15 = vadd.f32 %v3599_v8, %v3089_v0  ;;  %v542_v8 = vld [vmem:[%s4428_s19 + $0x8a0] sm:$0xff]  ;;  %v2088_v10 = vsub.f32 %v1064_v1, %v1576_v2  ;;  %v1585_v1 = vld [vmem:[%s4441_s28 + $0x938] sm:$0xff] }
 0x285   : > { %v2591_v19 = vmul.f32 %v2078_v4, %v542_v8  ;;  %v3102_v27 = vmul.f32 %v2590_v12, %v2077_v61  ;;  %v1065_v8 = vld [vmem:[%s4435_s5 + $0x8f8] sm:$0xff] }
 0x286   : > { %v3601_v22 = vadd.f32 %v3600_v15, %v3090_v7  ;;  %v543_v15 = vld [vmem:[%s4428_s19 + $0x8a8] sm:$0xff]  ;;  %v2089_v17 = vsub.f32 %v1065_v8, %v1577_v9  ;;  %v1586_v8 = vld [vmem:[%s4441_s28 + $0x940] sm:$0xff] }
 0x287   : > { %v2592_v26 = vmul.f32 %v2079_v11, %v543_v15  ;;  %v3103_v34 = vmul.f32 %v2591_v19, %v2078_v4  ;;  %v1066_v15 = vld [vmem:[%s4435_s5 + $0x900] sm:$0xff] }
 0x288   : > { %v3602_v29 = vadd.f32 %v3601_v22, %v3091_v14  ;;  %v544_v22 = vld [vmem:[%s4428_s19 + $0x8b0] sm:$0xff]  ;;  %v2090_v24 = vsub.f32 %v1066_v15, %v1578_v16  ;;  %v1587_v15 = vld [vmem:[%s4441_s28 + $0x948] sm:$0xff] }
 0x289   : > { %v2593_v33 = vmul.f32 %v2080_v18, %v544_v22  ;;  %v3104_v41 = vmul.f32 %v2592_v26, %v2079_v11  ;;  %v1067_v22 = vld [vmem:[%s4435_s5 + $0x908] sm:$0xff] }
 0x28a   : > { %v3603_v36 = vadd.f32 %v3602_v29, %v3092_v21  ;;  %v545_v29 = vld [vmem:[%s4428_s19 + $0x8b8] sm:$0xff]  ;;  %v2091_v31 = vsub.f32 %v1067_v22, %v1579_v23  ;;  %v1588_v22 = vld [vmem:[%s4441_s28 + $0x950] sm:$0xff] }
 0x28b   : > { %v2594_v40 = vmul.f32 %v2081_v25, %v545_v29  ;;  %v3105_v48 = vmul.f32 %v2593_v33, %v2080_v18  ;;  %v1068_v29 = vld [vmem:[%s4435_s5 + $0x910] sm:$0xff] }
 0x28c   : > { %v3604_v43 = vadd.f32 %v3603_v36, %v3093_v28  ;;  %v546_v36 = vld [vmem:[%s4428_s19 + $0x8c0] sm:$0xff]  ;;  %v2092_v38 = vsub.f32 %v1068_v29, %v1580_v30  ;;  %v1589_v29 = vld [vmem:[%s4441_s28 + $0x958] sm:$0xff] }
 0x28d   : > { %v2595_v47 = vmul.f32 %v2082_v32, %v546_v36  ;;  %v3106_v55 = vmul.f32 %v2594_v40, %v2081_v25  ;;  %v1069_v36 = vld [vmem:[%s4435_s5 + $0x918] sm:$0xff] }
 0x28e   : > { %v3605_v50 = vadd.f32 %v3604_v43, %v3094_v35  ;;  %v547_v43 = vld [vmem:[%s4428_s19 + $0x8c8] sm:$0xff]  ;;  %v2093_v45 = vsub.f32 %v1069_v36, %v1581_v37  ;;  %v1590_v36 = vld [vmem:[%s4441_s28 + $0x960] sm:$0xff] }
 0x28f   : > { %v2596_v54 = vmul.f32 %v2083_v39, %v547_v43  ;;  %v3107_v62 = vmul.f32 %v2595_v47, %v2082_v32  ;;  %v1070_v43 = vld [vmem:[%s4435_s5 + $0x920] sm:$0xff] }
 0x290   : > { %v3606_v57 = vadd.f32 %v3605_v50, %v3095_v42  ;;  %v548_v50 = vld [vmem:[%s4428_s19 + $0x8d0] sm:$0xff]  ;;  %v2094_v52 = vsub.f32 %v1070_v43, %v1582_v44  ;;  %v1591_v43 = vld [vmem:[%s4441_s28 + $0x968] sm:$0xff] }
 0x291   : > { %v2597_v61 = vmul.f32 %v2084_v46, %v548_v50  ;;  %v3108_v5 = vmul.f32 %v2596_v54, %v2083_v39  ;;  %v1071_v50 = vld [vmem:[%s4435_s5 + $0x928] sm:$0xff] }
 0x292   : > { %v3607_v0 = vadd.f32 %v3606_v57, %v3096_v49  ;;  %v549_v57 = vld [vmem:[%s4428_s19 + $0x8d8] sm:$0xff]  ;;  %v2095_v59 = vsub.f32 %v1071_v50, %v1583_v51  ;;  %v1592_v50 = vld [vmem:[%s4441_s28 + $0x970] sm:$0xff] }
 0x293   : > { %v2598_v4 = vmul.f32 %v2085_v53, %v549_v57  ;;  %v3109_v12 = vmul.f32 %v2597_v61, %v2084_v46  ;;  %v1072_v57 = vld [vmem:[%s4435_s5 + $0x930] sm:$0xff] }
 0x294   : > { %v3608_v7 = vadd.f32 %v3607_v0, %v3097_v56  ;;  %v550_v0 = vld [vmem:[%s4428_s19 + $0x8e0] sm:$0xff]  ;;  %v2096_v2 = vsub.f32 %v1072_v57, %v1584_v58  ;;  %v1593_v57 = vld [vmem:[%s4441_s28 + $0x978] sm:$0xff] }
 0x295   : > { %v2599_v11 = vmul.f32 %v2086_v60, %v550_v0  ;;  %v3110_v19 = vmul.f32 %v2598_v4, %v2085_v53  ;;  %v1073_v0 = vld [vmem:[%s4435_s5 + $0x938] sm:$0xff] }
 0x296   : > { %v3609_v14 = vadd.f32 %v3608_v7, %v3098_v63  ;;  %v551_v7 = vld [vmem:[%s4428_s19 + $0x8e8] sm:$0xff]  ;;  %v2097_v9 = vsub.f32 %v1073_v0, %v1585_v1  ;;  %v1594_v0 = vld [vmem:[%s4441_s28 + $0x980] sm:$0xff] }
 0x297   : > { %v2600_v18 = vmul.f32 %v2087_v3, %v551_v7  ;;  %v3111_v26 = vmul.f32 %v2599_v11, %v2086_v60  ;;  %v1074_v7 = vld [vmem:[%s4435_s5 + $0x940] sm:$0xff] }
 0x298   : > { %v3610_v21 = vadd.f32 %v3609_v14, %v3099_v6  ;;  %v552_v14 = vld [vmem:[%s4428_s19 + $0x8f0] sm:$0xff]  ;;  %v2098_v16 = vsub.f32 %v1074_v7, %v1586_v8  ;;  %v1595_v7 = vld [vmem:[%s4441_s28 + $0x988] sm:$0xff] }
 0x299   : > { %v2601_v25 = vmul.f32 %v2088_v10, %v552_v14  ;;  %v3112_v33 = vmul.f32 %v2600_v18, %v2087_v3  ;;  %v1075_v14 = vld [vmem:[%s4435_s5 + $0x948] sm:$0xff] }
 0x29a   : > { %v3611_v28 = vadd.f32 %v3610_v21, %v3100_v13  ;;  %v553_v21 = vld [vmem:[%s4428_s19 + $0x8f8] sm:$0xff]  ;;  %v2099_v23 = vsub.f32 %v1075_v14, %v1587_v15  ;;  %v1596_v14 = vld [vmem:[%s4441_s28 + $0x990] sm:$0xff] }
 0x29b   : > { %v2602_v32 = vmul.f32 %v2089_v17, %v553_v21  ;;  %v3113_v40 = vmul.f32 %v2601_v25, %v2088_v10  ;;  %v1076_v21 = vld [vmem:[%s4435_s5 + $0x950] sm:$0xff] }
 0x29c   : > { %v3612_v35 = vadd.f32 %v3611_v28, %v3101_v20  ;;  %v554_v28 = vld [vmem:[%s4428_s19 + $0x900] sm:$0xff]  ;;  %v2100_v30 = vsub.f32 %v1076_v21, %v1588_v22  ;;  %v1597_v21 = vld [vmem:[%s4441_s28 + $0x998] sm:$0xff] }
 0x29d   : > { %v2603_v39 = vmul.f32 %v2090_v24, %v554_v28  ;;  %v3114_v47 = vmul.f32 %v2602_v32, %v2089_v17  ;;  %v1077_v28 = vld [vmem:[%s4435_s5 + $0x958] sm:$0xff] }
 0x29e   : > { %v3613_v42 = vadd.f32 %v3612_v35, %v3102_v27  ;;  %v555_v35 = vld [vmem:[%s4428_s19 + $0x908] sm:$0xff]  ;;  %v2101_v37 = vsub.f32 %v1077_v28, %v1589_v29  ;;  %v1598_v28 = vld [vmem:[%s4441_s28 + $0x9a0] sm:$0xff] }
 0x29f   : > { %v2604_v46 = vmul.f32 %v2091_v31, %v555_v35  ;;  %v3115_v54 = vmul.f32 %v2603_v39, %v2090_v24  ;;  %v1078_v35 = vld [vmem:[%s4435_s5 + $0x960] sm:$0xff] }
 0x2a0   : > { %v3614_v49 = vadd.f32 %v3613_v42, %v3103_v34  ;;  %v556_v42 = vld [vmem:[%s4428_s19 + $0x910] sm:$0xff]  ;;  %v2102_v44 = vsub.f32 %v1078_v35, %v1590_v36  ;;  %v1599_v35 = vld [vmem:[%s4441_s28 + $0x9a8] sm:$0xff] }
 0x2a1   : > { %v2605_v53 = vmul.f32 %v2092_v38, %v556_v42  ;;  %v3116_v61 = vmul.f32 %v2604_v46, %v2091_v31  ;;  %v1079_v42 = vld [vmem:[%s4435_s5 + $0x968] sm:$0xff] }
 0x2a2   : > { %v3615_v56 = vadd.f32 %v3614_v49, %v3104_v41  ;;  %v557_v49 = vld [vmem:[%s4428_s19 + $0x918] sm:$0xff]  ;;  %v2103_v51 = vsub.f32 %v1079_v42, %v1591_v43  ;;  %v1600_v42 = vld [vmem:[%s4441_s28 + $0x9b0] sm:$0xff] }
 0x2a3   : > { %v2606_v60 = vmul.f32 %v2093_v45, %v557_v49  ;;  %v3117_v4 = vmul.f32 %v2605_v53, %v2092_v38  ;;  %v1080_v49 = vld [vmem:[%s4435_s5 + $0x970] sm:$0xff] }
 0x2a4   : > { %v3616_v63 = vadd.f32 %v3615_v56, %v3105_v48  ;;  %v558_v56 = vld [vmem:[%s4428_s19 + $0x920] sm:$0xff]  ;;  %v2104_v58 = vsub.f32 %v1080_v49, %v1592_v50  ;;  %v1601_v49 = vld [vmem:[%s4441_s28 + $0x9b8] sm:$0xff] }
 0x2a5   : > { %v2607_v3 = vmul.f32 %v2094_v52, %v558_v56  ;;  %v3118_v11 = vmul.f32 %v2606_v60, %v2093_v45  ;;  %v1081_v56 = vld [vmem:[%s4435_s5 + $0x978] sm:$0xff] }
 0x2a6   : > { %v3617_v6 = vadd.f32 %v3616_v63, %v3106_v55  ;;  %v559_v63 = vld [vmem:[%s4428_s19 + $0x928] sm:$0xff]  ;;  %v2105_v1 = vsub.f32 %v1081_v56, %v1593_v57  ;;  %v1602_v56 = vld [vmem:[%s4441_s28 + $0x9c0] sm:$0xff] }
 0x2a7   : > { %v2608_v10 = vmul.f32 %v2095_v59, %v559_v63  ;;  %v3119_v18 = vmul.f32 %v2607_v3, %v2094_v52  ;;  %v1082_v63 = vld [vmem:[%s4435_s5 + $0x980] sm:$0xff] }
 0x2a8   : > { %v3618_v13 = vadd.f32 %v3617_v6, %v3107_v62  ;;  %v560_v6 = vld [vmem:[%s4428_s19 + $0x930] sm:$0xff]  ;;  %v2106_v8 = vsub.f32 %v1082_v63, %v1594_v0  ;;  %v1603_v63 = vld [vmem:[%s4441_s28 + $0x9c8] sm:$0xff] }
 0x2a9   : > { %v2609_v17 = vmul.f32 %v2096_v2, %v560_v6  ;;  %v3120_v25 = vmul.f32 %v2608_v10, %v2095_v59  ;;  %v1083_v6 = vld [vmem:[%s4435_s5 + $0x988] sm:$0xff] }
 0x2aa   : > { %v3619_v20 = vadd.f32 %v3618_v13, %v3108_v5  ;;  %v561_v13 = vld [vmem:[%s4428_s19 + $0x938] sm:$0xff]  ;;  %v2107_v15 = vsub.f32 %v1083_v6, %v1595_v7  ;;  %v1604_v6 = vld [vmem:[%s4441_s28 + $0x9d0] sm:$0xff] }
 0x2ab   : > { %v2610_v24 = vmul.f32 %v2097_v9, %v561_v13  ;;  %v3121_v32 = vmul.f32 %v2609_v17, %v2096_v2  ;;  %v1084_v13 = vld [vmem:[%s4435_s5 + $0x990] sm:$0xff] }
 0x2ac   : > { %v3620_v27 = vadd.f32 %v3619_v20, %v3109_v12  ;;  %v562_v20 = vld [vmem:[%s4428_s19 + $0x940] sm:$0xff]  ;;  %v2108_v22 = vsub.f32 %v1084_v13, %v1596_v14  ;;  %v1605_v13 = vld [vmem:[%s4441_s28 + $0x9d8] sm:$0xff] }
 0x2ad   : > { %v2611_v31 = vmul.f32 %v2098_v16, %v562_v20  ;;  %v3122_v39 = vmul.f32 %v2610_v24, %v2097_v9  ;;  %v1085_v20 = vld [vmem:[%s4435_s5 + $0x998] sm:$0xff] }
 0x2ae   : > { %v3621_v34 = vadd.f32 %v3620_v27, %v3110_v19  ;;  %v563_v27 = vld [vmem:[%s4428_s19 + $0x948] sm:$0xff]  ;;  %v2109_v29 = vsub.f32 %v1085_v20, %v1597_v21  ;;  %v1606_v20 = vld [vmem:[%s4441_s28 + $0x9e0] sm:$0xff] }
 0x2af   : > { %v2612_v38 = vmul.f32 %v2099_v23, %v563_v27  ;;  %v3123_v46 = vmul.f32 %v2611_v31, %v2098_v16  ;;  %v1086_v27 = vld [vmem:[%s4435_s5 + $0x9a0] sm:$0xff] }
 0x2b0   : > { %v3622_v41 = vadd.f32 %v3621_v34, %v3111_v26  ;;  %v564_v34 = vld [vmem:[%s4428_s19 + $0x950] sm:$0xff]  ;;  %v2110_v36 = vsub.f32 %v1086_v27, %v1598_v28  ;;  %v1607_v27 = vld [vmem:[%s4441_s28 + $0x9e8] sm:$0xff] }
 0x2b1   : > { %v2613_v45 = vmul.f32 %v2100_v30, %v564_v34  ;;  %v3124_v53 = vmul.f32 %v2612_v38, %v2099_v23  ;;  %v1087_v34 = vld [vmem:[%s4435_s5 + $0x9a8] sm:$0xff] }
 0x2b2   : > { %v3623_v48 = vadd.f32 %v3622_v41, %v3112_v33  ;;  %v565_v41 = vld [vmem:[%s4428_s19 + $0x958] sm:$0xff]  ;;  %v2111_v43 = vsub.f32 %v1087_v34, %v1599_v35  ;;  %v1608_v34 = vld [vmem:[%s4441_s28 + $0x9f0] sm:$0xff] }
 0x2b3   : > { %v2614_v52 = vmul.f32 %v2101_v37, %v565_v41  ;;  %v3125_v60 = vmul.f32 %v2613_v45, %v2100_v30  ;;  %v1088_v41 = vld [vmem:[%s4435_s5 + $0x9b0] sm:$0xff] }
 0x2b4   : > { %v3624_v55 = vadd.f32 %v3623_v48, %v3113_v40  ;;  %v566_v48 = vld [vmem:[%s4428_s19 + $0x960] sm:$0xff]  ;;  %v2112_v50 = vsub.f32 %v1088_v41, %v1600_v42  ;;  %v1609_v41 = vld [vmem:[%s4441_s28 + $0x9f8] sm:$0xff] }
 0x2b5   : > { %v2615_v59 = vmul.f32 %v2102_v44, %v566_v48  ;;  %v3126_v3 = vmul.f32 %v2614_v52, %v2101_v37  ;;  %v1089_v48 = vld [vmem:[%s4435_s5 + $0x9b8] sm:$0xff] }
 0x2b6   : > { %v3625_v62 = vadd.f32 %v3624_v55, %v3114_v47  ;;  %v567_v55 = vld [vmem:[%s4428_s19 + $0x968] sm:$0xff]  ;;  %v2113_v57 = vsub.f32 %v1089_v48, %v1601_v49  ;;  %v1610_v48 = vld [vmem:[%s4441_s28 + $0xa00] sm:$0xff] }
 0x2b7   : > { %v2616_v2 = vmul.f32 %v2103_v51, %v567_v55  ;;  %v3127_v10 = vmul.f32 %v2615_v59, %v2102_v44  ;;  %v1090_v55 = vld [vmem:[%s4435_s5 + $0x9c0] sm:$0xff] }
 0x2b8   : > { %v3626_v5 = vadd.f32 %v3625_v62, %v3115_v54  ;;  %v568_v62 = vld [vmem:[%s4428_s19 + $0x970] sm:$0xff]  ;;  %v2114_v0 = vsub.f32 %v1090_v55, %v1602_v56  ;;  %v1611_v55 = vld [vmem:[%s4441_s28 + $0xa08] sm:$0xff] }
 0x2b9   : > { %v2617_v9 = vmul.f32 %v2104_v58, %v568_v62  ;;  %v3128_v17 = vmul.f32 %v2616_v2, %v2103_v51  ;;  %v1091_v62 = vld [vmem:[%s4435_s5 + $0x9c8] sm:$0xff] }
 0x2ba   : > { %v3627_v12 = vadd.f32 %v3626_v5, %v3116_v61  ;;  %v569_v5 = vld [vmem:[%s4428_s19 + $0x978] sm:$0xff]  ;;  %v2115_v7 = vsub.f32 %v1091_v62, %v1603_v63  ;;  %v1612_v62 = vld [vmem:[%s4441_s28 + $0xa10] sm:$0xff] }
 0x2bb   : > { %v2618_v16 = vmul.f32 %v2105_v1, %v569_v5  ;;  %v3129_v24 = vmul.f32 %v2617_v9, %v2104_v58  ;;  %v1092_v5 = vld [vmem:[%s4435_s5 + $0x9d0] sm:$0xff] }
 0x2bc   : > { %v3628_v19 = vadd.f32 %v3627_v12, %v3117_v4  ;;  %v570_v12 = vld [vmem:[%s4428_s19 + $0x980] sm:$0xff]  ;;  %v2116_v14 = vsub.f32 %v1092_v5, %v1604_v6  ;;  %v1613_v5 = vld [vmem:[%s4441_s28 + $0xa18] sm:$0xff] }
 0x2bd   : > { %v2619_v23 = vmul.f32 %v2106_v8, %v570_v12  ;;  %v3130_v31 = vmul.f32 %v2618_v16, %v2105_v1  ;;  %v1093_v12 = vld [vmem:[%s4435_s5 + $0x9d8] sm:$0xff] }
 0x2be   : > { %v3629_v26 = vadd.f32 %v3628_v19, %v3118_v11  ;;  %v571_v19 = vld [vmem:[%s4428_s19 + $0x988] sm:$0xff]  ;;  %v2117_v21 = vsub.f32 %v1093_v12, %v1605_v13  ;;  %v1614_v12 = vld [vmem:[%s4441_s28 + $0xa20] sm:$0xff] }
 0x2bf   : > { %v2620_v30 = vmul.f32 %v2107_v15, %v571_v19  ;;  %v3131_v38 = vmul.f32 %v2619_v23, %v2106_v8  ;;  %v1094_v19 = vld [vmem:[%s4435_s5 + $0x9e0] sm:$0xff] }
 0x2c0   : > { %v3630_v33 = vadd.f32 %v3629_v26, %v3119_v18  ;;  %v572_v26 = vld [vmem:[%s4428_s19 + $0x990] sm:$0xff]  ;;  %v2118_v28 = vsub.f32 %v1094_v19, %v1606_v20  ;;  %v1615_v19 = vld [vmem:[%s4441_s28 + $0xa28] sm:$0xff] }
 0x2c1   : > { %v2621_v37 = vmul.f32 %v2108_v22, %v572_v26  ;;  %v3132_v45 = vmul.f32 %v2620_v30, %v2107_v15  ;;  %v1095_v26 = vld [vmem:[%s4435_s5 + $0x9e8] sm:$0xff] }
 0x2c2   : > { %v3631_v40 = vadd.f32 %v3630_v33, %v3120_v25  ;;  %v573_v33 = vld [vmem:[%s4428_s19 + $0x998] sm:$0xff]  ;;  %v2119_v35 = vsub.f32 %v1095_v26, %v1607_v27  ;;  %v1616_v26 = vld [vmem:[%s4441_s28 + $0xa30] sm:$0xff] }
 0x2c3   : > { %v2622_v44 = vmul.f32 %v2109_v29, %v573_v33  ;;  %v3133_v52 = vmul.f32 %v2621_v37, %v2108_v22  ;;  %v1096_v33 = vld [vmem:[%s4435_s5 + $0x9f0] sm:$0xff] }
 0x2c4   : > { %v3632_v47 = vadd.f32 %v3631_v40, %v3121_v32  ;;  %v574_v40 = vld [vmem:[%s4428_s19 + $0x9a0] sm:$0xff]  ;;  %v2120_v42 = vsub.f32 %v1096_v33, %v1608_v34  ;;  %v1617_v33 = vld [vmem:[%s4441_s28 + $0xa38] sm:$0xff] }
 0x2c5   : > { %v2623_v51 = vmul.f32 %v2110_v36, %v574_v40  ;;  %v3134_v59 = vmul.f32 %v2622_v44, %v2109_v29  ;;  %v1097_v40 = vld [vmem:[%s4435_s5 + $0x9f8] sm:$0xff] }
 0x2c6   : > { %v3633_v54 = vadd.f32 %v3632_v47, %v3122_v39  ;;  %v575_v47 = vld [vmem:[%s4428_s19 + $0x9a8] sm:$0xff]  ;;  %v2121_v49 = vsub.f32 %v1097_v40, %v1609_v41  ;;  %v1618_v40 = vld [vmem:[%s4441_s28 + $0xa40] sm:$0xff] }
 0x2c7   : > { %v2624_v58 = vmul.f32 %v2111_v43, %v575_v47  ;;  %v3135_v2 = vmul.f32 %v2623_v51, %v2110_v36  ;;  %v1098_v47 = vld [vmem:[%s4435_s5 + $0xa00] sm:$0xff] }
 0x2c8   : > { %v3634_v61 = vadd.f32 %v3633_v54, %v3123_v46  ;;  %v576_v54 = vld [vmem:[%s4428_s19 + $0x9b0] sm:$0xff]  ;;  %v2122_v56 = vsub.f32 %v1098_v47, %v1610_v48  ;;  %v1619_v47 = vld [vmem:[%s4441_s28 + $0xa48] sm:$0xff] }
 0x2c9   : > { %v2625_v1 = vmul.f32 %v2112_v50, %v576_v54  ;;  %v3136_v9 = vmul.f32 %v2624_v58, %v2111_v43  ;;  %v1099_v54 = vld [vmem:[%s4435_s5 + $0xa08] sm:$0xff] }
 0x2ca   : > { %v3635_v4 = vadd.f32 %v3634_v61, %v3124_v53  ;;  %v577_v61 = vld [vmem:[%s4428_s19 + $0x9b8] sm:$0xff]  ;;  %v2123_v63 = vsub.f32 %v1099_v54, %v1611_v55  ;;  %v1620_v54 = vld [vmem:[%s4441_s28 + $0xa50] sm:$0xff] }
 0x2cb   : > { %v2626_v8 = vmul.f32 %v2113_v57, %v577_v61  ;;  %v3137_v16 = vmul.f32 %v2625_v1, %v2112_v50  ;;  %v1100_v61 = vld [vmem:[%s4435_s5 + $0xa10] sm:$0xff] }
 0x2cc   : > { %v3636_v11 = vadd.f32 %v3635_v4, %v3125_v60  ;;  %v578_v4 = vld [vmem:[%s4428_s19 + $0x9c0] sm:$0xff]  ;;  %v2124_v6 = vsub.f32 %v1100_v61, %v1612_v62  ;;  %v1621_v61 = vld [vmem:[%s4441_s28 + $0xa58] sm:$0xff] }
 0x2cd   : > { %v2627_v15 = vmul.f32 %v2114_v0, %v578_v4  ;;  %v3138_v23 = vmul.f32 %v2626_v8, %v2113_v57  ;;  %v1101_v4 = vld [vmem:[%s4435_s5 + $0xa18] sm:$0xff] }
 0x2ce   : > { %v3637_v18 = vadd.f32 %v3636_v11, %v3126_v3  ;;  %v579_v11 = vld [vmem:[%s4428_s19 + $0x9c8] sm:$0xff]  ;;  %v2125_v13 = vsub.f32 %v1101_v4, %v1613_v5  ;;  %v1622_v4 = vld [vmem:[%s4441_s28 + $0xa60] sm:$0xff] }
 0x2cf   : > { %v2628_v22 = vmul.f32 %v2115_v7, %v579_v11  ;;  %v3139_v30 = vmul.f32 %v2627_v15, %v2114_v0  ;;  %v1102_v11 = vld [vmem:[%s4435_s5 + $0xa20] sm:$0xff] }
 0x2d0   : > { %v3638_v25 = vadd.f32 %v3637_v18, %v3127_v10  ;;  %v580_v18 = vld [vmem:[%s4428_s19 + $0x9d0] sm:$0xff]  ;;  %v2126_v20 = vsub.f32 %v1102_v11, %v1614_v12  ;;  %v1623_v11 = vld [vmem:[%s4441_s28 + $0xa68] sm:$0xff] }
 0x2d1   : > { %v2629_v29 = vmul.f32 %v2116_v14, %v580_v18  ;;  %v3140_v37 = vmul.f32 %v2628_v22, %v2115_v7  ;;  %v1103_v18 = vld [vmem:[%s4435_s5 + $0xa28] sm:$0xff] }
 0x2d2   : > { %v3639_v32 = vadd.f32 %v3638_v25, %v3128_v17  ;;  %v581_v25 = vld [vmem:[%s4428_s19 + $0x9d8] sm:$0xff]  ;;  %v2127_v27 = vsub.f32 %v1103_v18, %v1615_v19  ;;  %v1624_v18 = vld [vmem:[%s4441_s28 + $0xa70] sm:$0xff] }
 0x2d3   : > { %v2630_v36 = vmul.f32 %v2117_v21, %v581_v25  ;;  %v3141_v44 = vmul.f32 %v2629_v29, %v2116_v14  ;;  %v1104_v25 = vld [vmem:[%s4435_s5 + $0xa30] sm:$0xff] }
 0x2d4   : > { %v3640_v39 = vadd.f32 %v3639_v32, %v3129_v24  ;;  %v582_v32 = vld [vmem:[%s4428_s19 + $0x9e0] sm:$0xff]  ;;  %v2128_v34 = vsub.f32 %v1104_v25, %v1616_v26  ;;  %v1625_v25 = vld [vmem:[%s4441_s28 + $0xa78] sm:$0xff] }
 0x2d5   : > { %v2631_v43 = vmul.f32 %v2118_v28, %v582_v32  ;;  %v3142_v51 = vmul.f32 %v2630_v36, %v2117_v21  ;;  %v1105_v32 = vld [vmem:[%s4435_s5 + $0xa38] sm:$0xff] }
 0x2d6   : > { %v3641_v46 = vadd.f32 %v3640_v39, %v3130_v31  ;;  %v583_v39 = vld [vmem:[%s4428_s19 + $0x9e8] sm:$0xff]  ;;  %v2129_v41 = vsub.f32 %v1105_v32, %v1617_v33  ;;  %v1626_v32 = vld [vmem:[%s4441_s28 + $0xa80] sm:$0xff] }
 0x2d7   : > { %v2632_v50 = vmul.f32 %v2119_v35, %v583_v39  ;;  %v3143_v58 = vmul.f32 %v2631_v43, %v2118_v28  ;;  %v1106_v39 = vld [vmem:[%s4435_s5 + $0xa40] sm:$0xff] }
 0x2d8   : > { %v3642_v53 = vadd.f32 %v3641_v46, %v3131_v38  ;;  %v584_v46 = vld [vmem:[%s4428_s19 + $0x9f0] sm:$0xff]  ;;  %v2130_v48 = vsub.f32 %v1106_v39, %v1618_v40  ;;  %v1627_v39 = vld [vmem:[%s4441_s28 + $0xa88] sm:$0xff] }
 0x2d9   : > { %v2633_v57 = vmul.f32 %v2120_v42, %v584_v46  ;;  %v3144_v1 = vmul.f32 %v2632_v50, %v2119_v35  ;;  %v1107_v46 = vld [vmem:[%s4435_s5 + $0xa48] sm:$0xff] }
 0x2da   : > { %v3643_v60 = vadd.f32 %v3642_v53, %v3132_v45  ;;  %v585_v53 = vld [vmem:[%s4428_s19 + $0x9f8] sm:$0xff]  ;;  %v2131_v55 = vsub.f32 %v1107_v46, %v1619_v47  ;;  %v1628_v46 = vld [vmem:[%s4441_s28 + $0xa90] sm:$0xff] }
 0x2db   : > { %v2634_v0 = vmul.f32 %v2121_v49, %v585_v53  ;;  %v3145_v8 = vmul.f32 %v2633_v57, %v2120_v42  ;;  %v1108_v53 = vld [vmem:[%s4435_s5 + $0xa50] sm:$0xff] }
 0x2dc   : > { %v3644_v3 = vadd.f32 %v3643_v60, %v3133_v52  ;;  %v586_v60 = vld [vmem:[%s4428_s19 + $0xa00] sm:$0xff]  ;;  %v2132_v62 = vsub.f32 %v1108_v53, %v1620_v54  ;;  %v1629_v53 = vld [vmem:[%s4441_s28 + $0xa98] sm:$0xff] }
 0x2dd   : > { %v2635_v7 = vmul.f32 %v2122_v56, %v586_v60  ;;  %v3146_v15 = vmul.f32 %v2634_v0, %v2121_v49  ;;  %v1109_v60 = vld [vmem:[%s4435_s5 + $0xa58] sm:$0xff] }
 0x2de   : > { %v3645_v10 = vadd.f32 %v3644_v3, %v3134_v59  ;;  %v587_v3 = vld [vmem:[%s4428_s19 + $0xa08] sm:$0xff]  ;;  %v2133_v5 = vsub.f32 %v1109_v60, %v1621_v61  ;;  %v1630_v60 = vld [vmem:[%s4441_s28 + $0xaa0] sm:$0xff] }
 0x2df   : > { %v2636_v14 = vmul.f32 %v2123_v63, %v587_v3  ;;  %v3147_v22 = vmul.f32 %v2635_v7, %v2122_v56  ;;  %v1110_v3 = vld [vmem:[%s4435_s5 + $0xa60] sm:$0xff] }
 0x2e0   : > { %v3646_v17 = vadd.f32 %v3645_v10, %v3135_v2  ;;  %v588_v10 = vld [vmem:[%s4428_s19 + $0xa10] sm:$0xff]  ;;  %v2134_v12 = vsub.f32 %v1110_v3, %v1622_v4  ;;  %v1631_v3 = vld [vmem:[%s4441_s28 + $0xaa8] sm:$0xff] }
 0x2e1   : > { %v2637_v21 = vmul.f32 %v2124_v6, %v588_v10  ;;  %v3148_v29 = vmul.f32 %v2636_v14, %v2123_v63  ;;  %v1111_v10 = vld [vmem:[%s4435_s5 + $0xa68] sm:$0xff] }
 0x2e2   : > { %v3647_v24 = vadd.f32 %v3646_v17, %v3136_v9  ;;  %v589_v17 = vld [vmem:[%s4428_s19 + $0xa18] sm:$0xff]  ;;  %v2135_v19 = vsub.f32 %v1111_v10, %v1623_v11  ;;  %v1632_v10 = vld [vmem:[%s4441_s28 + $0xab0] sm:$0xff] }
 0x2e3   : > { %v2638_v28 = vmul.f32 %v2125_v13, %v589_v17  ;;  %v3149_v36 = vmul.f32 %v2637_v21, %v2124_v6  ;;  %v1112_v17 = vld [vmem:[%s4435_s5 + $0xa70] sm:$0xff] }
 0x2e4   : > { %v3648_v31 = vadd.f32 %v3647_v24, %v3137_v16  ;;  %v590_v24 = vld [vmem:[%s4428_s19 + $0xa20] sm:$0xff]  ;;  %v2136_v26 = vsub.f32 %v1112_v17, %v1624_v18  ;;  %v1633_v17 = vld [vmem:[%s4441_s28 + $0xab8] sm:$0xff] }
 0x2e5   : > { %v2639_v35 = vmul.f32 %v2126_v20, %v590_v24  ;;  %v3150_v43 = vmul.f32 %v2638_v28, %v2125_v13  ;;  %v1113_v24 = vld [vmem:[%s4435_s5 + $0xa78] sm:$0xff] }
 0x2e6   : > { %v3649_v38 = vadd.f32 %v3648_v31, %v3138_v23  ;;  %v591_v31 = vld [vmem:[%s4428_s19 + $0xa28] sm:$0xff]  ;;  %v2137_v33 = vsub.f32 %v1113_v24, %v1625_v25  ;;  %v1634_v24 = vld [vmem:[%s4441_s28 + $0xac0] sm:$0xff] }
 0x2e7   : > { %v2640_v42 = vmul.f32 %v2127_v27, %v591_v31  ;;  %v3151_v50 = vmul.f32 %v2639_v35, %v2126_v20  ;;  %v1114_v31 = vld [vmem:[%s4435_s5 + $0xa80] sm:$0xff] }
 0x2e8   : > { %v3650_v45 = vadd.f32 %v3649_v38, %v3139_v30  ;;  %v592_v38 = vld [vmem:[%s4428_s19 + $0xa30] sm:$0xff]  ;;  %v2138_v40 = vsub.f32 %v1114_v31, %v1626_v32  ;;  %v1635_v31 = vld [vmem:[%s4441_s28 + $0xac8] sm:$0xff] }
 0x2e9   : > { %v2641_v49 = vmul.f32 %v2128_v34, %v592_v38  ;;  %v3152_v57 = vmul.f32 %v2640_v42, %v2127_v27  ;;  %v1115_v38 = vld [vmem:[%s4435_s5 + $0xa88] sm:$0xff] }
 0x2ea   : > { %v3651_v52 = vadd.f32 %v3650_v45, %v3140_v37  ;;  %v593_v45 = vld [vmem:[%s4428_s19 + $0xa38] sm:$0xff]  ;;  %v2139_v47 = vsub.f32 %v1115_v38, %v1627_v39  ;;  %v1636_v38 = vld [vmem:[%s4441_s28 + $0xad0] sm:$0xff] }
 0x2eb   : > { %v2642_v56 = vmul.f32 %v2129_v41, %v593_v45  ;;  %v3153_v0 = vmul.f32 %v2641_v49, %v2128_v34  ;;  %v1116_v45 = vld [vmem:[%s4435_s5 + $0xa90] sm:$0xff] }
 0x2ec   : > { %v3652_v59 = vadd.f32 %v3651_v52, %v3141_v44  ;;  %v594_v52 = vld [vmem:[%s4428_s19 + $0xa40] sm:$0xff]  ;;  %v2140_v54 = vsub.f32 %v1116_v45, %v1628_v46  ;;  %v1637_v45 = vld [vmem:[%s4441_s28 + $0xad8] sm:$0xff] }
 0x2ed   : > { %v2643_v63 = vmul.f32 %v2130_v48, %v594_v52  ;;  %v3154_v7 = vmul.f32 %v2642_v56, %v2129_v41  ;;  %v1117_v52 = vld [vmem:[%s4435_s5 + $0xa98] sm:$0xff] }
 0x2ee   : > { %v3653_v2 = vadd.f32 %v3652_v59, %v3142_v51  ;;  %v595_v59 = vld [vmem:[%s4428_s19 + $0xa48] sm:$0xff]  ;;  %v2141_v61 = vsub.f32 %v1117_v52, %v1629_v53  ;;  %v1638_v52 = vld [vmem:[%s4441_s28 + $0xae0] sm:$0xff] }
 0x2ef   : > { %v2644_v6 = vmul.f32 %v2131_v55, %v595_v59  ;;  %v3155_v14 = vmul.f32 %v2643_v63, %v2130_v48  ;;  %v1118_v59 = vld [vmem:[%s4435_s5 + $0xaa0] sm:$0xff] }
 0x2f0   : > { %v3654_v9 = vadd.f32 %v3653_v2, %v3143_v58  ;;  %v596_v2 = vld [vmem:[%s4428_s19 + $0xa50] sm:$0xff]  ;;  %v2142_v4 = vsub.f32 %v1118_v59, %v1630_v60  ;;  %v1639_v59 = vld [vmem:[%s4441_s28 + $0xae8] sm:$0xff] }
 0x2f1   : > { %v2645_v13 = vmul.f32 %v2132_v62, %v596_v2  ;;  %v3156_v21 = vmul.f32 %v2644_v6, %v2131_v55  ;;  %v1119_v2 = vld [vmem:[%s4435_s5 + $0xaa8] sm:$0xff] }
 0x2f2   : > { %v3655_v16 = vadd.f32 %v3654_v9, %v3144_v1  ;;  %v597_v9 = vld [vmem:[%s4428_s19 + $0xa58] sm:$0xff]  ;;  %v2143_v11 = vsub.f32 %v1119_v2, %v1631_v3  ;;  %v1640_v2 = vld [vmem:[%s4441_s28 + $0xaf0] sm:$0xff] }
 0x2f3   : > { %v2646_v20 = vmul.f32 %v2133_v5, %v597_v9  ;;  %v3157_v28 = vmul.f32 %v2645_v13, %v2132_v62  ;;  %v1120_v9 = vld [vmem:[%s4435_s5 + $0xab0] sm:$0xff] }
 0x2f4   : > { %v3656_v23 = vadd.f32 %v3655_v16, %v3145_v8  ;;  %v598_v16 = vld [vmem:[%s4428_s19 + $0xa60] sm:$0xff]  ;;  %v2144_v18 = vsub.f32 %v1120_v9, %v1632_v10  ;;  %v1641_v9 = vld [vmem:[%s4441_s28 + $0xaf8] sm:$0xff] }
 0x2f5   : > { %v2647_v27 = vmul.f32 %v2134_v12, %v598_v16  ;;  %v3158_v35 = vmul.f32 %v2646_v20, %v2133_v5  ;;  %v1121_v16 = vld [vmem:[%s4435_s5 + $0xab8] sm:$0xff] }
 0x2f6   : > { %v3657_v30 = vadd.f32 %v3656_v23, %v3146_v15  ;;  %v599_v23 = vld [vmem:[%s4428_s19 + $0xa68] sm:$0xff]  ;;  %v2145_v25 = vsub.f32 %v1121_v16, %v1633_v17  ;;  %v1642_v16 = vld [vmem:[%s4441_s28 + $0xb00] sm:$0xff] }
 0x2f7   : > { %v2648_v34 = vmul.f32 %v2135_v19, %v599_v23  ;;  %v3159_v42 = vmul.f32 %v2647_v27, %v2134_v12  ;;  %v1122_v23 = vld [vmem:[%s4435_s5 + $0xac0] sm:$0xff] }
 0x2f8   : > { %v3658_v37 = vadd.f32 %v3657_v30, %v3147_v22  ;;  %v600_v30 = vld [vmem:[%s4428_s19 + $0xa70] sm:$0xff]  ;;  %v2146_v32 = vsub.f32 %v1122_v23, %v1634_v24  ;;  %v1643_v23 = vld [vmem:[%s4441_s28 + $0xb08] sm:$0xff] }
 0x2f9   : > { %v2649_v41 = vmul.f32 %v2136_v26, %v600_v30  ;;  %v3160_v49 = vmul.f32 %v2648_v34, %v2135_v19  ;;  %v1123_v30 = vld [vmem:[%s4435_s5 + $0xac8] sm:$0xff] }
 0x2fa   : > { %v3659_v44 = vadd.f32 %v3658_v37, %v3148_v29  ;;  %v601_v37 = vld [vmem:[%s4428_s19 + $0xa78] sm:$0xff]  ;;  %v2147_v39 = vsub.f32 %v1123_v30, %v1635_v31  ;;  %v1644_v30 = vld [vmem:[%s4441_s28 + $0xb10] sm:$0xff] }
 0x2fb   : > { %v2650_v48 = vmul.f32 %v2137_v33, %v601_v37  ;;  %v3161_v56 = vmul.f32 %v2649_v41, %v2136_v26  ;;  %v1124_v37 = vld [vmem:[%s4435_s5 + $0xad0] sm:$0xff] }
 0x2fc   : > { %v3660_v51 = vadd.f32 %v3659_v44, %v3149_v36  ;;  %v602_v44 = vld [vmem:[%s4428_s19 + $0xa80] sm:$0xff]  ;;  %v2148_v46 = vsub.f32 %v1124_v37, %v1636_v38  ;;  %v1645_v37 = vld [vmem:[%s4441_s28 + $0xb18] sm:$0xff] }
 0x2fd   : > { %v2651_v55 = vmul.f32 %v2138_v40, %v602_v44  ;;  %v3162_v63 = vmul.f32 %v2650_v48, %v2137_v33  ;;  %v1125_v44 = vld [vmem:[%s4435_s5 + $0xad8] sm:$0xff] }
 0x2fe   : > { %v3661_v58 = vadd.f32 %v3660_v51, %v3150_v43  ;;  %v603_v51 = vld [vmem:[%s4428_s19 + $0xa88] sm:$0xff]  ;;  %v2149_v53 = vsub.f32 %v1125_v44, %v1637_v45  ;;  %v1646_v44 = vld [vmem:[%s4441_s28 + $0xb20] sm:$0xff] }
 0x2ff   : > { %v2652_v62 = vmul.f32 %v2139_v47, %v603_v51  ;;  %v3163_v6 = vmul.f32 %v2651_v55, %v2138_v40  ;;  %v1126_v51 = vld [vmem:[%s4435_s5 + $0xae0] sm:$0xff] }
 0x300   : > { %v3662_v1 = vadd.f32 %v3661_v58, %v3151_v50  ;;  %v604_v58 = vld [vmem:[%s4428_s19 + $0xa90] sm:$0xff]  ;;  %v2150_v60 = vsub.f32 %v1126_v51, %v1638_v52  ;;  %v1647_v51 = vld [vmem:[%s4441_s28 + $0xb28] sm:$0xff] }
 0x301   : > { %v2653_v5 = vmul.f32 %v2140_v54, %v604_v58  ;;  %v3164_v13 = vmul.f32 %v2652_v62, %v2139_v47  ;;  %v1127_v58 = vld [vmem:[%s4435_s5 + $0xae8] sm:$0xff] }
 0x302   : > { %v3663_v8 = vadd.f32 %v3662_v1, %v3152_v57  ;;  %v605_v1 = vld [vmem:[%s4428_s19 + $0xa98] sm:$0xff]  ;;  %v2151_v3 = vsub.f32 %v1127_v58, %v1639_v59  ;;  %v1648_v58 = vld [vmem:[%s4441_s28 + $0xb30] sm:$0xff] }
 0x303   : > { %v2654_v12 = vmul.f32 %v2141_v61, %v605_v1  ;;  %v3165_v20 = vmul.f32 %v2653_v5, %v2140_v54  ;;  %v1128_v1 = vld [vmem:[%s4435_s5 + $0xaf0] sm:$0xff] }
 0x304   : > { %v3664_v15 = vadd.f32 %v3663_v8, %v3153_v0  ;;  %v606_v8 = vld [vmem:[%s4428_s19 + $0xaa0] sm:$0xff]  ;;  %v2152_v10 = vsub.f32 %v1128_v1, %v1640_v2  ;;  %v1649_v1 = vld [vmem:[%s4441_s28 + $0xb38] sm:$0xff] }
 0x305   : > { %v2655_v19 = vmul.f32 %v2142_v4, %v606_v8  ;;  %v3166_v27 = vmul.f32 %v2654_v12, %v2141_v61  ;;  %v1129_v8 = vld [vmem:[%s4435_s5 + $0xaf8] sm:$0xff] }
 0x306   : > { %v3665_v22 = vadd.f32 %v3664_v15, %v3154_v7  ;;  %v607_v15 = vld [vmem:[%s4428_s19 + $0xaa8] sm:$0xff]  ;;  %v2153_v17 = vsub.f32 %v1129_v8, %v1641_v9  ;;  %v1650_v8 = vld [vmem:[%s4441_s28 + $0xb40] sm:$0xff] }
 0x307   : > { %v2656_v26 = vmul.f32 %v2143_v11, %v607_v15  ;;  %v3167_v34 = vmul.f32 %v2655_v19, %v2142_v4  ;;  %v1130_v15 = vld [vmem:[%s4435_s5 + $0xb00] sm:$0xff] }
 0x308   : > { %v3666_v29 = vadd.f32 %v3665_v22, %v3155_v14  ;;  %v608_v22 = vld [vmem:[%s4428_s19 + $0xab0] sm:$0xff]  ;;  %v2154_v24 = vsub.f32 %v1130_v15, %v1642_v16  ;;  %v1651_v15 = vld [vmem:[%s4441_s28 + $0xb48] sm:$0xff] }
 0x309   : > { %v2657_v33 = vmul.f32 %v2144_v18, %v608_v22  ;;  %v3168_v41 = vmul.f32 %v2656_v26, %v2143_v11  ;;  %v1131_v22 = vld [vmem:[%s4435_s5 + $0xb08] sm:$0xff] }
 0x30a   : > { %v3667_v36 = vadd.f32 %v3666_v29, %v3156_v21  ;;  %v609_v29 = vld [vmem:[%s4428_s19 + $0xab8] sm:$0xff]  ;;  %v2155_v31 = vsub.f32 %v1131_v22, %v1643_v23  ;;  %v1652_v22 = vld [vmem:[%s4441_s28 + $0xb50] sm:$0xff] }
 0x30b   : > { %v2658_v40 = vmul.f32 %v2145_v25, %v609_v29  ;;  %v3169_v48 = vmul.f32 %v2657_v33, %v2144_v18  ;;  %v1132_v29 = vld [vmem:[%s4435_s5 + $0xb10] sm:$0xff] }
 0x30c   : > { %v3668_v43 = vadd.f32 %v3667_v36, %v3157_v28  ;;  %v610_v36 = vld [vmem:[%s4428_s19 + $0xac0] sm:$0xff]  ;;  %v2156_v38 = vsub.f32 %v1132_v29, %v1644_v30  ;;  %v1653_v29 = vld [vmem:[%s4441_s28 + $0xb58] sm:$0xff] }
 0x30d   : > { %v2659_v47 = vmul.f32 %v2146_v32, %v610_v36  ;;  %v3170_v55 = vmul.f32 %v2658_v40, %v2145_v25  ;;  %v1133_v36 = vld [vmem:[%s4435_s5 + $0xb18] sm:$0xff] }
 0x30e   : > { %v3669_v50 = vadd.f32 %v3668_v43, %v3158_v35  ;;  %v611_v43 = vld [vmem:[%s4428_s19 + $0xac8] sm:$0xff]  ;;  %v2157_v45 = vsub.f32 %v1133_v36, %v1645_v37  ;;  %v1654_v36 = vld [vmem:[%s4441_s28 + $0xb60] sm:$0xff] }
 0x30f   : > { %v2660_v54 = vmul.f32 %v2147_v39, %v611_v43  ;;  %v3171_v62 = vmul.f32 %v2659_v47, %v2146_v32  ;;  %v1134_v43 = vld [vmem:[%s4435_s5 + $0xb20] sm:$0xff] }
 0x310   : > { %v3670_v57 = vadd.f32 %v3669_v50, %v3159_v42  ;;  %v612_v50 = vld [vmem:[%s4428_s19 + $0xad0] sm:$0xff]  ;;  %v2158_v52 = vsub.f32 %v1134_v43, %v1646_v44  ;;  %v1655_v43 = vld [vmem:[%s4441_s28 + $0xb68] sm:$0xff] }
 0x311   : > { %v2661_v61 = vmul.f32 %v2148_v46, %v612_v50  ;;  %v3172_v5 = vmul.f32 %v2660_v54, %v2147_v39  ;;  %v1135_v50 = vld [vmem:[%s4435_s5 + $0xb28] sm:$0xff] }
 0x312   : > { %v3671_v0 = vadd.f32 %v3670_v57, %v3160_v49  ;;  %v613_v57 = vld [vmem:[%s4428_s19 + $0xad8] sm:$0xff]  ;;  %v2159_v59 = vsub.f32 %v1135_v50, %v1647_v51  ;;  %v1656_v50 = vld [vmem:[%s4441_s28 + $0xb70] sm:$0xff] }
 0x313   : > { %v2662_v4 = vmul.f32 %v2149_v53, %v613_v57  ;;  %v3173_v12 = vmul.f32 %v2661_v61, %v2148_v46  ;;  %v1136_v57 = vld [vmem:[%s4435_s5 + $0xb30] sm:$0xff] }
 0x314   : > { %v3672_v7 = vadd.f32 %v3671_v0, %v3161_v56  ;;  %v614_v0 = vld [vmem:[%s4428_s19 + $0xae0] sm:$0xff]  ;;  %v2160_v2 = vsub.f32 %v1136_v57, %v1648_v58  ;;  %v1657_v57 = vld [vmem:[%s4441_s28 + $0xb78] sm:$0xff] }
 0x315   : > { %v2663_v11 = vmul.f32 %v2150_v60, %v614_v0  ;;  %v3174_v19 = vmul.f32 %v2662_v4, %v2149_v53  ;;  %v1137_v0 = vld [vmem:[%s4435_s5 + $0xb38] sm:$0xff] }
 0x316   : > { %v3673_v14 = vadd.f32 %v3672_v7, %v3162_v63  ;;  %v615_v7 = vld [vmem:[%s4428_s19 + $0xae8] sm:$0xff]  ;;  %v2161_v9 = vsub.f32 %v1137_v0, %v1649_v1  ;;  %v1658_v0 = vld [vmem:[%s4441_s28 + $0xb80] sm:$0xff] }
 0x317   : > { %v2664_v18 = vmul.f32 %v2151_v3, %v615_v7  ;;  %v3175_v26 = vmul.f32 %v2663_v11, %v2150_v60  ;;  %v1138_v7 = vld [vmem:[%s4435_s5 + $0xb40] sm:$0xff] }
 0x318   : > { %v3674_v21 = vadd.f32 %v3673_v14, %v3163_v6  ;;  %v616_v14 = vld [vmem:[%s4428_s19 + $0xaf0] sm:$0xff]  ;;  %v2162_v16 = vsub.f32 %v1138_v7, %v1650_v8  ;;  %v1659_v7 = vld [vmem:[%s4441_s28 + $0xb88] sm:$0xff] }
 0x319   : > { %v2665_v25 = vmul.f32 %v2152_v10, %v616_v14  ;;  %v3176_v33 = vmul.f32 %v2664_v18, %v2151_v3  ;;  %v1139_v14 = vld [vmem:[%s4435_s5 + $0xb48] sm:$0xff] }
 0x31a   : > { %v3675_v28 = vadd.f32 %v3674_v21, %v3164_v13  ;;  %v617_v21 = vld [vmem:[%s4428_s19 + $0xaf8] sm:$0xff]  ;;  %v2163_v23 = vsub.f32 %v1139_v14, %v1651_v15  ;;  %v1660_v14 = vld [vmem:[%s4441_s28 + $0xb90] sm:$0xff] }
 0x31b   : > { %v2666_v32 = vmul.f32 %v2153_v17, %v617_v21  ;;  %v3177_v40 = vmul.f32 %v2665_v25, %v2152_v10  ;;  %v1140_v21 = vld [vmem:[%s4435_s5 + $0xb50] sm:$0xff] }
 0x31c   : > { %v3676_v35 = vadd.f32 %v3675_v28, %v3165_v20  ;;  %v618_v28 = vld [vmem:[%s4428_s19 + $0xb00] sm:$0xff]  ;;  %v2164_v30 = vsub.f32 %v1140_v21, %v1652_v22  ;;  %v1661_v21 = vld [vmem:[%s4441_s28 + $0xb98] sm:$0xff] }
 0x31d   : > { %v2667_v39 = vmul.f32 %v2154_v24, %v618_v28  ;;  %v3178_v47 = vmul.f32 %v2666_v32, %v2153_v17  ;;  %v1141_v28 = vld [vmem:[%s4435_s5 + $0xb58] sm:$0xff] }
 0x31e   : > { %v3677_v42 = vadd.f32 %v3676_v35, %v3166_v27  ;;  %v619_v35 = vld [vmem:[%s4428_s19 + $0xb08] sm:$0xff]  ;;  %v2165_v37 = vsub.f32 %v1141_v28, %v1653_v29  ;;  %v1662_v28 = vld [vmem:[%s4441_s28 + $0xba0] sm:$0xff] }
 0x31f   : > { %v2668_v46 = vmul.f32 %v2155_v31, %v619_v35  ;;  %v3179_v54 = vmul.f32 %v2667_v39, %v2154_v24  ;;  %v1142_v35 = vld [vmem:[%s4435_s5 + $0xb60] sm:$0xff] }
 0x320   : > { %v3678_v49 = vadd.f32 %v3677_v42, %v3167_v34  ;;  %v620_v42 = vld [vmem:[%s4428_s19 + $0xb10] sm:$0xff]  ;;  %v2166_v44 = vsub.f32 %v1142_v35, %v1654_v36  ;;  %v1663_v35 = vld [vmem:[%s4441_s28 + $0xba8] sm:$0xff] }
 0x321   : > { %v2669_v53 = vmul.f32 %v2156_v38, %v620_v42  ;;  %v3180_v61 = vmul.f32 %v2668_v46, %v2155_v31  ;;  %v1143_v42 = vld [vmem:[%s4435_s5 + $0xb68] sm:$0xff] }
 0x322   : > { %v3679_v56 = vadd.f32 %v3678_v49, %v3168_v41  ;;  %v621_v49 = vld [vmem:[%s4428_s19 + $0xb18] sm:$0xff]  ;;  %v2167_v51 = vsub.f32 %v1143_v42, %v1655_v43  ;;  %v1664_v42 = vld [vmem:[%s4441_s28 + $0xbb0] sm:$0xff] }
 0x323   : > { %v2670_v60 = vmul.f32 %v2157_v45, %v621_v49  ;;  %v3181_v4 = vmul.f32 %v2669_v53, %v2156_v38  ;;  %v1144_v49 = vld [vmem:[%s4435_s5 + $0xb70] sm:$0xff] }
 0x324   : > { %v3680_v63 = vadd.f32 %v3679_v56, %v3169_v48  ;;  %v622_v56 = vld [vmem:[%s4428_s19 + $0xb20] sm:$0xff]  ;;  %v2168_v58 = vsub.f32 %v1144_v49, %v1656_v50  ;;  %v1665_v49 = vld [vmem:[%s4441_s28 + $0xbb8] sm:$0xff] }
 0x325   : > { %v2671_v3 = vmul.f32 %v2158_v52, %v622_v56  ;;  %v3182_v11 = vmul.f32 %v2670_v60, %v2157_v45  ;;  %v1145_v56 = vld [vmem:[%s4435_s5 + $0xb78] sm:$0xff] }
 0x326   : > { %v3681_v6 = vadd.f32 %v3680_v63, %v3170_v55  ;;  %v623_v63 = vld [vmem:[%s4428_s19 + $0xb28] sm:$0xff]  ;;  %v2169_v1 = vsub.f32 %v1145_v56, %v1657_v57  ;;  %v1666_v56 = vld [vmem:[%s4441_s28 + $0xbc0] sm:$0xff] }
 0x327   : > { %v2672_v10 = vmul.f32 %v2159_v59, %v623_v63  ;;  %v3183_v18 = vmul.f32 %v2671_v3, %v2158_v52  ;;  %v1146_v63 = vld [vmem:[%s4435_s5 + $0xb80] sm:$0xff] }
 0x328   : > { %v3682_v13 = vadd.f32 %v3681_v6, %v3171_v62  ;;  %v624_v6 = vld [vmem:[%s4428_s19 + $0xb30] sm:$0xff]  ;;  %v2170_v8 = vsub.f32 %v1146_v63, %v1658_v0  ;;  %v1667_v63 = vld [vmem:[%s4441_s28 + $0xbc8] sm:$0xff] }
 0x329   : > { %v2673_v17 = vmul.f32 %v2160_v2, %v624_v6  ;;  %v3184_v25 = vmul.f32 %v2672_v10, %v2159_v59  ;;  %v1147_v6 = vld [vmem:[%s4435_s5 + $0xb88] sm:$0xff] }
 0x32a   : > { %v3683_v20 = vadd.f32 %v3682_v13, %v3172_v5  ;;  %v625_v13 = vld [vmem:[%s4428_s19 + $0xb38] sm:$0xff]  ;;  %v2171_v15 = vsub.f32 %v1147_v6, %v1659_v7  ;;  %v1668_v6 = vld [vmem:[%s4441_s28 + $0xbd0] sm:$0xff] }
 0x32b   : > { %v2674_v24 = vmul.f32 %v2161_v9, %v625_v13  ;;  %v3185_v32 = vmul.f32 %v2673_v17, %v2160_v2  ;;  %v1148_v13 = vld [vmem:[%s4435_s5 + $0xb90] sm:$0xff] }
 0x32c   : > { %v3684_v27 = vadd.f32 %v3683_v20, %v3173_v12  ;;  %v626_v20 = vld [vmem:[%s4428_s19 + $0xb40] sm:$0xff]  ;;  %v2172_v22 = vsub.f32 %v1148_v13, %v1660_v14  ;;  %v1669_v13 = vld [vmem:[%s4441_s28 + $0xbd8] sm:$0xff] }
 0x32d   : > { %v2675_v31 = vmul.f32 %v2162_v16, %v626_v20  ;;  %v3186_v39 = vmul.f32 %v2674_v24, %v2161_v9  ;;  %v1149_v20 = vld [vmem:[%s4435_s5 + $0xb98] sm:$0xff] }
 0x32e   : > { %v3685_v34 = vadd.f32 %v3684_v27, %v3174_v19  ;;  %v627_v27 = vld [vmem:[%s4428_s19 + $0xb48] sm:$0xff]  ;;  %v2173_v29 = vsub.f32 %v1149_v20, %v1661_v21  ;;  %v1670_v20 = vld [vmem:[%s4441_s28 + $0xbe0] sm:$0xff] }
 0x32f   : > { %v2676_v38 = vmul.f32 %v2163_v23, %v627_v27  ;;  %v3187_v46 = vmul.f32 %v2675_v31, %v2162_v16  ;;  %v1150_v27 = vld [vmem:[%s4435_s5 + $0xba0] sm:$0xff] }
 0x330   : > { %v3686_v41 = vadd.f32 %v3685_v34, %v3175_v26  ;;  %v628_v34 = vld [vmem:[%s4428_s19 + $0xb50] sm:$0xff]  ;;  %v2174_v36 = vsub.f32 %v1150_v27, %v1662_v28  ;;  %v1671_v27 = vld [vmem:[%s4441_s28 + $0xbe8] sm:$0xff] }
 0x331   : > { %v2677_v45 = vmul.f32 %v2164_v30, %v628_v34  ;;  %v3188_v53 = vmul.f32 %v2676_v38, %v2163_v23  ;;  %v1151_v34 = vld [vmem:[%s4435_s5 + $0xba8] sm:$0xff] }
 0x332   : > { %v3687_v48 = vadd.f32 %v3686_v41, %v3176_v33  ;;  %v629_v41 = vld [vmem:[%s4428_s19 + $0xb58] sm:$0xff]  ;;  %v2175_v43 = vsub.f32 %v1151_v34, %v1663_v35  ;;  %v1672_v34 = vld [vmem:[%s4441_s28 + $0xbf0] sm:$0xff] }
 0x333   : > { %v2678_v52 = vmul.f32 %v2165_v37, %v629_v41  ;;  %v3189_v60 = vmul.f32 %v2677_v45, %v2164_v30  ;;  %v1152_v41 = vld [vmem:[%s4435_s5 + $0xbb0] sm:$0xff] }
 0x334   : > { %v3688_v55 = vadd.f32 %v3687_v48, %v3177_v40  ;;  %v630_v48 = vld [vmem:[%s4428_s19 + $0xb60] sm:$0xff]  ;;  %v2176_v50 = vsub.f32 %v1152_v41, %v1664_v42  ;;  %v1673_v41 = vld [vmem:[%s4441_s28 + $0xbf8] sm:$0xff] }
 0x335   : > { %v2679_v59 = vmul.f32 %v2166_v44, %v630_v48  ;;  %v3190_v3 = vmul.f32 %v2678_v52, %v2165_v37  ;;  %v1153_v48 = vld [vmem:[%s4435_s5 + $0xbb8] sm:$0xff] }
 0x336   : > { %v3689_v62 = vadd.f32 %v3688_v55, %v3178_v47  ;;  %v631_v55 = vld [vmem:[%s4428_s19 + $0xb68] sm:$0xff]  ;;  %v2177_v57 = vsub.f32 %v1153_v48, %v1665_v49  ;;  %v1674_v48 = vld [vmem:[%s4441_s28 + $0xc00] sm:$0xff] }
 0x337   : > { %v2680_v2 = vmul.f32 %v2167_v51, %v631_v55  ;;  %v3191_v10 = vmul.f32 %v2679_v59, %v2166_v44  ;;  %v1154_v55 = vld [vmem:[%s4435_s5 + $0xbc0] sm:$0xff] }
 0x338   : > { %v3690_v5 = vadd.f32 %v3689_v62, %v3179_v54  ;;  %v632_v62 = vld [vmem:[%s4428_s19 + $0xb70] sm:$0xff]  ;;  %v2178_v0 = vsub.f32 %v1154_v55, %v1666_v56  ;;  %v1675_v55 = vld [vmem:[%s4441_s28 + $0xc08] sm:$0xff] }
 0x339   : > { %v2681_v9 = vmul.f32 %v2168_v58, %v632_v62  ;;  %v3192_v17 = vmul.f32 %v2680_v2, %v2167_v51  ;;  %v1155_v62 = vld [vmem:[%s4435_s5 + $0xbc8] sm:$0xff] }
 0x33a   : > { %v3691_v12 = vadd.f32 %v3690_v5, %v3180_v61  ;;  %v633_v5 = vld [vmem:[%s4428_s19 + $0xb78] sm:$0xff]  ;;  %v2179_v7 = vsub.f32 %v1155_v62, %v1667_v63  ;;  %v1676_v62 = vld [vmem:[%s4441_s28 + $0xc10] sm:$0xff] }
 0x33b   : > { %v2682_v16 = vmul.f32 %v2169_v1, %v633_v5  ;;  %v3193_v24 = vmul.f32 %v2681_v9, %v2168_v58  ;;  %v1156_v5 = vld [vmem:[%s4435_s5 + $0xbd0] sm:$0xff] }
 0x33c   : > { %v3692_v19 = vadd.f32 %v3691_v12, %v3181_v4  ;;  %v634_v12 = vld [vmem:[%s4428_s19 + $0xb80] sm:$0xff]  ;;  %v2180_v14 = vsub.f32 %v1156_v5, %v1668_v6  ;;  %v1677_v5 = vld [vmem:[%s4441_s28 + $0xc18] sm:$0xff] }
 0x33d   : > { %v2683_v23 = vmul.f32 %v2170_v8, %v634_v12  ;;  %v3194_v31 = vmul.f32 %v2682_v16, %v2169_v1  ;;  %v1157_v12 = vld [vmem:[%s4435_s5 + $0xbd8] sm:$0xff] }
 0x33e   : > { %v3693_v26 = vadd.f32 %v3692_v19, %v3182_v11  ;;  %v635_v19 = vld [vmem:[%s4428_s19 + $0xb88] sm:$0xff]  ;;  %v2181_v21 = vsub.f32 %v1157_v12, %v1669_v13  ;;  %v1678_v12 = vld [vmem:[%s4441_s28 + $0xc20] sm:$0xff] }
 0x33f   : > { %v2684_v30 = vmul.f32 %v2171_v15, %v635_v19  ;;  %v3195_v38 = vmul.f32 %v2683_v23, %v2170_v8  ;;  %v1158_v19 = vld [vmem:[%s4435_s5 + $0xbe0] sm:$0xff] }
 0x340   : > { %v3694_v33 = vadd.f32 %v3693_v26, %v3183_v18  ;;  %v636_v26 = vld [vmem:[%s4428_s19 + $0xb90] sm:$0xff]  ;;  %v2182_v28 = vsub.f32 %v1158_v19, %v1670_v20  ;;  %v1679_v19 = vld [vmem:[%s4441_s28 + $0xc28] sm:$0xff] }
 0x341   : > { %v2685_v37 = vmul.f32 %v2172_v22, %v636_v26  ;;  %v3196_v45 = vmul.f32 %v2684_v30, %v2171_v15  ;;  %v1159_v26 = vld [vmem:[%s4435_s5 + $0xbe8] sm:$0xff] }
 0x342   : > { %v3695_v40 = vadd.f32 %v3694_v33, %v3184_v25  ;;  %v637_v33 = vld [vmem:[%s4428_s19 + $0xb98] sm:$0xff]  ;;  %v2183_v35 = vsub.f32 %v1159_v26, %v1671_v27  ;;  %v1680_v26 = vld [vmem:[%s4441_s28 + $0xc30] sm:$0xff] }
 0x343   : > { %v2686_v44 = vmul.f32 %v2173_v29, %v637_v33  ;;  %v3197_v52 = vmul.f32 %v2685_v37, %v2172_v22  ;;  %v1160_v33 = vld [vmem:[%s4435_s5 + $0xbf0] sm:$0xff] }
 0x344   : > { %v3696_v47 = vadd.f32 %v3695_v40, %v3185_v32  ;;  %v638_v40 = vld [vmem:[%s4428_s19 + $0xba0] sm:$0xff]  ;;  %v2184_v42 = vsub.f32 %v1160_v33, %v1672_v34  ;;  %v1681_v33 = vld [vmem:[%s4441_s28 + $0xc38] sm:$0xff] }
 0x345   : > { %v2687_v51 = vmul.f32 %v2174_v36, %v638_v40  ;;  %v3198_v59 = vmul.f32 %v2686_v44, %v2173_v29  ;;  %v1161_v40 = vld [vmem:[%s4435_s5 + $0xbf8] sm:$0xff] }
 0x346   : > { %v3697_v54 = vadd.f32 %v3696_v47, %v3186_v39  ;;  %v639_v47 = vld [vmem:[%s4428_s19 + $0xba8] sm:$0xff]  ;;  %v2185_v49 = vsub.f32 %v1161_v40, %v1673_v41  ;;  %v1682_v40 = vld [vmem:[%s4441_s28 + $0xc40] sm:$0xff] }
 0x347   : > { %v2688_v58 = vmul.f32 %v2175_v43, %v639_v47  ;;  %v3199_v2 = vmul.f32 %v2687_v51, %v2174_v36  ;;  %v1162_v47 = vld [vmem:[%s4435_s5 + $0xc00] sm:$0xff] }
 0x348   : > { %v3698_v61 = vadd.f32 %v3697_v54, %v3187_v46  ;;  %v640_v54 = vld [vmem:[%s4428_s19 + $0xbb0] sm:$0xff]  ;;  %v2186_v56 = vsub.f32 %v1162_v47, %v1674_v48  ;;  %v1683_v47 = vld [vmem:[%s4441_s28 + $0xc48] sm:$0xff] }
 0x349   : > { %v2689_v1 = vmul.f32 %v2176_v50, %v640_v54  ;;  %v3200_v9 = vmul.f32 %v2688_v58, %v2175_v43  ;;  %v1163_v54 = vld [vmem:[%s4435_s5 + $0xc08] sm:$0xff] }
 0x34a   : > { %v3699_v4 = vadd.f32 %v3698_v61, %v3188_v53  ;;  %v641_v61 = vld [vmem:[%s4428_s19 + $0xbb8] sm:$0xff]  ;;  %v2187_v63 = vsub.f32 %v1163_v54, %v1675_v55  ;;  %v1684_v54 = vld [vmem:[%s4441_s28 + $0xc50] sm:$0xff] }
 0x34b   : > { %v2690_v8 = vmul.f32 %v2177_v57, %v641_v61  ;;  %v3201_v16 = vmul.f32 %v2689_v1, %v2176_v50  ;;  %v1164_v61 = vld [vmem:[%s4435_s5 + $0xc10] sm:$0xff] }
 0x34c   : > { %v3700_v11 = vadd.f32 %v3699_v4, %v3189_v60  ;;  %v642_v4 = vld [vmem:[%s4428_s19 + $0xbc0] sm:$0xff]  ;;  %v2188_v6 = vsub.f32 %v1164_v61, %v1676_v62  ;;  %v1685_v61 = vld [vmem:[%s4441_s28 + $0xc58] sm:$0xff] }
 0x34d   : > { %v2691_v15 = vmul.f32 %v2178_v0, %v642_v4  ;;  %v3202_v23 = vmul.f32 %v2690_v8, %v2177_v57  ;;  %v1165_v4 = vld [vmem:[%s4435_s5 + $0xc18] sm:$0xff] }
 0x34e   : > { %v3701_v18 = vadd.f32 %v3700_v11, %v3190_v3  ;;  %v643_v11 = vld [vmem:[%s4428_s19 + $0xbc8] sm:$0xff]  ;;  %v2189_v13 = vsub.f32 %v1165_v4, %v1677_v5  ;;  %v1686_v4 = vld [vmem:[%s4441_s28 + $0xc60] sm:$0xff] }
 0x34f   : > { %v2692_v22 = vmul.f32 %v2179_v7, %v643_v11  ;;  %v3203_v30 = vmul.f32 %v2691_v15, %v2178_v0  ;;  %v1166_v11 = vld [vmem:[%s4435_s5 + $0xc20] sm:$0xff] }
 0x350   : > { %v3702_v25 = vadd.f32 %v3701_v18, %v3191_v10  ;;  %v644_v18 = vld [vmem:[%s4428_s19 + $0xbd0] sm:$0xff]  ;;  %v2190_v20 = vsub.f32 %v1166_v11, %v1678_v12  ;;  %v1687_v11 = vld [vmem:[%s4441_s28 + $0xc68] sm:$0xff] }
 0x351   : > { %v2693_v29 = vmul.f32 %v2180_v14, %v644_v18  ;;  %v3204_v37 = vmul.f32 %v2692_v22, %v2179_v7  ;;  %v1167_v18 = vld [vmem:[%s4435_s5 + $0xc28] sm:$0xff] }
 0x352   : > { %v3703_v32 = vadd.f32 %v3702_v25, %v3192_v17  ;;  %v645_v25 = vld [vmem:[%s4428_s19 + $0xbd8] sm:$0xff]  ;;  %v2191_v27 = vsub.f32 %v1167_v18, %v1679_v19  ;;  %v1688_v18 = vld [vmem:[%s4441_s28 + $0xc70] sm:$0xff] }
 0x353   : > { %v2694_v36 = vmul.f32 %v2181_v21, %v645_v25  ;;  %v3205_v44 = vmul.f32 %v2693_v29, %v2180_v14  ;;  %v1168_v25 = vld [vmem:[%s4435_s5 + $0xc30] sm:$0xff] }
 0x354   : > { %v3704_v39 = vadd.f32 %v3703_v32, %v3193_v24  ;;  %v646_v32 = vld [vmem:[%s4428_s19 + $0xbe0] sm:$0xff]  ;;  %v2192_v34 = vsub.f32 %v1168_v25, %v1680_v26  ;;  %v1689_v25 = vld [vmem:[%s4441_s28 + $0xc78] sm:$0xff] }
 0x355   : > { %v2695_v43 = vmul.f32 %v2182_v28, %v646_v32  ;;  %v3206_v51 = vmul.f32 %v2694_v36, %v2181_v21  ;;  %v1169_v32 = vld [vmem:[%s4435_s5 + $0xc38] sm:$0xff] }
 0x356   : > { %v3705_v46 = vadd.f32 %v3704_v39, %v3194_v31  ;;  %v647_v39 = vld [vmem:[%s4428_s19 + $0xbe8] sm:$0xff]  ;;  %v2193_v41 = vsub.f32 %v1169_v32, %v1681_v33  ;;  %v1690_v32 = vld [vmem:[%s4441_s28 + $0xc80] sm:$0xff] }
 0x357   : > { %v2696_v50 = vmul.f32 %v2183_v35, %v647_v39  ;;  %v3207_v58 = vmul.f32 %v2695_v43, %v2182_v28  ;;  %v1170_v39 = vld [vmem:[%s4435_s5 + $0xc40] sm:$0xff] }
 0x358   : > { %v3706_v53 = vadd.f32 %v3705_v46, %v3195_v38  ;;  %v648_v46 = vld [vmem:[%s4428_s19 + $0xbf0] sm:$0xff]  ;;  %v2194_v48 = vsub.f32 %v1170_v39, %v1682_v40  ;;  %v1691_v39 = vld [vmem:[%s4441_s28 + $0xc88] sm:$0xff] }
 0x359   : > { %v2697_v57 = vmul.f32 %v2184_v42, %v648_v46  ;;  %v3208_v1 = vmul.f32 %v2696_v50, %v2183_v35  ;;  %v1171_v46 = vld [vmem:[%s4435_s5 + $0xc48] sm:$0xff] }
 0x35a   : > { %v3707_v60 = vadd.f32 %v3706_v53, %v3196_v45  ;;  %v649_v53 = vld [vmem:[%s4428_s19 + $0xbf8] sm:$0xff]  ;;  %v2195_v55 = vsub.f32 %v1171_v46, %v1683_v47  ;;  %v1692_v46 = vld [vmem:[%s4441_s28 + $0xc90] sm:$0xff] }
 0x35b   : > { %v2698_v0 = vmul.f32 %v2185_v49, %v649_v53  ;;  %v3209_v8 = vmul.f32 %v2697_v57, %v2184_v42  ;;  %v1172_v53 = vld [vmem:[%s4435_s5 + $0xc50] sm:$0xff] }
 0x35c   : > { %v3708_v3 = vadd.f32 %v3707_v60, %v3197_v52  ;;  %v650_v60 = vld [vmem:[%s4428_s19 + $0xc00] sm:$0xff]  ;;  %v2196_v62 = vsub.f32 %v1172_v53, %v1684_v54  ;;  %v1693_v53 = vld [vmem:[%s4441_s28 + $0xc98] sm:$0xff] }
 0x35d   : > { %v2699_v7 = vmul.f32 %v2186_v56, %v650_v60  ;;  %v3210_v15 = vmul.f32 %v2698_v0, %v2185_v49  ;;  %v1173_v60 = vld [vmem:[%s4435_s5 + $0xc58] sm:$0xff] }
 0x35e   : > { %v3709_v10 = vadd.f32 %v3708_v3, %v3198_v59  ;;  %v651_v3 = vld [vmem:[%s4428_s19 + $0xc08] sm:$0xff]  ;;  %v2197_v5 = vsub.f32 %v1173_v60, %v1685_v61  ;;  %v1694_v60 = vld [vmem:[%s4441_s28 + $0xca0] sm:$0xff] }
 0x35f   : > { %v2700_v14 = vmul.f32 %v2187_v63, %v651_v3  ;;  %v3211_v22 = vmul.f32 %v2699_v7, %v2186_v56  ;;  %v1174_v3 = vld [vmem:[%s4435_s5 + $0xc60] sm:$0xff] }
 0x360   : > { %v3710_v17 = vadd.f32 %v3709_v10, %v3199_v2  ;;  %v652_v10 = vld [vmem:[%s4428_s19 + $0xc10] sm:$0xff]  ;;  %v2198_v12 = vsub.f32 %v1174_v3, %v1686_v4  ;;  %v1695_v3 = vld [vmem:[%s4441_s28 + $0xca8] sm:$0xff] }
 0x361   : > { %v2701_v21 = vmul.f32 %v2188_v6, %v652_v10  ;;  %v3212_v29 = vmul.f32 %v2700_v14, %v2187_v63  ;;  %v1175_v10 = vld [vmem:[%s4435_s5 + $0xc68] sm:$0xff] }
 0x362   : > { %v3711_v24 = vadd.f32 %v3710_v17, %v3200_v9  ;;  %v653_v17 = vld [vmem:[%s4428_s19 + $0xc18] sm:$0xff]  ;;  %v2199_v19 = vsub.f32 %v1175_v10, %v1687_v11  ;;  %v1696_v10 = vld [vmem:[%s4441_s28 + $0xcb0] sm:$0xff] }
 0x363   : > { %v2702_v28 = vmul.f32 %v2189_v13, %v653_v17  ;;  %v3213_v36 = vmul.f32 %v2701_v21, %v2188_v6  ;;  %v1176_v17 = vld [vmem:[%s4435_s5 + $0xc70] sm:$0xff] }
 0x364   : > { %v3712_v31 = vadd.f32 %v3711_v24, %v3201_v16  ;;  %v654_v24 = vld [vmem:[%s4428_s19 + $0xc20] sm:$0xff]  ;;  %v2200_v26 = vsub.f32 %v1176_v17, %v1688_v18  ;;  %v1697_v17 = vld [vmem:[%s4441_s28 + $0xcb8] sm:$0xff] }
 0x365   : > { %v2703_v35 = vmul.f32 %v2190_v20, %v654_v24  ;;  %v3214_v43 = vmul.f32 %v2702_v28, %v2189_v13  ;;  %v1177_v24 = vld [vmem:[%s4435_s5 + $0xc78] sm:$0xff] }
 0x366   : > { %v3713_v38 = vadd.f32 %v3712_v31, %v3202_v23  ;;  %v655_v31 = vld [vmem:[%s4428_s19 + $0xc28] sm:$0xff]  ;;  %v2201_v33 = vsub.f32 %v1177_v24, %v1689_v25  ;;  %v1698_v24 = vld [vmem:[%s4441_s28 + $0xcc0] sm:$0xff] }
 0x367   : > { %v2704_v42 = vmul.f32 %v2191_v27, %v655_v31  ;;  %v3215_v50 = vmul.f32 %v2703_v35, %v2190_v20  ;;  %v1178_v31 = vld [vmem:[%s4435_s5 + $0xc80] sm:$0xff] }
 0x368   : > { %v3714_v45 = vadd.f32 %v3713_v38, %v3203_v30  ;;  %v656_v38 = vld [vmem:[%s4428_s19 + $0xc30] sm:$0xff]  ;;  %v2202_v40 = vsub.f32 %v1178_v31, %v1690_v32  ;;  %v1699_v31 = vld [vmem:[%s4441_s28 + $0xcc8] sm:$0xff] }
 0x369   : > { %v2705_v49 = vmul.f32 %v2192_v34, %v656_v38  ;;  %v3216_v57 = vmul.f32 %v2704_v42, %v2191_v27  ;;  %v1179_v38 = vld [vmem:[%s4435_s5 + $0xc88] sm:$0xff] }
 0x36a   : > { %v3715_v52 = vadd.f32 %v3714_v45, %v3204_v37  ;;  %v657_v45 = vld [vmem:[%s4428_s19 + $0xc38] sm:$0xff]  ;;  %v2203_v47 = vsub.f32 %v1179_v38, %v1691_v39  ;;  %v1700_v38 = vld [vmem:[%s4441_s28 + $0xcd0] sm:$0xff] }
 0x36b   : > { %v2706_v56 = vmul.f32 %v2193_v41, %v657_v45  ;;  %v3217_v0 = vmul.f32 %v2705_v49, %v2192_v34  ;;  %v1180_v45 = vld [vmem:[%s4435_s5 + $0xc90] sm:$0xff] }
 0x36c   : > { %v3716_v59 = vadd.f32 %v3715_v52, %v3205_v44  ;;  %v658_v52 = vld [vmem:[%s4428_s19 + $0xc40] sm:$0xff]  ;;  %v2204_v54 = vsub.f32 %v1180_v45, %v1692_v46  ;;  %v1701_v45 = vld [vmem:[%s4441_s28 + $0xcd8] sm:$0xff] }
 0x36d   : > { %v2707_v63 = vmul.f32 %v2194_v48, %v658_v52  ;;  %v3218_v7 = vmul.f32 %v2706_v56, %v2193_v41  ;;  %v1181_v52 = vld [vmem:[%s4435_s5 + $0xc98] sm:$0xff] }
 0x36e   : > { %v3717_v2 = vadd.f32 %v3716_v59, %v3206_v51  ;;  %v659_v59 = vld [vmem:[%s4428_s19 + $0xc48] sm:$0xff]  ;;  %v2205_v61 = vsub.f32 %v1181_v52, %v1693_v53  ;;  %v1702_v52 = vld [vmem:[%s4441_s28 + $0xce0] sm:$0xff] }
 0x36f   : > { %v2708_v6 = vmul.f32 %v2195_v55, %v659_v59  ;;  %v3219_v14 = vmul.f32 %v2707_v63, %v2194_v48  ;;  %v1182_v59 = vld [vmem:[%s4435_s5 + $0xca0] sm:$0xff] }
 0x370   : > { %v3718_v9 = vadd.f32 %v3717_v2, %v3207_v58  ;;  %v660_v2 = vld [vmem:[%s4428_s19 + $0xc50] sm:$0xff]  ;;  %v2206_v4 = vsub.f32 %v1182_v59, %v1694_v60  ;;  %v1703_v59 = vld [vmem:[%s4441_s28 + $0xce8] sm:$0xff] }
 0x371   : > { %v2709_v13 = vmul.f32 %v2196_v62, %v660_v2  ;;  %v3220_v21 = vmul.f32 %v2708_v6, %v2195_v55  ;;  %v1183_v2 = vld [vmem:[%s4435_s5 + $0xca8] sm:$0xff] }
 0x372   : > { %v3719_v16 = vadd.f32 %v3718_v9, %v3208_v1  ;;  %v661_v9 = vld [vmem:[%s4428_s19 + $0xc58] sm:$0xff]  ;;  %v2207_v11 = vsub.f32 %v1183_v2, %v1695_v3  ;;  %v1704_v2 = vld [vmem:[%s4441_s28 + $0xcf0] sm:$0xff] }
 0x373   : > { %v2710_v20 = vmul.f32 %v2197_v5, %v661_v9  ;;  %v3221_v28 = vmul.f32 %v2709_v13, %v2196_v62  ;;  %v1184_v9 = vld [vmem:[%s4435_s5 + $0xcb0] sm:$0xff] }
 0x374   : > { %v3720_v23 = vadd.f32 %v3719_v16, %v3209_v8  ;;  %v662_v16 = vld [vmem:[%s4428_s19 + $0xc60] sm:$0xff]  ;;  %v2208_v18 = vsub.f32 %v1184_v9, %v1696_v10  ;;  %v1705_v9 = vld [vmem:[%s4441_s28 + $0xcf8] sm:$0xff] }
 0x375   : > { %v2711_v27 = vmul.f32 %v2198_v12, %v662_v16  ;;  %v3222_v35 = vmul.f32 %v2710_v20, %v2197_v5  ;;  %v1185_v16 = vld [vmem:[%s4435_s5 + $0xcb8] sm:$0xff] }
 0x376   : > { %v3721_v30 = vadd.f32 %v3720_v23, %v3210_v15  ;;  %v663_v23 = vld [vmem:[%s4428_s19 + $0xc68] sm:$0xff]  ;;  %v2209_v25 = vsub.f32 %v1185_v16, %v1697_v17  ;;  %v1706_v16 = vld [vmem:[%s4441_s28 + $0xd00] sm:$0xff] }
 0x377   : > { %v2712_v34 = vmul.f32 %v2199_v19, %v663_v23  ;;  %v3223_v42 = vmul.f32 %v2711_v27, %v2198_v12  ;;  %v1186_v23 = vld [vmem:[%s4435_s5 + $0xcc0] sm:$0xff] }
 0x378   : > { %v3722_v37 = vadd.f32 %v3721_v30, %v3211_v22  ;;  %v664_v30 = vld [vmem:[%s4428_s19 + $0xc70] sm:$0xff]  ;;  %v2210_v32 = vsub.f32 %v1186_v23, %v1698_v24  ;;  %v1707_v23 = vld [vmem:[%s4441_s28 + $0xd08] sm:$0xff] }
 0x379   : > { %v2713_v41 = vmul.f32 %v2200_v26, %v664_v30  ;;  %v3224_v49 = vmul.f32 %v2712_v34, %v2199_v19  ;;  %v1187_v30 = vld [vmem:[%s4435_s5 + $0xcc8] sm:$0xff] }
 0x37a   : > { %v3723_v44 = vadd.f32 %v3722_v37, %v3212_v29  ;;  %v665_v37 = vld [vmem:[%s4428_s19 + $0xc78] sm:$0xff]  ;;  %v2211_v39 = vsub.f32 %v1187_v30, %v1699_v31  ;;  %v1708_v30 = vld [vmem:[%s4441_s28 + $0xd10] sm:$0xff] }
 0x37b   : > { %v2714_v48 = vmul.f32 %v2201_v33, %v665_v37  ;;  %v3225_v56 = vmul.f32 %v2713_v41, %v2200_v26  ;;  %v1188_v37 = vld [vmem:[%s4435_s5 + $0xcd0] sm:$0xff] }
 0x37c   : > { %v3724_v51 = vadd.f32 %v3723_v44, %v3213_v36  ;;  %v666_v44 = vld [vmem:[%s4428_s19 + $0xc80] sm:$0xff]  ;;  %v2212_v46 = vsub.f32 %v1188_v37, %v1700_v38  ;;  %v1709_v37 = vld [vmem:[%s4441_s28 + $0xd18] sm:$0xff] }
 0x37d   : > { %v2715_v55 = vmul.f32 %v2202_v40, %v666_v44  ;;  %v3226_v63 = vmul.f32 %v2714_v48, %v2201_v33  ;;  %v1189_v44 = vld [vmem:[%s4435_s5 + $0xcd8] sm:$0xff] }
 0x37e   : > { %v3725_v58 = vadd.f32 %v3724_v51, %v3214_v43  ;;  %v667_v51 = vld [vmem:[%s4428_s19 + $0xc88] sm:$0xff]  ;;  %v2213_v53 = vsub.f32 %v1189_v44, %v1701_v45  ;;  %v1710_v44 = vld [vmem:[%s4441_s28 + $0xd20] sm:$0xff] }
 0x37f   : > { %v2716_v62 = vmul.f32 %v2203_v47, %v667_v51  ;;  %v3227_v6 = vmul.f32 %v2715_v55, %v2202_v40  ;;  %v1190_v51 = vld [vmem:[%s4435_s5 + $0xce0] sm:$0xff] }
 0x380   : > { %v3726_v1 = vadd.f32 %v3725_v58, %v3215_v50  ;;  %v668_v58 = vld [vmem:[%s4428_s19 + $0xc90] sm:$0xff]  ;;  %v2214_v60 = vsub.f32 %v1190_v51, %v1702_v52  ;;  %v1711_v51 = vld [vmem:[%s4441_s28 + $0xd28] sm:$0xff] }
 0x381   : > { %v2717_v5 = vmul.f32 %v2204_v54, %v668_v58  ;;  %v3228_v13 = vmul.f32 %v2716_v62, %v2203_v47  ;;  %v1191_v58 = vld [vmem:[%s4435_s5 + $0xce8] sm:$0xff] }
 0x382   : > { %v3727_v8 = vadd.f32 %v3726_v1, %v3216_v57  ;;  %v669_v1 = vld [vmem:[%s4428_s19 + $0xc98] sm:$0xff]  ;;  %v2215_v3 = vsub.f32 %v1191_v58, %v1703_v59  ;;  %v1712_v58 = vld [vmem:[%s4441_s28 + $0xd30] sm:$0xff] }
 0x383   : > { %v2718_v12 = vmul.f32 %v2205_v61, %v669_v1  ;;  %v3229_v20 = vmul.f32 %v2717_v5, %v2204_v54  ;;  %v1192_v1 = vld [vmem:[%s4435_s5 + $0xcf0] sm:$0xff] }
 0x384   : > { %v3728_v15 = vadd.f32 %v3727_v8, %v3217_v0  ;;  %v670_v8 = vld [vmem:[%s4428_s19 + $0xca0] sm:$0xff]  ;;  %v2216_v10 = vsub.f32 %v1192_v1, %v1704_v2  ;;  %v1713_v1 = vld [vmem:[%s4441_s28 + $0xd38] sm:$0xff] }
 0x385   : > { %v2719_v19 = vmul.f32 %v2206_v4, %v670_v8  ;;  %v3230_v27 = vmul.f32 %v2718_v12, %v2205_v61  ;;  %v1193_v8 = vld [vmem:[%s4435_s5 + $0xcf8] sm:$0xff] }
 0x386   : > { %v3729_v22 = vadd.f32 %v3728_v15, %v3218_v7  ;;  %v671_v15 = vld [vmem:[%s4428_s19 + $0xca8] sm:$0xff]  ;;  %v2217_v17 = vsub.f32 %v1193_v8, %v1705_v9  ;;  %v1714_v8 = vld [vmem:[%s4441_s28 + $0xd40] sm:$0xff] }
 0x387   : > { %v2720_v26 = vmul.f32 %v2207_v11, %v671_v15  ;;  %v3231_v34 = vmul.f32 %v2719_v19, %v2206_v4  ;;  %v1194_v15 = vld [vmem:[%s4435_s5 + $0xd00] sm:$0xff] }
 0x388   : > { %v3730_v29 = vadd.f32 %v3729_v22, %v3219_v14  ;;  %v672_v22 = vld [vmem:[%s4428_s19 + $0xcb0] sm:$0xff]  ;;  %v2218_v24 = vsub.f32 %v1194_v15, %v1706_v16  ;;  %v1715_v15 = vld [vmem:[%s4441_s28 + $0xd48] sm:$0xff] }
 0x389   : > { %v2721_v33 = vmul.f32 %v2208_v18, %v672_v22  ;;  %v3232_v41 = vmul.f32 %v2720_v26, %v2207_v11  ;;  %v1195_v22 = vld [vmem:[%s4435_s5 + $0xd08] sm:$0xff] }
 0x38a   : > { %v3731_v36 = vadd.f32 %v3730_v29, %v3220_v21  ;;  %v673_v29 = vld [vmem:[%s4428_s19 + $0xcb8] sm:$0xff]  ;;  %v2219_v31 = vsub.f32 %v1195_v22, %v1707_v23  ;;  %v1716_v22 = vld [vmem:[%s4441_s28 + $0xd50] sm:$0xff] }
 0x38b   : > { %v2722_v40 = vmul.f32 %v2209_v25, %v673_v29  ;;  %v3233_v48 = vmul.f32 %v2721_v33, %v2208_v18  ;;  %v1196_v29 = vld [vmem:[%s4435_s5 + $0xd10] sm:$0xff] }
 0x38c   : > { %v3732_v43 = vadd.f32 %v3731_v36, %v3221_v28  ;;  %v674_v36 = vld [vmem:[%s4428_s19 + $0xcc0] sm:$0xff]  ;;  %v2220_v38 = vsub.f32 %v1196_v29, %v1708_v30  ;;  %v1717_v29 = vld [vmem:[%s4441_s28 + $0xd58] sm:$0xff] }
 0x38d   : > { %v2723_v47 = vmul.f32 %v2210_v32, %v674_v36  ;;  %v3234_v55 = vmul.f32 %v2722_v40, %v2209_v25  ;;  %v1197_v36 = vld [vmem:[%s4435_s5 + $0xd18] sm:$0xff] }
 0x38e   : > { %v3733_v50 = vadd.f32 %v3732_v43, %v3222_v35  ;;  %v675_v43 = vld [vmem:[%s4428_s19 + $0xcc8] sm:$0xff]  ;;  %v2221_v45 = vsub.f32 %v1197_v36, %v1709_v37  ;;  %v1718_v36 = vld [vmem:[%s4441_s28 + $0xd60] sm:$0xff] }
 0x38f   : > { %v2724_v54 = vmul.f32 %v2211_v39, %v675_v43  ;;  %v3235_v62 = vmul.f32 %v2723_v47, %v2210_v32  ;;  %v1198_v43 = vld [vmem:[%s4435_s5 + $0xd20] sm:$0xff] }
 0x390   : > { %v3734_v57 = vadd.f32 %v3733_v50, %v3223_v42  ;;  %v676_v50 = vld [vmem:[%s4428_s19 + $0xcd0] sm:$0xff]  ;;  %v2222_v52 = vsub.f32 %v1198_v43, %v1710_v44  ;;  %v1719_v43 = vld [vmem:[%s4441_s28 + $0xd68] sm:$0xff] }
 0x391   : > { %v2725_v61 = vmul.f32 %v2212_v46, %v676_v50  ;;  %v3236_v5 = vmul.f32 %v2724_v54, %v2211_v39  ;;  %v1199_v50 = vld [vmem:[%s4435_s5 + $0xd28] sm:$0xff] }
 0x392   : > { %v3735_v0 = vadd.f32 %v3734_v57, %v3224_v49  ;;  %v677_v57 = vld [vmem:[%s4428_s19 + $0xcd8] sm:$0xff]  ;;  %v2223_v59 = vsub.f32 %v1199_v50, %v1711_v51  ;;  %v1720_v50 = vld [vmem:[%s4441_s28 + $0xd70] sm:$0xff] }
 0x393   : > { %v2726_v4 = vmul.f32 %v2213_v53, %v677_v57  ;;  %v3237_v12 = vmul.f32 %v2725_v61, %v2212_v46  ;;  %v1200_v57 = vld [vmem:[%s4435_s5 + $0xd30] sm:$0xff] }
 0x394   : > { %v3736_v7 = vadd.f32 %v3735_v0, %v3225_v56  ;;  %v678_v0 = vld [vmem:[%s4428_s19 + $0xce0] sm:$0xff]  ;;  %v2224_v2 = vsub.f32 %v1200_v57, %v1712_v58  ;;  %v1721_v57 = vld [vmem:[%s4441_s28 + $0xd78] sm:$0xff] }
 0x395   : > { %v2727_v11 = vmul.f32 %v2214_v60, %v678_v0  ;;  %v3238_v19 = vmul.f32 %v2726_v4, %v2213_v53  ;;  %v1201_v0 = vld [vmem:[%s4435_s5 + $0xd38] sm:$0xff] }
 0x396   : > { %v3737_v14 = vadd.f32 %v3736_v7, %v3226_v63  ;;  %v679_v7 = vld [vmem:[%s4428_s19 + $0xce8] sm:$0xff]  ;;  %v2225_v9 = vsub.f32 %v1201_v0, %v1713_v1  ;;  %v1722_v0 = vld [vmem:[%s4441_s28 + $0xd80] sm:$0xff] }
 0x397   : > { %v2728_v18 = vmul.f32 %v2215_v3, %v679_v7  ;;  %v3239_v26 = vmul.f32 %v2727_v11, %v2214_v60  ;;  %v1202_v7 = vld [vmem:[%s4435_s5 + $0xd40] sm:$0xff] }
 0x398   : > { %v3738_v21 = vadd.f32 %v3737_v14, %v3227_v6  ;;  %v680_v14 = vld [vmem:[%s4428_s19 + $0xcf0] sm:$0xff]  ;;  %v2226_v16 = vsub.f32 %v1202_v7, %v1714_v8  ;;  %v1723_v7 = vld [vmem:[%s4441_s28 + $0xd88] sm:$0xff] }
 0x399   : > { %v2729_v25 = vmul.f32 %v2216_v10, %v680_v14  ;;  %v3240_v33 = vmul.f32 %v2728_v18, %v2215_v3  ;;  %v1203_v14 = vld [vmem:[%s4435_s5 + $0xd48] sm:$0xff] }
 0x39a   : > { %v3739_v28 = vadd.f32 %v3738_v21, %v3228_v13  ;;  %v681_v21 = vld [vmem:[%s4428_s19 + $0xcf8] sm:$0xff]  ;;  %v2227_v23 = vsub.f32 %v1203_v14, %v1715_v15  ;;  %v1724_v14 = vld [vmem:[%s4441_s28 + $0xd90] sm:$0xff] }
 0x39b   : > { %v2730_v32 = vmul.f32 %v2217_v17, %v681_v21  ;;  %v3241_v40 = vmul.f32 %v2729_v25, %v2216_v10  ;;  %v1204_v21 = vld [vmem:[%s4435_s5 + $0xd50] sm:$0xff] }
 0x39c   : > { %v3740_v35 = vadd.f32 %v3739_v28, %v3229_v20  ;;  %v682_v28 = vld [vmem:[%s4428_s19 + $0xd00] sm:$0xff]  ;;  %v2228_v30 = vsub.f32 %v1204_v21, %v1716_v22  ;;  %v1725_v21 = vld [vmem:[%s4441_s28 + $0xd98] sm:$0xff] }
 0x39d   : > { %v2731_v39 = vmul.f32 %v2218_v24, %v682_v28  ;;  %v3242_v47 = vmul.f32 %v2730_v32, %v2217_v17  ;;  %v1205_v28 = vld [vmem:[%s4435_s5 + $0xd58] sm:$0xff] }
 0x39e   : > { %v3741_v42 = vadd.f32 %v3740_v35, %v3230_v27  ;;  %v683_v35 = vld [vmem:[%s4428_s19 + $0xd08] sm:$0xff]  ;;  %v2229_v37 = vsub.f32 %v1205_v28, %v1717_v29  ;;  %v1726_v28 = vld [vmem:[%s4441_s28 + $0xda0] sm:$0xff] }
 0x39f   : > { %v2732_v46 = vmul.f32 %v2219_v31, %v683_v35  ;;  %v3243_v54 = vmul.f32 %v2731_v39, %v2218_v24  ;;  %v1206_v35 = vld [vmem:[%s4435_s5 + $0xd60] sm:$0xff] }
 0x3a0   : > { %v3742_v49 = vadd.f32 %v3741_v42, %v3231_v34  ;;  %v684_v42 = vld [vmem:[%s4428_s19 + $0xd10] sm:$0xff]  ;;  %v2230_v44 = vsub.f32 %v1206_v35, %v1718_v36  ;;  %v1727_v35 = vld [vmem:[%s4441_s28 + $0xda8] sm:$0xff] }
 0x3a1   : > { %v2733_v53 = vmul.f32 %v2220_v38, %v684_v42  ;;  %v3244_v61 = vmul.f32 %v2732_v46, %v2219_v31  ;;  %v1207_v42 = vld [vmem:[%s4435_s5 + $0xd68] sm:$0xff] }
 0x3a2   : > { %v3743_v56 = vadd.f32 %v3742_v49, %v3232_v41  ;;  %v685_v49 = vld [vmem:[%s4428_s19 + $0xd18] sm:$0xff]  ;;  %v2231_v51 = vsub.f32 %v1207_v42, %v1719_v43  ;;  %v1728_v42 = vld [vmem:[%s4441_s28 + $0xdb0] sm:$0xff] }
 0x3a3   : > { %v2734_v60 = vmul.f32 %v2221_v45, %v685_v49  ;;  %v3245_v4 = vmul.f32 %v2733_v53, %v2220_v38  ;;  %v1208_v49 = vld [vmem:[%s4435_s5 + $0xd70] sm:$0xff] }
 0x3a4   : > { %v3744_v63 = vadd.f32 %v3743_v56, %v3233_v48  ;;  %v686_v56 = vld [vmem:[%s4428_s19 + $0xd20] sm:$0xff]  ;;  %v2232_v58 = vsub.f32 %v1208_v49, %v1720_v50  ;;  %v1729_v49 = vld [vmem:[%s4441_s28 + $0xdb8] sm:$0xff] }
 0x3a5   : > { %v2735_v3 = vmul.f32 %v2222_v52, %v686_v56  ;;  %v3246_v11 = vmul.f32 %v2734_v60, %v2221_v45  ;;  %v1209_v56 = vld [vmem:[%s4435_s5 + $0xd78] sm:$0xff] }
 0x3a6   : > { %v3745_v6 = vadd.f32 %v3744_v63, %v3234_v55  ;;  %v687_v63 = vld [vmem:[%s4428_s19 + $0xd28] sm:$0xff]  ;;  %v2233_v1 = vsub.f32 %v1209_v56, %v1721_v57  ;;  %v1730_v56 = vld [vmem:[%s4441_s28 + $0xdc0] sm:$0xff] }
 0x3a7   : > { %v2736_v10 = vmul.f32 %v2223_v59, %v687_v63  ;;  %v3247_v18 = vmul.f32 %v2735_v3, %v2222_v52  ;;  %v1210_v63 = vld [vmem:[%s4435_s5 + $0xd80] sm:$0xff] }
 0x3a8   : > { %v3746_v13 = vadd.f32 %v3745_v6, %v3235_v62  ;;  %v688_v6 = vld [vmem:[%s4428_s19 + $0xd30] sm:$0xff]  ;;  %v2234_v8 = vsub.f32 %v1210_v63, %v1722_v0  ;;  %v1731_v63 = vld [vmem:[%s4441_s28 + $0xdc8] sm:$0xff] }
 0x3a9   : > { %v2737_v17 = vmul.f32 %v2224_v2, %v688_v6  ;;  %v3248_v25 = vmul.f32 %v2736_v10, %v2223_v59  ;;  %v1211_v6 = vld [vmem:[%s4435_s5 + $0xd88] sm:$0xff] }
 0x3aa   : > { %v3747_v20 = vadd.f32 %v3746_v13, %v3236_v5  ;;  %v689_v13 = vld [vmem:[%s4428_s19 + $0xd38] sm:$0xff]  ;;  %v2235_v15 = vsub.f32 %v1211_v6, %v1723_v7  ;;  %v1732_v6 = vld [vmem:[%s4441_s28 + $0xdd0] sm:$0xff] }
 0x3ab   : > { %v2738_v24 = vmul.f32 %v2225_v9, %v689_v13  ;;  %v3249_v32 = vmul.f32 %v2737_v17, %v2224_v2  ;;  %v1212_v13 = vld [vmem:[%s4435_s5 + $0xd90] sm:$0xff] }
 0x3ac   : > { %v3748_v27 = vadd.f32 %v3747_v20, %v3237_v12  ;;  %v690_v20 = vld [vmem:[%s4428_s19 + $0xd40] sm:$0xff]  ;;  %v2236_v22 = vsub.f32 %v1212_v13, %v1724_v14  ;;  %v1733_v13 = vld [vmem:[%s4441_s28 + $0xdd8] sm:$0xff] }
 0x3ad   : > { %v2739_v31 = vmul.f32 %v2226_v16, %v690_v20  ;;  %v3250_v39 = vmul.f32 %v2738_v24, %v2225_v9  ;;  %v1213_v20 = vld [vmem:[%s4435_s5 + $0xd98] sm:$0xff] }
 0x3ae   : > { %v3749_v34 = vadd.f32 %v3748_v27, %v3238_v19  ;;  %v691_v27 = vld [vmem:[%s4428_s19 + $0xd48] sm:$0xff]  ;;  %v2237_v29 = vsub.f32 %v1213_v20, %v1725_v21  ;;  %v1734_v20 = vld [vmem:[%s4441_s28 + $0xde0] sm:$0xff] }
 0x3af   : > { %v2740_v38 = vmul.f32 %v2227_v23, %v691_v27  ;;  %v3251_v46 = vmul.f32 %v2739_v31, %v2226_v16  ;;  %v1214_v27 = vld [vmem:[%s4435_s5 + $0xda0] sm:$0xff] }
 0x3b0   : > { %v3750_v41 = vadd.f32 %v3749_v34, %v3239_v26  ;;  %v692_v34 = vld [vmem:[%s4428_s19 + $0xd50] sm:$0xff]  ;;  %v2238_v36 = vsub.f32 %v1214_v27, %v1726_v28  ;;  %v1735_v27 = vld [vmem:[%s4441_s28 + $0xde8] sm:$0xff] }
 0x3b1   : > { %v2741_v45 = vmul.f32 %v2228_v30, %v692_v34  ;;  %v3252_v53 = vmul.f32 %v2740_v38, %v2227_v23  ;;  %v1215_v34 = vld [vmem:[%s4435_s5 + $0xda8] sm:$0xff] }
 0x3b2   : > { %v3751_v48 = vadd.f32 %v3750_v41, %v3240_v33  ;;  %v693_v41 = vld [vmem:[%s4428_s19 + $0xd58] sm:$0xff]  ;;  %v2239_v43 = vsub.f32 %v1215_v34, %v1727_v35  ;;  %v1736_v34 = vld [vmem:[%s4441_s28 + $0xdf0] sm:$0xff] }
 0x3b3   : > { %v2742_v52 = vmul.f32 %v2229_v37, %v693_v41  ;;  %v3253_v60 = vmul.f32 %v2741_v45, %v2228_v30  ;;  %v1216_v41 = vld [vmem:[%s4435_s5 + $0xdb0] sm:$0xff] }
 0x3b4   : > { %v3752_v55 = vadd.f32 %v3751_v48, %v3241_v40  ;;  %v694_v48 = vld [vmem:[%s4428_s19 + $0xd60] sm:$0xff]  ;;  %v2240_v50 = vsub.f32 %v1216_v41, %v1728_v42  ;;  %v1737_v41 = vld [vmem:[%s4441_s28 + $0xdf8] sm:$0xff] }
 0x3b5   : > { %v2743_v59 = vmul.f32 %v2230_v44, %v694_v48  ;;  %v3254_v3 = vmul.f32 %v2742_v52, %v2229_v37  ;;  %v1217_v48 = vld [vmem:[%s4435_s5 + $0xdb8] sm:$0xff] }
 0x3b6   : > { %v3753_v62 = vadd.f32 %v3752_v55, %v3242_v47  ;;  %v695_v55 = vld [vmem:[%s4428_s19 + $0xd68] sm:$0xff]  ;;  %v2241_v57 = vsub.f32 %v1217_v48, %v1729_v49  ;;  %v1738_v48 = vld [vmem:[%s4441_s28 + $0xe00] sm:$0xff] }
 0x3b7   : > { %v2744_v2 = vmul.f32 %v2231_v51, %v695_v55  ;;  %v3255_v10 = vmul.f32 %v2743_v59, %v2230_v44  ;;  %v1218_v55 = vld [vmem:[%s4435_s5 + $0xdc0] sm:$0xff] }
 0x3b8   : > { %v3754_v5 = vadd.f32 %v3753_v62, %v3243_v54  ;;  %v696_v62 = vld [vmem:[%s4428_s19 + $0xd70] sm:$0xff]  ;;  %v2242_v0 = vsub.f32 %v1218_v55, %v1730_v56  ;;  %v1739_v55 = vld [vmem:[%s4441_s28 + $0xe08] sm:$0xff] }
 0x3b9   : > { %v2745_v9 = vmul.f32 %v2232_v58, %v696_v62  ;;  %v3256_v17 = vmul.f32 %v2744_v2, %v2231_v51  ;;  %v1219_v62 = vld [vmem:[%s4435_s5 + $0xdc8] sm:$0xff] }
 0x3ba   : > { %v3755_v12 = vadd.f32 %v3754_v5, %v3244_v61  ;;  %v697_v5 = vld [vmem:[%s4428_s19 + $0xd78] sm:$0xff]  ;;  %v2243_v7 = vsub.f32 %v1219_v62, %v1731_v63  ;;  %v1740_v62 = vld [vmem:[%s4441_s28 + $0xe10] sm:$0xff] }
 0x3bb   : > { %v2746_v16 = vmul.f32 %v2233_v1, %v697_v5  ;;  %v3257_v24 = vmul.f32 %v2745_v9, %v2232_v58  ;;  %v1220_v5 = vld [vmem:[%s4435_s5 + $0xdd0] sm:$0xff] }
 0x3bc   : > { %v3756_v19 = vadd.f32 %v3755_v12, %v3245_v4  ;;  %v698_v12 = vld [vmem:[%s4428_s19 + $0xd80] sm:$0xff]  ;;  %v2244_v14 = vsub.f32 %v1220_v5, %v1732_v6  ;;  %v1741_v5 = vld [vmem:[%s4441_s28 + $0xe18] sm:$0xff] }
 0x3bd   : > { %v2747_v23 = vmul.f32 %v2234_v8, %v698_v12  ;;  %v3258_v31 = vmul.f32 %v2746_v16, %v2233_v1  ;;  %v1221_v12 = vld [vmem:[%s4435_s5 + $0xdd8] sm:$0xff] }
 0x3be   : > { %v3757_v26 = vadd.f32 %v3756_v19, %v3246_v11  ;;  %v699_v19 = vld [vmem:[%s4428_s19 + $0xd88] sm:$0xff]  ;;  %v2245_v21 = vsub.f32 %v1221_v12, %v1733_v13  ;;  %v1742_v12 = vld [vmem:[%s4441_s28 + $0xe20] sm:$0xff] }
 0x3bf   : > { %v2748_v30 = vmul.f32 %v2235_v15, %v699_v19  ;;  %v3259_v38 = vmul.f32 %v2747_v23, %v2234_v8  ;;  %v1222_v19 = vld [vmem:[%s4435_s5 + $0xde0] sm:$0xff] }
 0x3c0   : > { %v3758_v33 = vadd.f32 %v3757_v26, %v3247_v18  ;;  %v700_v26 = vld [vmem:[%s4428_s19 + $0xd90] sm:$0xff]  ;;  %v2246_v28 = vsub.f32 %v1222_v19, %v1734_v20  ;;  %v1743_v19 = vld [vmem:[%s4441_s28 + $0xe28] sm:$0xff] }
 0x3c1   : > { %v2749_v37 = vmul.f32 %v2236_v22, %v700_v26  ;;  %v3260_v45 = vmul.f32 %v2748_v30, %v2235_v15  ;;  %v1223_v26 = vld [vmem:[%s4435_s5 + $0xde8] sm:$0xff] }
 0x3c2   : > { %v3759_v40 = vadd.f32 %v3758_v33, %v3248_v25  ;;  %v701_v33 = vld [vmem:[%s4428_s19 + $0xd98] sm:$0xff]  ;;  %v2247_v35 = vsub.f32 %v1223_v26, %v1735_v27  ;;  %v1744_v26 = vld [vmem:[%s4441_s28 + $0xe30] sm:$0xff] }
 0x3c3   : > { %v2750_v44 = vmul.f32 %v2237_v29, %v701_v33  ;;  %v3261_v52 = vmul.f32 %v2749_v37, %v2236_v22  ;;  %v1224_v33 = vld [vmem:[%s4435_s5 + $0xdf0] sm:$0xff] }
 0x3c4   : > { %v3760_v47 = vadd.f32 %v3759_v40, %v3249_v32  ;;  %v702_v40 = vld [vmem:[%s4428_s19 + $0xda0] sm:$0xff]  ;;  %v2248_v42 = vsub.f32 %v1224_v33, %v1736_v34  ;;  %v1745_v33 = vld [vmem:[%s4441_s28 + $0xe38] sm:$0xff] }
 0x3c5   : > { %v2751_v51 = vmul.f32 %v2238_v36, %v702_v40  ;;  %v3262_v59 = vmul.f32 %v2750_v44, %v2237_v29  ;;  %v1225_v40 = vld [vmem:[%s4435_s5 + $0xdf8] sm:$0xff] }
 0x3c6   : > { %v3761_v54 = vadd.f32 %v3760_v47, %v3250_v39  ;;  %v703_v47 = vld [vmem:[%s4428_s19 + $0xda8] sm:$0xff]  ;;  %v2249_v49 = vsub.f32 %v1225_v40, %v1737_v41  ;;  %v1746_v40 = vld [vmem:[%s4441_s28 + $0xe40] sm:$0xff] }
 0x3c7   : > { %v2752_v58 = vmul.f32 %v2239_v43, %v703_v47  ;;  %v3263_v2 = vmul.f32 %v2751_v51, %v2238_v36  ;;  %v1226_v47 = vld [vmem:[%s4435_s5 + $0xe00] sm:$0xff] }
 0x3c8   : > { %v3762_v61 = vadd.f32 %v3761_v54, %v3251_v46  ;;  %v704_v54 = vld [vmem:[%s4428_s19 + $0xdb0] sm:$0xff]  ;;  %v2250_v56 = vsub.f32 %v1226_v47, %v1738_v48  ;;  %v1747_v47 = vld [vmem:[%s4441_s28 + $0xe48] sm:$0xff] }
 0x3c9   : > { %v2753_v1 = vmul.f32 %v2240_v50, %v704_v54  ;;  %v3264_v9 = vmul.f32 %v2752_v58, %v2239_v43  ;;  %v1227_v54 = vld [vmem:[%s4435_s5 + $0xe08] sm:$0xff] }
 0x3ca   : > { %v3763_v4 = vadd.f32 %v3762_v61, %v3252_v53  ;;  %v705_v61 = vld [vmem:[%s4428_s19 + $0xdb8] sm:$0xff]  ;;  %v2251_v63 = vsub.f32 %v1227_v54, %v1739_v55  ;;  %v1748_v54 = vld [vmem:[%s4441_s28 + $0xe50] sm:$0xff] }
 0x3cb   : > { %v2754_v8 = vmul.f32 %v2241_v57, %v705_v61  ;;  %v3265_v16 = vmul.f32 %v2753_v1, %v2240_v50  ;;  %v1228_v61 = vld [vmem:[%s4435_s5 + $0xe10] sm:$0xff] }
 0x3cc   : > { %v3764_v11 = vadd.f32 %v3763_v4, %v3253_v60  ;;  %v706_v4 = vld [vmem:[%s4428_s19 + $0xdc0] sm:$0xff]  ;;  %v2252_v6 = vsub.f32 %v1228_v61, %v1740_v62  ;;  %v1749_v61 = vld [vmem:[%s4441_s28 + $0xe58] sm:$0xff] }
 0x3cd   : > { %v2755_v15 = vmul.f32 %v2242_v0, %v706_v4  ;;  %v3266_v23 = vmul.f32 %v2754_v8, %v2241_v57  ;;  %v1229_v4 = vld [vmem:[%s4435_s5 + $0xe18] sm:$0xff] }
 0x3ce   : > { %v3765_v18 = vadd.f32 %v3764_v11, %v3254_v3  ;;  %v707_v11 = vld [vmem:[%s4428_s19 + $0xdc8] sm:$0xff]  ;;  %v2253_v13 = vsub.f32 %v1229_v4, %v1741_v5  ;;  %v1750_v4 = vld [vmem:[%s4441_s28 + $0xe60] sm:$0xff] }
 0x3cf   : > { %v2756_v22 = vmul.f32 %v2243_v7, %v707_v11  ;;  %v3267_v30 = vmul.f32 %v2755_v15, %v2242_v0  ;;  %v1230_v11 = vld [vmem:[%s4435_s5 + $0xe20] sm:$0xff] }
 0x3d0   : > { %v3766_v25 = vadd.f32 %v3765_v18, %v3255_v10  ;;  %v708_v18 = vld [vmem:[%s4428_s19 + $0xdd0] sm:$0xff]  ;;  %v2254_v20 = vsub.f32 %v1230_v11, %v1742_v12  ;;  %v1751_v11 = vld [vmem:[%s4441_s28 + $0xe68] sm:$0xff] }
 0x3d1   : > { %v2757_v29 = vmul.f32 %v2244_v14, %v708_v18  ;;  %v3268_v37 = vmul.f32 %v2756_v22, %v2243_v7  ;;  %v1231_v18 = vld [vmem:[%s4435_s5 + $0xe28] sm:$0xff] }
 0x3d2   : > { %v3767_v32 = vadd.f32 %v3766_v25, %v3256_v17  ;;  %v709_v25 = vld [vmem:[%s4428_s19 + $0xdd8] sm:$0xff]  ;;  %v2255_v27 = vsub.f32 %v1231_v18, %v1743_v19  ;;  %v1752_v18 = vld [vmem:[%s4441_s28 + $0xe70] sm:$0xff] }
 0x3d3   : > { %v2758_v36 = vmul.f32 %v2245_v21, %v709_v25  ;;  %v3269_v44 = vmul.f32 %v2757_v29, %v2244_v14  ;;  %v1232_v25 = vld [vmem:[%s4435_s5 + $0xe30] sm:$0xff] }
 0x3d4   : > { %v3768_v39 = vadd.f32 %v3767_v32, %v3257_v24  ;;  %v710_v32 = vld [vmem:[%s4428_s19 + $0xde0] sm:$0xff]  ;;  %v2256_v34 = vsub.f32 %v1232_v25, %v1744_v26  ;;  %v1753_v25 = vld [vmem:[%s4441_s28 + $0xe78] sm:$0xff] }
 0x3d5   : > { %v2759_v43 = vmul.f32 %v2246_v28, %v710_v32  ;;  %v3270_v51 = vmul.f32 %v2758_v36, %v2245_v21  ;;  %v1233_v32 = vld [vmem:[%s4435_s5 + $0xe38] sm:$0xff] }
 0x3d6   : > { %v3769_v46 = vadd.f32 %v3768_v39, %v3258_v31  ;;  %v711_v39 = vld [vmem:[%s4428_s19 + $0xde8] sm:$0xff]  ;;  %v2257_v41 = vsub.f32 %v1233_v32, %v1745_v33  ;;  %v1754_v32 = vld [vmem:[%s4441_s28 + $0xe80] sm:$0xff] }
 0x3d7   : > { %v2760_v50 = vmul.f32 %v2247_v35, %v711_v39  ;;  %v3271_v58 = vmul.f32 %v2759_v43, %v2246_v28  ;;  %v1234_v39 = vld [vmem:[%s4435_s5 + $0xe40] sm:$0xff] }
 0x3d8   : > { %v3770_v53 = vadd.f32 %v3769_v46, %v3259_v38  ;;  %v712_v46 = vld [vmem:[%s4428_s19 + $0xdf0] sm:$0xff]  ;;  %v2258_v48 = vsub.f32 %v1234_v39, %v1746_v40  ;;  %v1755_v39 = vld [vmem:[%s4441_s28 + $0xe88] sm:$0xff] }
 0x3d9   : > { %v2761_v57 = vmul.f32 %v2248_v42, %v712_v46  ;;  %v3272_v1 = vmul.f32 %v2760_v50, %v2247_v35  ;;  %v1235_v46 = vld [vmem:[%s4435_s5 + $0xe48] sm:$0xff] }
 0x3da   : > { %v3771_v60 = vadd.f32 %v3770_v53, %v3260_v45  ;;  %v713_v53 = vld [vmem:[%s4428_s19 + $0xdf8] sm:$0xff]  ;;  %v2259_v55 = vsub.f32 %v1235_v46, %v1747_v47  ;;  %v1756_v46 = vld [vmem:[%s4441_s28 + $0xe90] sm:$0xff] }
 0x3db   : > { %v2762_v0 = vmul.f32 %v2249_v49, %v713_v53  ;;  %v3273_v8 = vmul.f32 %v2761_v57, %v2248_v42  ;;  %v1236_v53 = vld [vmem:[%s4435_s5 + $0xe50] sm:$0xff] }
 0x3dc   : > { %v3772_v3 = vadd.f32 %v3771_v60, %v3261_v52  ;;  %v714_v60 = vld [vmem:[%s4428_s19 + $0xe00] sm:$0xff]  ;;  %v2260_v62 = vsub.f32 %v1236_v53, %v1748_v54  ;;  %v1757_v53 = vld [vmem:[%s4441_s28 + $0xe98] sm:$0xff] }
 0x3dd   : > { %v2763_v7 = vmul.f32 %v2250_v56, %v714_v60  ;;  %v3274_v15 = vmul.f32 %v2762_v0, %v2249_v49  ;;  %v1237_v60 = vld [vmem:[%s4435_s5 + $0xe58] sm:$0xff] }
 0x3de   : > { %v3773_v10 = vadd.f32 %v3772_v3, %v3262_v59  ;;  %v715_v3 = vld [vmem:[%s4428_s19 + $0xe08] sm:$0xff]  ;;  %v2261_v5 = vsub.f32 %v1237_v60, %v1749_v61  ;;  %v1758_v60 = vld [vmem:[%s4441_s28 + $0xea0] sm:$0xff] }
 0x3df   : > { %v2764_v14 = vmul.f32 %v2251_v63, %v715_v3  ;;  %v3275_v22 = vmul.f32 %v2763_v7, %v2250_v56  ;;  %v1238_v3 = vld [vmem:[%s4435_s5 + $0xe60] sm:$0xff] }
 0x3e0   : > { %v3774_v17 = vadd.f32 %v3773_v10, %v3263_v2  ;;  %v716_v10 = vld [vmem:[%s4428_s19 + $0xe10] sm:$0xff]  ;;  %v2262_v12 = vsub.f32 %v1238_v3, %v1750_v4  ;;  %v1759_v3 = vld [vmem:[%s4441_s28 + $0xea8] sm:$0xff] }
 0x3e1   : > { %v2765_v21 = vmul.f32 %v2252_v6, %v716_v10  ;;  %v3276_v29 = vmul.f32 %v2764_v14, %v2251_v63  ;;  %v1239_v10 = vld [vmem:[%s4435_s5 + $0xe68] sm:$0xff] }
 0x3e2   : > { %v3775_v24 = vadd.f32 %v3774_v17, %v3264_v9  ;;  %v717_v17 = vld [vmem:[%s4428_s19 + $0xe18] sm:$0xff]  ;;  %v2263_v19 = vsub.f32 %v1239_v10, %v1751_v11  ;;  %v1760_v10 = vld [vmem:[%s4441_s28 + $0xeb0] sm:$0xff] }
 0x3e3   : > { %v2766_v28 = vmul.f32 %v2253_v13, %v717_v17  ;;  %v3277_v36 = vmul.f32 %v2765_v21, %v2252_v6  ;;  %v1240_v17 = vld [vmem:[%s4435_s5 + $0xe70] sm:$0xff] }
 0x3e4   : > { %v3776_v31 = vadd.f32 %v3775_v24, %v3265_v16  ;;  %v718_v24 = vld [vmem:[%s4428_s19 + $0xe20] sm:$0xff]  ;;  %v2264_v26 = vsub.f32 %v1240_v17, %v1752_v18  ;;  %v1761_v17 = vld [vmem:[%s4441_s28 + $0xeb8] sm:$0xff] }
 0x3e5   : > { %v2767_v35 = vmul.f32 %v2254_v20, %v718_v24  ;;  %v3278_v43 = vmul.f32 %v2766_v28, %v2253_v13  ;;  %v1241_v24 = vld [vmem:[%s4435_s5 + $0xe78] sm:$0xff] }
 0x3e6   : > { %v3777_v38 = vadd.f32 %v3776_v31, %v3266_v23  ;;  %v719_v31 = vld [vmem:[%s4428_s19 + $0xe28] sm:$0xff]  ;;  %v2265_v33 = vsub.f32 %v1241_v24, %v1753_v25  ;;  %v1762_v24 = vld [vmem:[%s4441_s28 + $0xec0] sm:$0xff] }
 0x3e7   : > { %v2768_v42 = vmul.f32 %v2255_v27, %v719_v31  ;;  %v3279_v50 = vmul.f32 %v2767_v35, %v2254_v20  ;;  %v1242_v31 = vld [vmem:[%s4435_s5 + $0xe80] sm:$0xff] }
 0x3e8   : > { %v3778_v45 = vadd.f32 %v3777_v38, %v3267_v30  ;;  %v720_v38 = vld [vmem:[%s4428_s19 + $0xe30] sm:$0xff]  ;;  %v2266_v40 = vsub.f32 %v1242_v31, %v1754_v32  ;;  %v1763_v31 = vld [vmem:[%s4441_s28 + $0xec8] sm:$0xff] }
 0x3e9   : > { %v2769_v49 = vmul.f32 %v2256_v34, %v720_v38  ;;  %v3280_v57 = vmul.f32 %v2768_v42, %v2255_v27  ;;  %v1243_v38 = vld [vmem:[%s4435_s5 + $0xe88] sm:$0xff] }
 0x3ea   : > { %v3779_v52 = vadd.f32 %v3778_v45, %v3268_v37  ;;  %v721_v45 = vld [vmem:[%s4428_s19 + $0xe38] sm:$0xff]  ;;  %v2267_v47 = vsub.f32 %v1243_v38, %v1755_v39  ;;  %v1764_v38 = vld [vmem:[%s4441_s28 + $0xed0] sm:$0xff] }
 0x3eb   : > { %v2770_v56 = vmul.f32 %v2257_v41, %v721_v45  ;;  %v3281_v0 = vmul.f32 %v2769_v49, %v2256_v34  ;;  %v1244_v45 = vld [vmem:[%s4435_s5 + $0xe90] sm:$0xff] }
 0x3ec   : > { %v3780_v59 = vadd.f32 %v3779_v52, %v3269_v44  ;;  %v722_v52 = vld [vmem:[%s4428_s19 + $0xe40] sm:$0xff]  ;;  %v2268_v54 = vsub.f32 %v1244_v45, %v1756_v46  ;;  %v1765_v45 = vld [vmem:[%s4441_s28 + $0xed8] sm:$0xff] }
 0x3ed   : > { %v2771_v63 = vmul.f32 %v2258_v48, %v722_v52  ;;  %v3282_v7 = vmul.f32 %v2770_v56, %v2257_v41  ;;  %v1245_v52 = vld [vmem:[%s4435_s5 + $0xe98] sm:$0xff] }
 0x3ee   : > { %v3781_v2 = vadd.f32 %v3780_v59, %v3270_v51  ;;  %v723_v59 = vld [vmem:[%s4428_s19 + $0xe48] sm:$0xff]  ;;  %v2269_v61 = vsub.f32 %v1245_v52, %v1757_v53  ;;  %v1766_v52 = vld [vmem:[%s4441_s28 + $0xee0] sm:$0xff] }
 0x3ef   : > { %v2772_v6 = vmul.f32 %v2259_v55, %v723_v59  ;;  %v3283_v14 = vmul.f32 %v2771_v63, %v2258_v48  ;;  %v1246_v59 = vld [vmem:[%s4435_s5 + $0xea0] sm:$0xff] }
 0x3f0   : > { %v3782_v9 = vadd.f32 %v3781_v2, %v3271_v58  ;;  %v724_v2 = vld [vmem:[%s4428_s19 + $0xe50] sm:$0xff]  ;;  %v2270_v4 = vsub.f32 %v1246_v59, %v1758_v60  ;;  %v1767_v59 = vld [vmem:[%s4441_s28 + $0xee8] sm:$0xff] }
 0x3f1   : > { %v2773_v13 = vmul.f32 %v2260_v62, %v724_v2  ;;  %v3284_v21 = vmul.f32 %v2772_v6, %v2259_v55  ;;  %v1247_v2 = vld [vmem:[%s4435_s5 + $0xea8] sm:$0xff] }
 0x3f2   : > { %v3783_v16 = vadd.f32 %v3782_v9, %v3272_v1  ;;  %v725_v9 = vld [vmem:[%s4428_s19 + $0xe58] sm:$0xff]  ;;  %v2271_v11 = vsub.f32 %v1247_v2, %v1759_v3  ;;  %v1768_v2 = vld [vmem:[%s4441_s28 + $0xef0] sm:$0xff] }
 0x3f3   : > { %v2774_v20 = vmul.f32 %v2261_v5, %v725_v9  ;;  %v3285_v28 = vmul.f32 %v2773_v13, %v2260_v62  ;;  %v1248_v9 = vld [vmem:[%s4435_s5 + $0xeb0] sm:$0xff] }
 0x3f4   : > { %v3784_v23 = vadd.f32 %v3783_v16, %v3273_v8  ;;  %v726_v16 = vld [vmem:[%s4428_s19 + $0xe60] sm:$0xff]  ;;  %v2272_v18 = vsub.f32 %v1248_v9, %v1760_v10  ;;  %v1769_v9 = vld [vmem:[%s4441_s28 + $0xef8] sm:$0xff] }
 0x3f5   : > { %v2775_v27 = vmul.f32 %v2262_v12, %v726_v16  ;;  %v3286_v35 = vmul.f32 %v2774_v20, %v2261_v5  ;;  %v1249_v16 = vld [vmem:[%s4435_s5 + $0xeb8] sm:$0xff] }
 0x3f6   : > { %v3785_v30 = vadd.f32 %v3784_v23, %v3274_v15  ;;  %v727_v23 = vld [vmem:[%s4428_s19 + $0xe68] sm:$0xff]  ;;  %v2273_v25 = vsub.f32 %v1249_v16, %v1761_v17  ;;  %v1770_v16 = vld [vmem:[%s4441_s28 + $0xf00] sm:$0xff] }
 0x3f7   : > { %v2776_v34 = vmul.f32 %v2263_v19, %v727_v23  ;;  %v3287_v42 = vmul.f32 %v2775_v27, %v2262_v12  ;;  %v1250_v23 = vld [vmem:[%s4435_s5 + $0xec0] sm:$0xff] }
 0x3f8   : > { %v3786_v37 = vadd.f32 %v3785_v30, %v3275_v22  ;;  %v728_v30 = vld [vmem:[%s4428_s19 + $0xe70] sm:$0xff]  ;;  %v2274_v32 = vsub.f32 %v1250_v23, %v1762_v24  ;;  %v1771_v23 = vld [vmem:[%s4441_s28 + $0xf08] sm:$0xff] }
 0x3f9   : > { %v2777_v41 = vmul.f32 %v2264_v26, %v728_v30  ;;  %v3288_v49 = vmul.f32 %v2776_v34, %v2263_v19  ;;  %v1251_v30 = vld [vmem:[%s4435_s5 + $0xec8] sm:$0xff] }
 0x3fa   : > { %v3787_v44 = vadd.f32 %v3786_v37, %v3276_v29  ;;  %v729_v37 = vld [vmem:[%s4428_s19 + $0xe78] sm:$0xff]  ;;  %v2275_v39 = vsub.f32 %v1251_v30, %v1763_v31  ;;  %v1772_v30 = vld [vmem:[%s4441_s28 + $0xf10] sm:$0xff] }
 0x3fb   : > { %v2778_v48 = vmul.f32 %v2265_v33, %v729_v37  ;;  %v3289_v56 = vmul.f32 %v2777_v41, %v2264_v26  ;;  %v1252_v37 = vld [vmem:[%s4435_s5 + $0xed0] sm:$0xff] }
 0x3fc   : > { %v3788_v51 = vadd.f32 %v3787_v44, %v3277_v36  ;;  %v730_v44 = vld [vmem:[%s4428_s19 + $0xe80] sm:$0xff]  ;;  %v2276_v46 = vsub.f32 %v1252_v37, %v1764_v38  ;;  %v1773_v37 = vld [vmem:[%s4441_s28 + $0xf18] sm:$0xff] }
 0x3fd   : > { %v2779_v55 = vmul.f32 %v2266_v40, %v730_v44  ;;  %v3290_v63 = vmul.f32 %v2778_v48, %v2265_v33  ;;  %v1253_v44 = vld [vmem:[%s4435_s5 + $0xed8] sm:$0xff] }
 0x3fe   : > { %v3789_v58 = vadd.f32 %v3788_v51, %v3278_v43  ;;  %v731_v51 = vld [vmem:[%s4428_s19 + $0xe88] sm:$0xff]  ;;  %v2277_v53 = vsub.f32 %v1253_v44, %v1765_v45  ;;  %v1774_v44 = vld [vmem:[%s4441_s28 + $0xf20] sm:$0xff] }
 0x3ff   : > { %v2780_v62 = vmul.f32 %v2267_v47, %v731_v51  ;;  %v3291_v6 = vmul.f32 %v2779_v55, %v2266_v40  ;;  %v1254_v51 = vld [vmem:[%s4435_s5 + $0xee0] sm:$0xff] }
 0x400   : > { %v3790_v1 = vadd.f32 %v3789_v58, %v3279_v50  ;;  %v732_v58 = vld [vmem:[%s4428_s19 + $0xe90] sm:$0xff]  ;;  %v2278_v60 = vsub.f32 %v1254_v51, %v1766_v52  ;;  %v1775_v51 = vld [vmem:[%s4441_s28 + $0xf28] sm:$0xff] }
 0x401   : > { %v2781_v5 = vmul.f32 %v2268_v54, %v732_v58  ;;  %v3292_v13 = vmul.f32 %v2780_v62, %v2267_v47  ;;  %v1255_v58 = vld [vmem:[%s4435_s5 + $0xee8] sm:$0xff] }
 0x402   : > { %v3791_v8 = vadd.f32 %v3790_v1, %v3280_v57  ;;  %v733_v1 = vld [vmem:[%s4428_s19 + $0xe98] sm:$0xff]  ;;  %v2279_v3 = vsub.f32 %v1255_v58, %v1767_v59  ;;  %v1776_v58 = vld [vmem:[%s4441_s28 + $0xf30] sm:$0xff] }
 0x403   : > { %v2782_v12 = vmul.f32 %v2269_v61, %v733_v1  ;;  %v3293_v20 = vmul.f32 %v2781_v5, %v2268_v54  ;;  %v1256_v1 = vld [vmem:[%s4435_s5 + $0xef0] sm:$0xff] }
 0x404   : > { %v3792_v15 = vadd.f32 %v3791_v8, %v3281_v0  ;;  %v734_v8 = vld [vmem:[%s4428_s19 + $0xea0] sm:$0xff]  ;;  %v2280_v10 = vsub.f32 %v1256_v1, %v1768_v2  ;;  %v1777_v1 = vld [vmem:[%s4441_s28 + $0xf38] sm:$0xff] }
 0x405   : > { %v2783_v19 = vmul.f32 %v2270_v4, %v734_v8  ;;  %v3294_v27 = vmul.f32 %v2782_v12, %v2269_v61  ;;  %v1257_v8 = vld [vmem:[%s4435_s5 + $0xef8] sm:$0xff] }
 0x406   : > { %v3793_v22 = vadd.f32 %v3792_v15, %v3282_v7  ;;  %v735_v15 = vld [vmem:[%s4428_s19 + $0xea8] sm:$0xff]  ;;  %v2281_v17 = vsub.f32 %v1257_v8, %v1769_v9  ;;  %v1778_v8 = vld [vmem:[%s4441_s28 + $0xf40] sm:$0xff] }
 0x407   : > { %v2784_v26 = vmul.f32 %v2271_v11, %v735_v15  ;;  %v3295_v34 = vmul.f32 %v2783_v19, %v2270_v4  ;;  %v1258_v15 = vld [vmem:[%s4435_s5 + $0xf00] sm:$0xff] }
 0x408   : > { %v3794_v29 = vadd.f32 %v3793_v22, %v3283_v14  ;;  %v736_v22 = vld [vmem:[%s4428_s19 + $0xeb0] sm:$0xff]  ;;  %v2282_v24 = vsub.f32 %v1258_v15, %v1770_v16  ;;  %v1779_v15 = vld [vmem:[%s4441_s28 + $0xf48] sm:$0xff] }
 0x409   : > { %v2785_v33 = vmul.f32 %v2272_v18, %v736_v22  ;;  %v3296_v41 = vmul.f32 %v2784_v26, %v2271_v11  ;;  %v1259_v22 = vld [vmem:[%s4435_s5 + $0xf08] sm:$0xff] }
 0x40a   : > { %v3795_v36 = vadd.f32 %v3794_v29, %v3284_v21  ;;  %v737_v29 = vld [vmem:[%s4428_s19 + $0xeb8] sm:$0xff]  ;;  %v2283_v31 = vsub.f32 %v1259_v22, %v1771_v23  ;;  %v1780_v22 = vld [vmem:[%s4441_s28 + $0xf50] sm:$0xff] }
 0x40b   : > { %v2786_v40 = vmul.f32 %v2273_v25, %v737_v29  ;;  %v3297_v48 = vmul.f32 %v2785_v33, %v2272_v18  ;;  %v1260_v29 = vld [vmem:[%s4435_s5 + $0xf10] sm:$0xff] }
 0x40c   : > { %v3796_v43 = vadd.f32 %v3795_v36, %v3285_v28  ;;  %v738_v36 = vld [vmem:[%s4428_s19 + $0xec0] sm:$0xff]  ;;  %v2284_v38 = vsub.f32 %v1260_v29, %v1772_v30  ;;  %v1781_v29 = vld [vmem:[%s4441_s28 + $0xf58] sm:$0xff] }
 0x40d   : > { %v2787_v47 = vmul.f32 %v2274_v32, %v738_v36  ;;  %v3298_v55 = vmul.f32 %v2786_v40, %v2273_v25  ;;  %v1261_v36 = vld [vmem:[%s4435_s5 + $0xf18] sm:$0xff] }
 0x40e   : > { %v3797_v50 = vadd.f32 %v3796_v43, %v3286_v35  ;;  %v739_v43 = vld [vmem:[%s4428_s19 + $0xec8] sm:$0xff]  ;;  %v2285_v45 = vsub.f32 %v1261_v36, %v1773_v37  ;;  %v1782_v36 = vld [vmem:[%s4441_s28 + $0xf60] sm:$0xff] }
 0x40f   : > { %v2788_v54 = vmul.f32 %v2275_v39, %v739_v43  ;;  %v3299_v62 = vmul.f32 %v2787_v47, %v2274_v32  ;;  %v1262_v43 = vld [vmem:[%s4435_s5 + $0xf20] sm:$0xff] }
 0x410   : > { %v3798_v57 = vadd.f32 %v3797_v50, %v3287_v42  ;;  %v740_v50 = vld [vmem:[%s4428_s19 + $0xed0] sm:$0xff]  ;;  %v2286_v52 = vsub.f32 %v1262_v43, %v1774_v44  ;;  %v1783_v43 = vld [vmem:[%s4441_s28 + $0xf68] sm:$0xff] }
 0x411   : > { %v2789_v61 = vmul.f32 %v2276_v46, %v740_v50  ;;  %v3300_v5 = vmul.f32 %v2788_v54, %v2275_v39  ;;  %v1263_v50 = vld [vmem:[%s4435_s5 + $0xf28] sm:$0xff] }
 0x412   : > { %v3799_v0 = vadd.f32 %v3798_v57, %v3288_v49  ;;  %v741_v57 = vld [vmem:[%s4428_s19 + $0xed8] sm:$0xff]  ;;  %v2287_v59 = vsub.f32 %v1263_v50, %v1775_v51  ;;  %v1784_v50 = vld [vmem:[%s4441_s28 + $0xf70] sm:$0xff] }
 0x413   : > { %v2790_v4 = vmul.f32 %v2277_v53, %v741_v57  ;;  %v3301_v12 = vmul.f32 %v2789_v61, %v2276_v46  ;;  %v1264_v57 = vld [vmem:[%s4435_s5 + $0xf30] sm:$0xff] }
 0x414   : > { %v3800_v7 = vadd.f32 %v3799_v0, %v3289_v56  ;;  %v742_v0 = vld [vmem:[%s4428_s19 + $0xee0] sm:$0xff]  ;;  %v2288_v2 = vsub.f32 %v1264_v57, %v1776_v58  ;;  %v1785_v57 = vld [vmem:[%s4441_s28 + $0xf78] sm:$0xff] }
 0x415   : > { %v2791_v11 = vmul.f32 %v2278_v60, %v742_v0  ;;  %v3302_v19 = vmul.f32 %v2790_v4, %v2277_v53  ;;  %v1265_v0 = vld [vmem:[%s4435_s5 + $0xf38] sm:$0xff] }
 0x416   : > { %v3801_v14 = vadd.f32 %v3800_v7, %v3290_v63  ;;  %v743_v7 = vld [vmem:[%s4428_s19 + $0xee8] sm:$0xff]  ;;  %v2289_v9 = vsub.f32 %v1265_v0, %v1777_v1  ;;  %v1786_v0 = vld [vmem:[%s4441_s28 + $0xf80] sm:$0xff] }
 0x417   : > { %v2792_v18 = vmul.f32 %v2279_v3, %v743_v7  ;;  %v3303_v26 = vmul.f32 %v2791_v11, %v2278_v60  ;;  %v1266_v7 = vld [vmem:[%s4435_s5 + $0xf40] sm:$0xff] }
 0x418   : > { %v3802_v21 = vadd.f32 %v3801_v14, %v3291_v6  ;;  %v744_v14 = vld [vmem:[%s4428_s19 + $0xef0] sm:$0xff]  ;;  %v2290_v16 = vsub.f32 %v1266_v7, %v1778_v8  ;;  %v1787_v7 = vld [vmem:[%s4441_s28 + $0xf88] sm:$0xff] }
 0x419   : > { %v2793_v25 = vmul.f32 %v2280_v10, %v744_v14  ;;  %v3304_v33 = vmul.f32 %v2792_v18, %v2279_v3  ;;  %v1267_v14 = vld [vmem:[%s4435_s5 + $0xf48] sm:$0xff] }
 0x41a   : > { %v3803_v28 = vadd.f32 %v3802_v21, %v3292_v13  ;;  %v745_v21 = vld [vmem:[%s4428_s19 + $0xef8] sm:$0xff]  ;;  %v2291_v23 = vsub.f32 %v1267_v14, %v1779_v15  ;;  %v1788_v14 = vld [vmem:[%s4441_s28 + $0xf90] sm:$0xff] }
 0x41b   : > { %v2794_v32 = vmul.f32 %v2281_v17, %v745_v21  ;;  %v3305_v40 = vmul.f32 %v2793_v25, %v2280_v10  ;;  %v1268_v21 = vld [vmem:[%s4435_s5 + $0xf50] sm:$0xff] }
 0x41c   : > { %v3804_v35 = vadd.f32 %v3803_v28, %v3293_v20  ;;  %v746_v28 = vld [vmem:[%s4428_s19 + $0xf00] sm:$0xff]  ;;  %v2292_v30 = vsub.f32 %v1268_v21, %v1780_v22  ;;  %v1789_v21 = vld [vmem:[%s4441_s28 + $0xf98] sm:$0xff] }
 0x41d   : > { %v2795_v39 = vmul.f32 %v2282_v24, %v746_v28  ;;  %v3306_v47 = vmul.f32 %v2794_v32, %v2281_v17  ;;  %v1269_v28 = vld [vmem:[%s4435_s5 + $0xf58] sm:$0xff] }
 0x41e   : > { %v3805_v42 = vadd.f32 %v3804_v35, %v3294_v27  ;;  %v747_v35 = vld [vmem:[%s4428_s19 + $0xf08] sm:$0xff]  ;;  %v2293_v37 = vsub.f32 %v1269_v28, %v1781_v29  ;;  %v1790_v28 = vld [vmem:[%s4441_s28 + $0xfa0] sm:$0xff] }
 0x41f   : > { %v2796_v46 = vmul.f32 %v2283_v31, %v747_v35  ;;  %v3307_v54 = vmul.f32 %v2795_v39, %v2282_v24  ;;  %v1270_v35 = vld [vmem:[%s4435_s5 + $0xf60] sm:$0xff] }
 0x420   : > { %v3806_v49 = vadd.f32 %v3805_v42, %v3295_v34  ;;  %v748_v42 = vld [vmem:[%s4428_s19 + $0xf10] sm:$0xff]  ;;  %v2294_v44 = vsub.f32 %v1270_v35, %v1782_v36  ;;  %v1791_v35 = vld [vmem:[%s4441_s28 + $0xfa8] sm:$0xff] }
 0x421   : > { %v2797_v53 = vmul.f32 %v2284_v38, %v748_v42  ;;  %v3308_v61 = vmul.f32 %v2796_v46, %v2283_v31  ;;  %v1271_v42 = vld [vmem:[%s4435_s5 + $0xf68] sm:$0xff] }
 0x422   : > { %v3807_v56 = vadd.f32 %v3806_v49, %v3296_v41  ;;  %v749_v49 = vld [vmem:[%s4428_s19 + $0xf18] sm:$0xff]  ;;  %v2295_v51 = vsub.f32 %v1271_v42, %v1783_v43  ;;  %v1792_v42 = vld [vmem:[%s4441_s28 + $0xfb0] sm:$0xff] }
 0x423   : > { %v2798_v60 = vmul.f32 %v2285_v45, %v749_v49  ;;  %v3309_v4 = vmul.f32 %v2797_v53, %v2284_v38  ;;  %v1272_v49 = vld [vmem:[%s4435_s5 + $0xf70] sm:$0xff] }
 0x424   : > { %v3808_v63 = vadd.f32 %v3807_v56, %v3297_v48  ;;  %v750_v56 = vld [vmem:[%s4428_s19 + $0xf20] sm:$0xff]  ;;  %v2296_v58 = vsub.f32 %v1272_v49, %v1784_v50  ;;  %v1793_v49 = vld [vmem:[%s4441_s28 + $0xfb8] sm:$0xff] }
 0x425   : > { %v2799_v3 = vmul.f32 %v2286_v52, %v750_v56  ;;  %v3310_v11 = vmul.f32 %v2798_v60, %v2285_v45  ;;  %v1273_v56 = vld [vmem:[%s4435_s5 + $0xf78] sm:$0xff] }
 0x426   : > { %v3809_v6 = vadd.f32 %v3808_v63, %v3298_v55  ;;  %v751_v63 = vld [vmem:[%s4428_s19 + $0xf28] sm:$0xff]  ;;  %v2297_v1 = vsub.f32 %v1273_v56, %v1785_v57  ;;  %v1794_v56 = vld [vmem:[%s4441_s28 + $0xfc0] sm:$0xff] }
 0x427   : > { %v2800_v10 = vmul.f32 %v2287_v59, %v751_v63  ;;  %v3311_v18 = vmul.f32 %v2799_v3, %v2286_v52  ;;  %v1274_v63 = vld [vmem:[%s4435_s5 + $0xf80] sm:$0xff] }
 0x428   : > { %v3810_v13 = vadd.f32 %v3809_v6, %v3299_v62  ;;  %v752_v6 = vld [vmem:[%s4428_s19 + $0xf30] sm:$0xff]  ;;  %v2298_v8 = vsub.f32 %v1274_v63, %v1786_v0  ;;  %v1795_v63 = vld [vmem:[%s4441_s28 + $0xfc8] sm:$0xff] }
 0x429   : > { %v2801_v17 = vmul.f32 %v2288_v2, %v752_v6  ;;  %v3312_v25 = vmul.f32 %v2800_v10, %v2287_v59  ;;  %v1275_v6 = vld [vmem:[%s4435_s5 + $0xf88] sm:$0xff] }
 0x42a   : > { %v3811_v20 = vadd.f32 %v3810_v13, %v3300_v5  ;;  %v753_v13 = vld [vmem:[%s4428_s19 + $0xf38] sm:$0xff]  ;;  %v2299_v15 = vsub.f32 %v1275_v6, %v1787_v7  ;;  %v1796_v6 = vld [vmem:[%s4441_s28 + $0xfd0] sm:$0xff] }
 0x42b   : > { %v2802_v24 = vmul.f32 %v2289_v9, %v753_v13  ;;  %v3313_v32 = vmul.f32 %v2801_v17, %v2288_v2  ;;  %v1276_v13 = vld [vmem:[%s4435_s5 + $0xf90] sm:$0xff] }
 0x42c   : > { %v3812_v27 = vadd.f32 %v3811_v20, %v3301_v12  ;;  %v754_v20 = vld [vmem:[%s4428_s19 + $0xf40] sm:$0xff]  ;;  %v2300_v22 = vsub.f32 %v1276_v13, %v1788_v14  ;;  %v1797_v13 = vld [vmem:[%s4441_s28 + $0xfd8] sm:$0xff] }
 0x42d   : > { %v2803_v31 = vmul.f32 %v2290_v16, %v754_v20  ;;  %v3314_v39 = vmul.f32 %v2802_v24, %v2289_v9  ;;  %v1277_v20 = vld [vmem:[%s4435_s5 + $0xf98] sm:$0xff] }
 0x42e   : > { %v3813_v34 = vadd.f32 %v3812_v27, %v3302_v19  ;;  %v755_v27 = vld [vmem:[%s4428_s19 + $0xf48] sm:$0xff]  ;;  %v2301_v29 = vsub.f32 %v1277_v20, %v1789_v21  ;;  %v1798_v20 = vld [vmem:[%s4441_s28 + $0xfe0] sm:$0xff] }
 0x42f   : > { %v2804_v38 = vmul.f32 %v2291_v23, %v755_v27  ;;  %v3315_v46 = vmul.f32 %v2803_v31, %v2290_v16  ;;  %v1278_v27 = vld [vmem:[%s4435_s5 + $0xfa0] sm:$0xff] }
 0x430   : > { %v3814_v41 = vadd.f32 %v3813_v34, %v3303_v26  ;;  %v756_v34 = vld [vmem:[%s4428_s19 + $0xf50] sm:$0xff]  ;;  %v2302_v36 = vsub.f32 %v1278_v27, %v1790_v28  ;;  %v1799_v27 = vld [vmem:[%s4441_s28 + $0xfe8] sm:$0xff] }
 0x431   : > { %v2805_v45 = vmul.f32 %v2292_v30, %v756_v34  ;;  %v3316_v53 = vmul.f32 %v2804_v38, %v2291_v23  ;;  %v1279_v34 = vld [vmem:[%s4435_s5 + $0xfa8] sm:$0xff] }
 0x432   : > { %v3815_v48 = vadd.f32 %v3814_v41, %v3304_v33  ;;  %v757_v41 = vld [vmem:[%s4428_s19 + $0xf58] sm:$0xff]  ;;  %v2303_v43 = vsub.f32 %v1279_v34, %v1791_v35  ;;  %v1800_v34 = vld [vmem:[%s4441_s28 + $0xff0] sm:$0xff] }
 0x433   : > { %v2806_v52 = vmul.f32 %v2293_v37, %v757_v41  ;;  %v3317_v60 = vmul.f32 %v2805_v45, %v2292_v30  ;;  %v1280_v41 = vld [vmem:[%s4435_s5 + $0xfb0] sm:$0xff] }
 0x434   : > { %v3816_v55 = vadd.f32 %v3815_v48, %v3305_v40  ;;  %v758_v48 = vld [vmem:[%s4428_s19 + $0xf60] sm:$0xff]  ;;  %v2304_v50 = vsub.f32 %v1280_v41, %v1792_v42  ;;  %v1801_v41 = vld [vmem:[%s4441_s28 + $0xff8] sm:$0xff] }
 0x435   : > { %v2807_v59 = vmul.f32 %v2294_v44, %v758_v48  ;;  %v3318_v3 = vmul.f32 %v2806_v52, %v2293_v37  ;;  %v1281_v48 = vld [vmem:[%s4435_s5 + $0xfb8] sm:$0xff] }
 0x436   : > { %v3817_v62 = vadd.f32 %v3816_v55, %v3306_v47  ;;  %v759_v55 = vld [vmem:[%s4428_s19 + $0xf68] sm:$0xff]  ;;  %v2305_v57 = vsub.f32 %v1281_v48, %v1793_v49 }
 0x437   : > { %v2808_v2 = vmul.f32 %v2295_v51, %v759_v55  ;;  %v3319_v10 = vmul.f32 %v2807_v59, %v2294_v44  ;;  %v1282_v55 = vld [vmem:[%s4435_s5 + $0xfc0] sm:$0xff] }
 0x438   : > { %v3818_v5 = vadd.f32 %v3817_v62, %v3307_v54  ;;  %v760_v62 = vld [vmem:[%s4428_s19 + $0xf70] sm:$0xff]  ;;  %v2306_v0 = vsub.f32 %v1282_v55, %v1794_v56 }
 0x439   : > { %v2809_v9 = vmul.f32 %v2296_v58, %v760_v62  ;;  %v3320_v17 = vmul.f32 %v2808_v2, %v2295_v51  ;;  %v1283_v62 = vld [vmem:[%s4435_s5 + $0xfc8] sm:$0xff] }
 0x43a   : > { %v3819_v12 = vadd.f32 %v3818_v5, %v3308_v61  ;;  %v761_v5 = vld [vmem:[%s4428_s19 + $0xf78] sm:$0xff]  ;;  %v2307_v7 = vsub.f32 %v1283_v62, %v1795_v63 }
 0x43b   : > { %v2810_v16 = vmul.f32 %v2297_v1, %v761_v5  ;;  %v3321_v24 = vmul.f32 %v2809_v9, %v2296_v58  ;;  %v1284_v5 = vld [vmem:[%s4435_s5 + $0xfd0] sm:$0xff] }
 0x43c   : > { %v3820_v19 = vadd.f32 %v3819_v12, %v3309_v4  ;;  %v762_v12 = vld [vmem:[%s4428_s19 + $0xf80] sm:$0xff]  ;;  %v2308_v14 = vsub.f32 %v1284_v5, %v1796_v6 }
 0x43d   : > { %v2811_v23 = vmul.f32 %v2298_v8, %v762_v12  ;;  %v3322_v31 = vmul.f32 %v2810_v16, %v2297_v1  ;;  %v1285_v12 = vld [vmem:[%s4435_s5 + $0xfd8] sm:$0xff] }
 0x43e   : > { %v3821_v26 = vadd.f32 %v3820_v19, %v3310_v11  ;;  %v763_v19 = vld [vmem:[%s4428_s19 + $0xf88] sm:$0xff]  ;;  %v2309_v21 = vsub.f32 %v1285_v12, %v1797_v13 }
 0x43f   : > { %v2812_v30 = vmul.f32 %v2299_v15, %v763_v19  ;;  %v3323_v38 = vmul.f32 %v2811_v23, %v2298_v8  ;;  %v1286_v19 = vld [vmem:[%s4435_s5 + $0xfe0] sm:$0xff] }
 0x440   : > { %v3822_v33 = vadd.f32 %v3821_v26, %v3311_v18  ;;  %v764_v26 = vld [vmem:[%s4428_s19 + $0xf90] sm:$0xff]  ;;  %v2310_v28 = vsub.f32 %v1286_v19, %v1798_v20 }
 0x441   : > { %v2813_v37 = vmul.f32 %v2300_v22, %v764_v26  ;;  %v3324_v45 = vmul.f32 %v2812_v30, %v2299_v15  ;;  %v1287_v26 = vld [vmem:[%s4435_s5 + $0xfe8] sm:$0xff] }
 0x442   : > { %v3823_v40 = vadd.f32 %v3822_v33, %v3312_v25  ;;  %v765_v33 = vld [vmem:[%s4428_s19 + $0xf98] sm:$0xff]  ;;  %v2311_v35 = vsub.f32 %v1287_v26, %v1799_v27 }
 0x443   : > { %v2814_v44 = vmul.f32 %v2301_v29, %v765_v33  ;;  %v3325_v52 = vmul.f32 %v2813_v37, %v2300_v22  ;;  %v1288_v33 = vld [vmem:[%s4435_s5 + $0xff0] sm:$0xff] }
 0x444   : > { %v3824_v47 = vadd.f32 %v3823_v40, %v3313_v32  ;;  %v766_v40 = vld [vmem:[%s4428_s19 + $0xfa0] sm:$0xff]  ;;  %v2312_v42 = vsub.f32 %v1288_v33, %v1800_v34 }
 0x445   : > { %v2815_v51 = vmul.f32 %v2302_v36, %v766_v40  ;;  %v3326_v59 = vmul.f32 %v2814_v44, %v2301_v29  ;;  %v1289_v40 = vld [vmem:[%s4435_s5 + $0xff8] sm:$0xff] }
 0x446   : > { %v3825_v54 = vadd.f32 %v3824_v47, %v3314_v39  ;;  %v767_v47 = vld [vmem:[%s4428_s19 + $0xfa8] sm:$0xff] }
 0x447   : > { %v2816_v58 = vmul.f32 %v2303_v43, %v767_v47  ;;  %v3327_v2 = vmul.f32 %v2815_v51, %v2302_v36  ;;  %v2313_v47 = vsub.f32 %v1289_v40, %v1801_v41  ;;  %v777_v51 = vld [vmem:[%s4428_s19 + $0xff8] sm:$0xff] }
 0x448   : > { %v3826_v61 = vadd.f32 %v3825_v54, %v3315_v46  ;;  %v768_v54 = vld [vmem:[%s4428_s19 + $0xfb0] sm:$0xff] }
 0x449   : > { %v2817_v1 = vmul.f32 %v2304_v50, %v768_v54  ;;  %v3328_v9 = vmul.f32 %v2816_v58, %v2303_v43  ;;  %v2826_v55 = vmul.f32 %v2313_v47, %v777_v51 }
 0x44a   : > { %v3827_v4 = vadd.f32 %v3826_v61, %v3316_v53  ;;  %v769_v61 = vld [vmem:[%s4428_s19 + $0xfb8] sm:$0xff] }
 0x44b   : > { %v2818_v8 = vmul.f32 %v2305_v57, %v769_v61  ;;  %v3329_v16 = vmul.f32 %v2817_v1, %v2304_v50 }
 0x44c   : > { %v3828_v11 = vadd.f32 %v3827_v4, %v3317_v60  ;;  %v770_v4 = vld [vmem:[%s4428_s19 + $0xfc0] sm:$0xff] }
 0x44d   : > { %v2819_v15 = vmul.f32 %v2306_v0, %v770_v4  ;;  %v3330_v23 = vmul.f32 %v2818_v8, %v2305_v57 }
 0x44e   : > { %v3829_v18 = vadd.f32 %v3828_v11, %v3318_v3  ;;  %v771_v11 = vld [vmem:[%s4428_s19 + $0xfc8] sm:$0xff] }
 0x44f   : > { %v2820_v22 = vmul.f32 %v2307_v7, %v771_v11  ;;  %v3331_v30 = vmul.f32 %v2819_v15, %v2306_v0 }
 0x450   : > { %v3830_v25 = vadd.f32 %v3829_v18, %v3319_v10  ;;  %v772_v18 = vld [vmem:[%s4428_s19 + $0xfd0] sm:$0xff] }
 0x451   : > { %v2821_v29 = vmul.f32 %v2308_v14, %v772_v18  ;;  %v3332_v37 = vmul.f32 %v2820_v22, %v2307_v7  ;;  %v2314_v7 = vld [vmem:[#allocation2] sm:$0x1] }
 0x452   : > { %v3831_v32 = vadd.f32 %v3830_v25, %v3320_v17  ;;  %v773_v25 = vld [vmem:[%s4428_s19 + $0xfd8] sm:$0xff] }
 0x453   : > { %v2822_v36 = vmul.f32 %v2309_v21, %v773_v25  ;;  %v3333_v44 = vmul.f32 %v2821_v29, %v2308_v14 }
 0x454   : > { %v3832_v39 = vadd.f32 %v3831_v32, %v3321_v24  ;;  %v774_v32 = vld [vmem:[%s4428_s19 + $0xfe0] sm:$0xff] }
 0x455   : > { %v2823_v43 = vmul.f32 %v2310_v28, %v774_v32  ;;  %v3334_v49 = vmul.f32 %v2822_v36, %v2309_v21 }
 0x456   : > { %v3833_v46 = vadd.f32 %v3832_v39, %v3322_v31  ;;  %v775_v39 = vld [vmem:[%s4428_s19 + $0xfe8] sm:$0xff] }
 0x457   : > { %v2824_v48 = vmul.f32 %v2311_v35, %v775_v39 }
 0x458   : > { %v3834_v53 = vadd.f32 %v3833_v46, %v3323_v38  ;;  %v776_v46 = vld [vmem:[%s4428_s19 + $0xff0] sm:$0xff] }
 0x459   : > { %v3336_v56 = vmul.f32 %v2824_v48, %v2311_v35 }
 0x45a   : > { %v3835_v60 = vadd.f32 %v3834_v53, %v3324_v45  ;;  %v3335_v53 = vmul.f32 %v2823_v43, %v2310_v28 }
 0x45c   : > { %v3836_v3 = vadd.f32 %v3835_v60, %v3325_v52  ;;  %v2825_v52 = vmul.f32 %v2312_v42, %v776_v46  ;;  %v3338_v60 = vmul.f32 %v2826_v55, %v2313_v47 }
 0x45e   : > { %v3837_v10 = vadd.f32 %v3836_v3, %v3326_v59  ;;  %v3337_v58 = vmul.f32 %v2825_v52, %v2312_v42 }
 0x460   : > { %v3838_v17 = vadd.f32 %v3837_v10, %v3327_v2 }
 0x462   : > { %v3839_v24 = vadd.f32 %v3838_v17, %v3328_v9 }
 0x464   : > { %v3840_v31 = vadd.f32 %v3839_v24, %v3329_v16 }
 0x466   : > { %v3841_v38 = vadd.f32 %v3840_v31, %v3330_v23 }
 0x468   : > { %v3842_v45 = vadd.f32 %v3841_v38, %v3331_v30 }
 0x46a   : > { %v3843_v50 = vadd.f32 %v3842_v45, %v3332_v37 }
 0x46c   : > { %v3844_v54 = vadd.f32 %v3843_v50, %v3333_v44 }
 0x46e   : > { %v3845_v57 = vadd.f32 %v3844_v54, %v3334_v49 }
 0x470   : > { %v3846_v59 = vadd.f32 %v3845_v57, %v3335_v53 }
 0x472   : > { %v3847_v61 = vadd.f32 %v3846_v59, %v3336_v56 }
 0x474   : > { %v3848_v62 = vadd.f32 %v3847_v61, %v3337_v58 }
 0x476   : > { %v3849_v63 = vadd.f32 %v3848_v62, %v3338_v60 }
 0x478   : > { %3850 = vadd.xlane.f32.xlu0 %v3849_v63 }
 0x505   : > { %v3851_v0 = vpop.xlane.xlu0 %3850 }
 0x506   : > { %v3852_v1 = vrot.slane %v3851_v0, 4 }
 0x508   : > { %v3853_v2 = vadd.f32 %v3852_v1, %v3851_v0 }
 0x50a   : > { %v3854_v3 = vrot.slane %v3853_v2, 2 }
 0x50c   : > { %v3855_v4 = vadd.f32 %v3854_v3, %v3853_v2 }
 0x50e   : > { %v3856_v5 = vrot.slane %v3855_v4, 1 }
 0x510   : > { %v3857_v6 = vadd.f32 %v3856_v5, %v3855_v4 }
 0x512   : > { %4000 = vpush %v3857_v6 }
 0x541   : > { %3866 = sbr.rel (%p3989_p2) target bundleno = 1360 (0x550), region = 52 }
 0x543   : > { %s4001_s21 = spop %4000 }
 0x544   : > { %v3859_v8 = vstv %s4001_s21 }
 0x545   : > { %v3860_v9 = vadd.f32 %v3859_v8, %v2314_v7 }
 0x547   : > { %3862 = vst.msk [vmem:[#allocation2] sm:$0x1] %vm3861_vm1, %v3860_v9 }
 0x54e   : > { %v3867_v10 = vld [vmem:[#allocation2] sm:$0x1] }
 0x54f   : > { %3868 = vst.msk [vmem:[#allocation9] sm:$0x1] %vm3861_vm1, %v3867_v10 }
 0x550 PF: > { %p4023_p7 = scmp.eq.s32.totalorder %s4267_s16, 1  ;;  %s4227_s30 = smov [#allocation9]  }
 0x551   : > { %s3876_s6 = sshll.u32 %s4227_s30, 4  ;;  %s3877_s6 = int_to_ptr.vmem [resolvable:$true] %s3876_s6 }
 0x552   : > { %s4151_s15 = scalar_lea.vmem %s3877_s6, 16  ;;  %s4157_s26 = scalar_lea.vmem %s3877_s6, 32 }
 0x553   : > { %p4152_p9 = scmp.ne.s32.totalorder %s3877_s6, %s4151_s15  ;;  %p4158_p5 = scmp.lt.s32.totalorder %s3877_s6, %s3877_s6 }
 0x554   : > { %p4159_p6 = scmp.lt.s32.totalorder %s4157_s26, %s4151_s15 }
 0x555   : > { %p4153_p0 = pnand %p4152_p9, %p4023_p7 }
 0x556   : > { %p4160_p10 = por %p4159_p6, %p4158_p5 }
 0x557   : > { %p4154_p3 = pneg %p4153_p0 }
 0x559   : > { %p4161_p4 = pnand %p4160_p10, %p4154_p3 }
 0x55b   : > { %4164 = shalt.err (!%p4161_p4)
}
 0x55c   : > { %s4165_s11 = scalar_lea.hbm %s6020_s3, 16 }
 0x55d   : > { %p4166_p13 = scmp.ne.s32.totalorder %s6020_s3, %s4165_s11  ;;  %p4171_p11 = scmp.lt.u32.totalorder %s4165_s11, %s6020_s3 }
 0x55f   : > { %p4167_p1 = pnand %p4166_p13, %p4023_p7 }
 0x561   : > { %p4168_p12 = pneg %p4167_p1 }
 0x563   : > { %p4173_p8 = pnand %p4171_p11, %p4168_p12 }
 0x565   : > { %4176 = shalt.err (!%p4173_p8)
}
 0x566   : > { %4009 = dma.vmem_to_hbm [thread:$0]  (%p4023_p7), %s3877_s6, 16, %s6020_s3, [#allocation5]  }
 0x567   : > { %4202 = dma.done.wait (%p4023_p7), [#allocation5], 16  }
 0x568   : > { %4204 = vsyncadd (%p4023_p7), [#allocation5], 4294967280 }
 0x569 PF: > { %p17_p2 = scmp.ge.s32.totalorder %s4270_s17, 4   ;;  %s6030_s12 = smov %s4211_s13 }
 0x56a   : > { %s6031_s13 = smov %s4215_s14  ;;  %s6032_s14 = smov %s4280_s20 }
 0x56b   : > { %s6033_s15 = smov %s4270_s17  ;;  %19 = sbr.rel (!%p17_p2) target bundleno = 6 (0x6), region = 101 }
 0x572   :  { %3889 = vsyncpa [#allocation4], 1 }
 0x573   :  { %3891 = vsyncpa [#allocation4 + $0x1], 1 }
 0x574   :  { %3892 = vsyncpa [#allocation7], 1 }
 0x575   :  { %3894 = vsyncpa [#allocation7 + $0x1], 1 }
 0x576   :  { %3895 = vsyncpa [#allocation5], 1 }
 0x577   :  { %3897 = vsyncpa [#allocation5 + $0x1], 1 }

</bundles_post_ra>
